<compile_context>
chip_gen: v7x
topology: tpu7x:2x2x1
jax: 0.10.0
libtpu: 0.0.40
codegen_flags: <defaults>
</compile_context>

<pallas_src>
import jax
import jax.numpy as jnp
import numpy as np
from jax import lax
from jax.experimental import pallas as pl
from jax.experimental.pallas import tpu as pltpu


def _round_up(x, m):
    return ((x + m - 1) // m) * m


def _recurrent_kernel(s_ref, w1_ref, b1_ref, wih_ref, whh_ref, bgate_ref,
                      w2_ref, b2_ref, h0_ref, c0_ref,
                      logits_ref, h_out_ref, c_out_ref,
                      seq_ref, gx_ref):
    T, Bb, D = s_ref.shape
    Hp = w1_ref.shape[1]          # padded hidden (multiple of 128)
    L = wih_ref.shape[0]

    # ---- fc1 over all timesteps at once: (T*B, D) @ (D, Hp) + b1 ----
    x = jnp.dot(s_ref[...].reshape(T * Bb, D), w1_ref[...],
                preferred_element_type=jnp.float32) + b1_ref[...]
    seq_ref[...] = x.reshape(T, Bb, Hp)

    # ---- stacked LSTM (PyTorch gate order: i, f, g, o) ----
    for l in range(L):            # static layer loop (L is small)
        # Hoisted input-side gate matmul + fused bias for the whole sequence:
        # one big MXU call instead of T tiny ones on the serial critical path.
        gx = (jnp.dot(seq_ref[...].reshape(T * Bb, Hp), wih_ref[l],
                      preferred_element_type=jnp.float32)
              + bgate_ref[l][None, :])
        gx_ref[...] = gx.reshape(T, Bb, 4 * Hp)

        # Run the recurrence directly in the (aliased) output blocks.
        h_out_ref[l] = h0_ref[l]
        c_out_ref[l] = c0_ref[l]

        def step(t, carry, l=l):
            h = h_out_ref[l]
            c = c_out_ref[l]
            gates = gx_ref[t] + jnp.dot(h, whh_ref[l],
                                        preferred_element_type=jnp.float32)
            # Full-width sigmoid over the packed gates (i | f | . | o) plus one
            # lane-aligned tanh slice for g -> 2 EUP dispatches instead of 4.
            sig = jax.nn.sigmoid(gates)
            g_g = jnp.tanh(gates[:, 2 * Hp:3 * Hp])
            i_g = sig[:, 0 * Hp:1 * Hp]
            f_g = sig[:, 1 * Hp:2 * Hp]
            o_g = sig[:, 3 * Hp:4 * Hp]
            c_new = f_g * c + i_g * g_g
            h_new = o_g * jnp.tanh(c_new)
            c_out_ref[l] = c_new
            h_out_ref[l] = h_new
            seq_ref[t] = h_new       # output sequence of this layer (input to next)
            return carry

        if T <= 32:
            # Fully unroll short sequences: loop bookkeeping would dominate the
            # tiny per-step body and unrolling lets the scheduler overlap steps.
            for t in range(T):
                step(t, 0)
        else:
            lax.fori_loop(0, T, step, 0)

    # ---- fc2 on the last timestep of the top layer (lane-dense output) ----
    logits_ref[...] = (jnp.dot(seq_ref[T - 1], w2_ref[...],
                               preferred_element_type=jnp.float32)
                       + b2_ref[...])


@jax.jit
def recurrent_forward(params, s, state=None):
    s = jnp.asarray(s, jnp.float32)
    if s.ndim == 2:
        s = s[:, None, :]             # [B, D] -> [B, 1, D]
    B, T, D = s.shape
    H = params["w1"].shape[1]
    L = params["wih"].shape[0]
    A = params["w2"].shape[1]

    f32 = jnp.float32
    Hp = _round_up(H, 128)            # lane-aligned hidden
    Ap = _round_up(A, 128)            # lane-dense logits output
    Bp = _round_up(B, 8)              # sublane-aligned batch
    B_blk = 8
    nb = Bp // B_blk

    # ---- zero-pad parameters to aligned tiles (semantics preserved) ----
    # TODO(synk): at scaled-up H, cast weights to bf16 (f32 accumulate) for the
    # MXU fast path; kept f32 here to preserve exact-f32 numerics at demo scale.
    w1 = jnp.zeros((D, Hp), f32).at[:, :H].set(params["w1"])
    b1 = jnp.zeros((1, Hp), f32).at[0, :H].set(params["b1"])
    wih = jnp.zeros((L, Hp, 4 * Hp), f32)
    whh = jnp.zeros((L, Hp, 4 * Hp), f32)
    bgate = jnp.zeros((L, 4 * Hp), f32)
    for k in range(4):                # per-gate block placement (i, f, g, o)
        wih = wih.at[:, :H, k * Hp:k * Hp + H].set(
            params["wih"][:, :, k * H:(k + 1) * H])
        whh = whh.at[:, :H, k * Hp:k * Hp + H].set(
            params["whh"][:, :, k * H:(k + 1) * H])
        bgate = bgate.at[:, k * Hp:k * Hp + H].set(
            params["bgate"][:, k * H:(k + 1) * H])
    w2 = jnp.zeros((Hp, Ap), f32).at[:H, :A].set(params["w2"])
    b2 = jnp.zeros((1, Ap), f32).at[0, :A].set(params["b2"])

    if state is None:
        h0 = jnp.zeros((L, Bp, Hp), f32)
        c0 = jnp.zeros((L, Bp, Hp), f32)
    else:
        # state stored batch-major [B, L, H] (as in the torch module's return)
        h_lm = jnp.transpose(state["h"].astype(f32), (1, 0, 2))
        c_lm = jnp.transpose(state["c"].astype(f32), (1, 0, 2))
        h0 = jnp.zeros((L, Bp, Hp), f32).at[:, :B, :H].set(h_lm)
        c0 = jnp.zeros((L, Bp, Hp), f32).at[:, :B, :H].set(c_lm)

    # time-major, batch-padded input [T, Bp, D]
    s_tm = jnp.zeros((T, Bp, D), f32).at[:, :B, :].set(jnp.transpose(s, (1, 0, 2)))

    logits, h, c = pl.pallas_call(
        _recurrent_kernel,
        grid=(nb,),
        in_specs=[
            pl.BlockSpec((T, B_blk, D), lambda b: (0, b, 0)),        # s_tm
            pl.BlockSpec((D, Hp), lambda b: (0, 0)),                 # w1
            pl.BlockSpec((1, Hp), lambda b: (0, 0)),                 # b1
            pl.BlockSpec((L, Hp, 4 * Hp), lambda b: (0, 0, 0)),      # wih
            pl.BlockSpec((L, Hp, 4 * Hp), lambda b: (0, 0, 0)),      # whh
            pl.BlockSpec((L, 4 * Hp), lambda b: (0, 0)),             # bgate
            pl.BlockSpec((Hp, Ap), lambda b: (0, 0)),                # w2
            pl.BlockSpec((1, Ap), lambda b: (0, 0)),                 # b2
            pl.BlockSpec((L, B_blk, Hp), lambda b: (0, b, 0)),       # h0
            pl.BlockSpec((L, B_blk, Hp), lambda b: (0, b, 0)),       # c0
        ],
        out_specs=(
            pl.BlockSpec((B_blk, Ap), lambda b: (b, 0)),             # logits
            pl.BlockSpec((L, B_blk, Hp), lambda b: (0, b, 0)),       # h
            pl.BlockSpec((L, B_blk, Hp), lambda b: (0, b, 0)),       # c
        ),
        out_shape=(
            jax.ShapeDtypeStruct((Bp, Ap), f32),
            jax.ShapeDtypeStruct((L, Bp, Hp), f32),
            jax.ShapeDtypeStruct((L, Bp, Hp), f32),
        ),
        scratch_shapes=[
            pltpu.VMEM((T, B_blk, Hp), f32),        # running layer output sequence
            pltpu.VMEM((T, B_blk, 4 * Hp), f32),    # hoisted input-side gates G_x
        ],
        input_output_aliases={8: 1, 9: 2},          # h0 -> h_out, c0 -> c_out
        compiler_params=pltpu.CompilerParams(
            dimension_semantics=("parallel",)),
    )(s_tm, w1, b1, wih, whh, bgate, w2, b2, h0, c0)

    logits = logits[:B, :A]
    h = jnp.transpose(h[:, :B, :H], (1, 0, 2))      # [B, L, H]
    c = jnp.transpose(c[:, :B, :H], (1, 0, 2))
    return logits, {"h": h, "c": c}


def recurrent_reference(params, s, state=None):
    """Pure-JAX reference (mirrors the torch forward)."""
    s = jnp.asarray(s, jnp.float32)
    if s.ndim == 2:
        s = s[:, None, :]
    B, T, D = s.shape
    H = params["w1"].shape[1]
    L = params["wih"].shape[0]
    x = jnp.einsum("btd,dh->bth", s, params["w1"]) + params["b1"]
    if state is None:
        h0 = jnp.zeros((B, L, H), jnp.float32)
        c0 = jnp.zeros((B, L, H), jnp.float32)
    else:
        h0, c0 = state["h"], state["c"]
    hs, cs, layer_in = [], [], x
    for l in range(L):
        h, c, outs = h0[:, l, :], c0[:, l, :], []
        for t in range(T):
            gates = (layer_in[:, t, :] @ params["wih"][l]
                     + h @ params["whh"][l] + params["bgate"][l])
            i = jax.nn.sigmoid(gates[:, :H])
            f = jax.nn.sigmoid(gates[:, H:2 * H])
            g = jnp.tanh(gates[:, 2 * H:3 * H])
            o = jax.nn.sigmoid(gates[:, 3 * H:])
            c = f * c + i * g
            h = o * jnp.tanh(c)
            outs.append(h)
        layer_in = jnp.stack(outs, axis=1)
        hs.append(h)
        cs.append(c)
    logits = layer_in[:, -1, :] @ params["w2"] + params["b2"]
    return logits, {"h": jnp.stack(hs, 1), "c": jnp.stack(cs, 1)}


def init_params(key, state_dim, action_dim, hidden, layer_num):
    ks = jax.random.split(key, 8)

    def u(k, shape, bound):
        return jax.random.uniform(k, shape, jnp.float32, -bound, bound)

    kf = 1.0 / np.sqrt(state_dim)
    kh = 1.0 / np.sqrt(hidden)
    w1 = u(ks[0], (state_dim, hidden), kf)                # fc1.weight.T
    b1 = u(ks[1], (hidden,), kf)
    wih = u(ks[2], (layer_num, hidden, 4 * hidden), kh)   # W_ih.T per layer
    whh = u(ks[3], (layer_num, hidden, 4 * hidden), kh)   # W_hh.T per layer
    bgate = (u(ks[4], (layer_num, 4 * hidden), kh)
             + u(ks[5], (layer_num, 4 * hidden), kh))     # b_ih + b_hh
    w2 = u(ks[6], (hidden, action_dim), kh)               # fc2.weight.T
    b2 = u(ks[7], (action_dim,), kh)
    return {"w1": w1, "b1": b1, "wih": wih, "whh": whh,
            "bgate": bgate, "w2": w2, "b2": b2}


if __name__ == "__main__":
    B, T = 2, 8
    state_shape = (16,)          # state dim D = 16
    action_shape = (4,)          # action dim A = 4
    hidden = 32
    layer_num = 2

    key = jax.random.PRNGKey(0)
    kp, kx = jax.random.split(key)
    params = init_params(kp, int(np.prod(state_shape)),
                         int(np.prod(action_shape)), hidden, layer_num)
    s = jax.random.normal(kx, (B, T, int(np.prod(state_shape))), jnp.float32)

    # pass 1: no initial state (zeros)
    logits, st = recurrent_forward(params, s)
    logits = jax.block_until_ready(logits)
    ref_logits, ref_st = recurrent_reference(params, s)

    assert jnp.allclose(logits, ref_logits, atol=2e-4, rtol=2e-4)
    assert jnp.allclose(st["h"], ref_st["h"], atol=2e-4, rtol=2e-4)
    assert jnp.allclose(st["c"], ref_st["c"], atol=2e-4, rtol=2e-4)

    # pass 2: feed the returned recurrent state back in
    logits2, st2 = recurrent_forward(params, s, state=st)
    logits2 = jax.block_until_ready(logits2)
    ref_logits2, ref_st2 = recurrent_reference(params, s, state=ref_st)
    assert jnp.allclose(logits2, ref_logits2, atol=2e-4, rtol=2e-4)
    assert jnp.allclose(st2["h"], ref_st2["h"], atol=2e-4, rtol=2e-4)
    assert jnp.allclose(st2["c"], ref_st2["c"], atol=2e-4, rtol=2e-4)

    print("KERNEL_OK")
</pallas_src>

<mosaic_0001>
module attributes {stable_mosaic.version = 11 : i64} {
  func.func @_recurrent_kernel(%arg0: i32, %arg1: memref<8x8x16xf32, #tpu.memory_space<vmem>>, %arg2: memref<16x128xf32, #tpu.memory_space<vmem>>, %arg3: memref<1x128xf32, #tpu.memory_space<vmem>>, %arg4: memref<2x128x512xf32, #tpu.memory_space<vmem>>, %arg5: memref<2x128x512xf32, #tpu.memory_space<vmem>>, %arg6: memref<2x512xf32, #tpu.memory_space<vmem>>, %arg7: memref<128x128xf32, #tpu.memory_space<vmem>>, %arg8: memref<1x128xf32, #tpu.memory_space<vmem>>, %arg9: memref<2x8x128xf32, #tpu.memory_space<vmem>>, %arg10: memref<2x8x128xf32, #tpu.memory_space<vmem>>, %arg11: memref<8x128xf32, #tpu.memory_space<vmem>>, %arg12: memref<2x8x128xf32, #tpu.memory_space<vmem>>, %arg13: memref<2x8x128xf32, #tpu.memory_space<vmem>>, %arg14: memref<8x8x128xf32, #tpu.memory_space<vmem>>, %arg15: memref<8x8x512xf32, #tpu.memory_space<vmem>>) attributes {dimension_semantics = [#tpu.dimension_semantics<parallel>], iteration_bounds = array<i64: 1>, scalar_prefetch = 0 : i64, scratch_operands = 2 : i64, tpu.core_type = #tpu.core_type<tc>, window_params = [{transform_indices = @transform_0, window_bounds = array<i64: 8, 8, 16>}, {pipeline_mode = #tpu.pipeline_mode<synchronous>, transform_indices = @transform_1, window_bounds = array<i64: 16, 128>}, {pipeline_mode = #tpu.pipeline_mode<synchronous>, transform_indices = @transform_2, window_bounds = array<i64: 1, 128>}, {pipeline_mode = #tpu.pipeline_mode<synchronous>, transform_indices = @transform_3, window_bounds = array<i64: 2, 128, 512>}, {pipeline_mode = #tpu.pipeline_mode<synchronous>, transform_indices = @transform_4, window_bounds = array<i64: 2, 128, 512>}, {pipeline_mode = #tpu.pipeline_mode<synchronous>, transform_indices = @transform_5, window_bounds = array<i64: 2, 512>}, {pipeline_mode = #tpu.pipeline_mode<synchronous>, transform_indices = @transform_6, window_bounds = array<i64: 128, 128>}, {pipeline_mode = #tpu.pipeline_mode<synchronous>, transform_indices = @transform_7, window_bounds = array<i64: 1, 128>}, {transform_indices = @transform_8, window_bounds = array<i64: 2, 8, 128>}, {transform_indices = @transform_9, window_bounds = array<i64: 2, 8, 128>}, {transform_indices = @transform_10, window_bounds = array<i64: 8, 128>}, {transform_indices = @transform_11, window_bounds = array<i64: 2, 8, 128>}, {transform_indices = @transform_12, window_bounds = array<i64: 2, 8, 128>}]} {
    %c0 = arith.constant 0 : index
    %c0_0 = arith.constant 0 : index
    %c0_1 = arith.constant 0 : index
    %0 = vector.load %arg1[%c0, %c0_0, %c0_1] : memref<8x8x16xf32, #tpu.memory_space<vmem>>, vector<8x8x16xf32>
    %1 = vector.shape_cast %0 : vector<8x8x16xf32> to vector<64x16xf32>
    %c0_2 = arith.constant 0 : index
    %c0_3 = arith.constant 0 : index
    %2 = vector.load %arg2[%c0_2, %c0_3] : memref<16x128xf32, #tpu.memory_space<vmem>>, vector<16x128xf32>
    %cst = arith.constant dense<0.000000e+00> : vector<64x128xf32>
    %3 = tpu.matmul %1, %2, %cst {dimension_numbers = #tpu.dot_dimension_numbers<[1], [0], [0], [1], [0, 0, 1, 1], [], []>} : vector<64x16xf32>, vector<16x128xf32>, vector<64x128xf32> -> vector<64x128xf32>
    %c0_4 = arith.constant 0 : index
    %c0_5 = arith.constant 0 : index
    %4 = vector.load %arg3[%c0_4, %c0_5] : memref<1x128xf32, #tpu.memory_space<vmem>>, vector<1x128xf32>
    %5 = vector.broadcast %4 : vector<1x128xf32> to vector<64x128xf32>
    %6 = arith.addf %3, %5 : vector<64x128xf32>
    %7 = vector.shape_cast %6 : vector<64x128xf32> to vector<8x8x128xf32>
    %c0_6 = arith.constant 0 : index
    %c0_7 = arith.constant 0 : index
    %c0_8 = arith.constant 0 : index
    %8 = vector.load %arg14[%c0_6, %c0_7, %c0_8] : memref<8x8x128xf32, #tpu.memory_space<vmem>>, vector<8x8x128xf32>
    tpu.vector_store %arg14[%c0_6, %c0_7, %c0_8], %7 {strides = array<i32>} : memref<8x8x128xf32, #tpu.memory_space<vmem>>, vector<8x8x128xf32>,
    %c0_9 = arith.constant 0 : index
    %c0_10 = arith.constant 0 : index
    %c0_11 = arith.constant 0 : index
    %9 = vector.load %arg14[%c0_9, %c0_10, %c0_11] : memref<8x8x128xf32, #tpu.memory_space<vmem>>, vector<8x8x128xf32>
    %10 = vector.shape_cast %9 : vector<8x8x128xf32> to vector<64x128xf32>
    %c0_12 = arith.constant 0 : index
    %c0_13 = arith.constant 0 : index
    %c0_14 = arith.constant 0 : index
    %11 = vector.load %arg4[%c0_12, %c0_13, %c0_14] : memref<2x128x512xf32, #tpu.memory_space<vmem>>, vector<1x128x512xf32>
    %12 = vector.shape_cast %11 : vector<1x128x512xf32> to vector<128x512xf32>
    %cst_15 = arith.constant dense<0.000000e+00> : vector<64x512xf32>
    %13 = tpu.matmul %10, %12, %cst_15 {dimension_numbers = #tpu.dot_dimension_numbers<[1], [0], [0], [1], [0, 0, 1, 1], [], []>} : vector<64x128xf32>, vector<128x512xf32>, vector<64x512xf32> -> vector<64x512xf32>
    %c0_16 = arith.constant 0 : index
    %c0_17 = arith.constant 0 : index
    %14 = vector.load %arg6[%c0_16, %c0_17] : memref<2x512xf32, #tpu.memory_space<vmem>>, vector<1x512xf32>
    %15 = vector.shape_cast %14 : vector<1x512xf32> to vector<512xf32>
    %16 = vector.shape_cast %15 : vector<512xf32> to vector<1x512xf32>
    %17 = vector.broadcast %16 : vector<1x512xf32> to vector<64x512xf32>
    %18 = arith.addf %13, %17 : vector<64x512xf32>
    %19 = vector.shape_cast %18 : vector<64x512xf32> to vector<8x8x512xf32>
    %c0_18 = arith.constant 0 : index
    %c0_19 = arith.constant 0 : index
    %c0_20 = arith.constant 0 : index
    %20 = vector.load %arg15[%c0_18, %c0_19, %c0_20] : memref<8x8x512xf32, #tpu.memory_space<vmem>>, vector<8x8x512xf32>
    tpu.vector_store %arg15[%c0_18, %c0_19, %c0_20], %19 {strides = array<i32>} : memref<8x8x512xf32, #tpu.memory_space<vmem>>, vector<8x8x512xf32>,
    %c0_21 = arith.constant 0 : index
    %c0_22 = arith.constant 0 : index
    %c0_23 = arith.constant 0 : index
    %21 = vector.load %arg9[%c0_21, %c0_22, %c0_23] : memref<2x8x128xf32, #tpu.memory_space<vmem>>, vector<1x8x128xf32>
    %22 = vector.shape_cast %21 : vector<1x8x128xf32> to vector<8x128xf32>
    %c0_24 = arith.constant 0 : index
    %c0_25 = arith.constant 0 : index
    %c0_26 = arith.constant 0 : index
    %23 = vector.load %arg12[%c0_24, %c0_25, %c0_26] : memref<2x8x128xf32, #tpu.memory_space<vmem>>, vector<1x8x128xf32>
    %24 = vector.shape_cast %23 : vector<1x8x128xf32> to vector<8x128xf32>
    %25 = vector.shape_cast %22 : vector<8x128xf32> to vector<1x8x128xf32>
    tpu.vector_store %arg12[%c0_24, %c0_25, %c0_26], %25 {strides = array<i32>} : memref<2x8x128xf32, #tpu.memory_space<vmem>>, vector<1x8x128xf32>,
    %c0_27 = arith.constant 0 : index
    %c0_28 = arith.constant 0 : index
    %c0_29 = arith.constant 0 : index
    %26 = vector.load %arg10[%c0_27, %c0_28, %c0_29] : memref<2x8x128xf32, #tpu.memory_space<vmem>>, vector<1x8x128xf32>
    %27 = vector.shape_cast %26 : vector<1x8x128xf32> to vector<8x128xf32>
    %c0_30 = arith.constant 0 : index
    %c0_31 = arith.constant 0 : index
    %c0_32 = arith.constant 0 : index
    %28 = vector.load %arg13[%c0_30, %c0_31, %c0_32] : memref<2x8x128xf32, #tpu.memory_space<vmem>>, vector<1x8x128xf32>
    %29 = vector.shape_cast %28 : vector<1x8x128xf32> to vector<8x128xf32>
    %30 = vector.shape_cast %27 : vector<8x128xf32> to vector<1x8x128xf32>
    tpu.vector_store %arg13[%c0_30, %c0_31, %c0_32], %30 {strides = array<i32>} : memref<2x8x128xf32, #tpu.memory_space<vmem>>, vector<1x8x128xf32>,
    %c0_33 = arith.constant 0 : index
    %c0_34 = arith.constant 0 : index
    %c0_35 = arith.constant 0 : index
    %31 = vector.load %arg12[%c0_33, %c0_34, %c0_35] : memref<2x8x128xf32, #tpu.memory_space<vmem>>, vector<1x8x128xf32>
    %32 = vector.shape_cast %31 : vector<1x8x128xf32> to vector<8x128xf32>
    %c0_36 = arith.constant 0 : index
    %c0_37 = arith.constant 0 : index
    %c0_38 = arith.constant 0 : index
    %33 = vector.load %arg13[%c0_36, %c0_37, %c0_38] : memref<2x8x128xf32, #tpu.memory_space<vmem>>, vector<1x8x128xf32>
    %34 = vector.shape_cast %33 : vector<1x8x128xf32> to vector<8x128xf32>
    %c0_39 = arith.constant 0 : index
    %c0_40 = arith.constant 0 : index
    %c0_41 = arith.constant 0 : index
    %35 = vector.load %arg15[%c0_39, %c0_40, %c0_41] : memref<8x8x512xf32, #tpu.memory_space<vmem>>, vector<1x8x512xf32>
    %36 = vector.shape_cast %35 : vector<1x8x512xf32> to vector<8x512xf32>
    %c0_42 = arith.constant 0 : index
    %c0_43 = arith.constant 0 : index
    %c0_44 = arith.constant 0 : index
    %37 = vector.load %arg5[%c0_42, %c0_43, %c0_44] : memref<2x128x512xf32, #tpu.memory_space<vmem>>, vector<1x128x512xf32>
    %38 = vector.shape_cast %37 : vector<1x128x512xf32> to vector<128x512xf32>
    %cst_45 = arith.constant dense<0.000000e+00> : vector<8x512xf32>
    %39 = tpu.matmul %32, %38, %cst_45 {dimension_numbers = #tpu.dot_dimension_numbers<[1], [0], [0], [1], [0, 0, 1, 1], [], []>} : vector<8x128xf32>, vector<128x512xf32>, vector<8x512xf32> -> vector<8x512xf32>
    %40 = arith.addf %36, %39 : vector<8x512xf32>
    %41 = arith.negf %40 : vector<8x512xf32>
    %42 = math.exp %41 : vector<8x512xf32>
    %cst_46 = arith.constant 1.000000e+00 : f32
    %43 = vector.broadcast %cst_46 : f32 to vector<8x512xf32>
    %44 = arith.addf %43, %42 : vector<8x512xf32>
    %45 = arith.divf %43, %44 : vector<8x512xf32>
    %46 = vector.extract_strided_slice %40 {offsets = [0, 256], sizes = [8, 128], strides = [1, 1]} : vector<8x512xf32> to vector<8x128xf32>
    %47 = math.tanh %46 : vector<8x128xf32>
    %48 = vector.extract_strided_slice %45 {offsets = [0, 0], sizes = [8, 128], strides = [1, 1]} : vector<8x512xf32> to vector<8x128xf32>
    %49 = vector.extract_strided_slice %45 {offsets = [0, 128], sizes = [8, 128], strides = [1, 1]} : vector<8x512xf32> to vector<8x128xf32>
    %50 = vector.extract_strided_slice %45 {offsets = [0, 384], sizes = [8, 128], strides = [1, 1]} : vector<8x512xf32> to vector<8x128xf32>
    %51 = arith.mulf %49, %34 : vector<8x128xf32>
    %52 = arith.mulf %48, %47 : vector<8x128xf32>
    %53 = arith.addf %51, %52 : vector<8x128xf32>
    %54 = math.tanh %53 : vector<8x128xf32>
    %55 = arith.mulf %50, %54 : vector<8x128xf32>
    %c0_47 = arith.constant 0 : index
    %c0_48 = arith.constant 0 : index
    %c0_49 = arith.constant 0 : index
    %56 = vector.load %arg13[%c0_47, %c0_48, %c0_49] : memref<2x8x128xf32, #tpu.memory_space<vmem>>, vector<1x8x128xf32>
    %57 = vector.shape_cast %56 : vector<1x8x128xf32> to vector<8x128xf32>
    %58 = vector.shape_cast %53 : vector<8x128xf32> to vector<1x8x128xf32>
    tpu.vector_store %arg13[%c0_47, %c0_48, %c0_49], %58 {strides = array<i32>} : memref<2x8x128xf32, #tpu.memory_space<vmem>>, vector<1x8x128xf32>,
    %c0_50 = arith.constant 0 : index
    %c0_51 = arith.constant 0 : index
    %c0_52 = arith.constant 0 : index
    %59 = vector.load %arg12[%c0_50, %c0_51, %c0_52] : memref<2x8x128xf32, #tpu.memory_space<vmem>>, vector<1x8x128xf32>
    %60 = vector.shape_cast %59 : vector<1x8x128xf32> to vector<8x128xf32>
    %61 = vector.shape_cast %55 : vector<8x128xf32> to vector<1x8x128xf32>
    tpu.vector_store %arg12[%c0_50, %c0_51, %c0_52], %61 {strides = array<i32>} : memref<2x8x128xf32, #tpu.memory_space<vmem>>, vector<1x8x128xf32>,
    %c0_53 = arith.constant 0 : index
    %c0_54 = arith.constant 0 : index
    %c0_55 = arith.constant 0 : index
    %62 = vector.load %arg14[%c0_53, %c0_54, %c0_55] : memref<8x8x128xf32, #tpu.memory_space<vmem>>, vector<1x8x128xf32>
    %63 = vector.shape_cast %62 : vector<1x8x128xf32> to vector<8x128xf32>
    %64 = vector.shape_cast %55 : vector<8x128xf32> to vector<1x8x128xf32>
    tpu.vector_store %arg14[%c0_53, %c0_54, %c0_55], %64 {strides = array<i32>} : memref<8x8x128xf32, #tpu.memory_space<vmem>>, vector<1x8x128xf32>,
    %c0_56 = arith.constant 0 : index
    %c0_57 = arith.constant 0 : index
    %c0_58 = arith.constant 0 : index
    %65 = vector.load %arg12[%c0_56, %c0_57, %c0_58] : memref<2x8x128xf32, #tpu.memory_space<vmem>>, vector<1x8x128xf32>
    %66 = vector.shape_cast %65 : vector<1x8x128xf32> to vector<8x128xf32>
    %c0_59 = arith.constant 0 : index
    %c0_60 = arith.constant 0 : index
    %c0_61 = arith.constant 0 : index
    %67 = vector.load %arg13[%c0_59, %c0_60, %c0_61] : memref<2x8x128xf32, #tpu.memory_space<vmem>>, vector<1x8x128xf32>
    %68 = vector.shape_cast %67 : vector<1x8x128xf32> to vector<8x128xf32>
    %c1 = arith.constant 1 : index
    %c0_62 = arith.constant 0 : index
    %c0_63 = arith.constant 0 : index
    %69 = vector.load %arg15[%c1, %c0_62, %c0_63] : memref<8x8x512xf32, #tpu.memory_space<vmem>>, vector<1x8x512xf32>
    %70 = vector.shape_cast %69 : vector<1x8x512xf32> to vector<8x512xf32>
    %c0_64 = arith.constant 0 : index
    %c0_65 = arith.constant 0 : index
    %c0_66 = arith.constant 0 : index
    %71 = vector.load %arg5[%c0_64, %c0_65, %c0_66] : memref<2x128x512xf32, #tpu.memory_space<vmem>>, vector<1x128x512xf32>
    %72 = vector.shape_cast %71 : vector<1x128x512xf32> to vector<128x512xf32>
    %cst_67 = arith.constant dense<0.000000e+00> : vector<8x512xf32>
    %73 = tpu.matmul %66, %72, %cst_67 {dimension_numbers = #tpu.dot_dimension_numbers<[1], [0], [0], [1], [0, 0, 1, 1], [], []>} : vector<8x128xf32>, vector<128x512xf32>, vector<8x512xf32> -> vector<8x512xf32>
    %74 = arith.addf %70, %73 : vector<8x512xf32>
    %75 = arith.negf %74 : vector<8x512xf32>
    %76 = math.exp %75 : vector<8x512xf32>
    %cst_68 = arith.constant 1.000000e+00 : f32
    %77 = vector.broadcast %cst_68 : f32 to vector<8x512xf32>
    %78 = arith.addf %77, %76 : vector<8x512xf32>
    %79 = arith.divf %77, %78 : vector<8x512xf32>
    %80 = vector.extract_strided_slice %74 {offsets = [0, 256], sizes = [8, 128], strides = [1, 1]} : vector<8x512xf32> to vector<8x128xf32>
    %81 = math.tanh %80 : vector<8x128xf32>
    %82 = vector.extract_strided_slice %79 {offsets = [0, 0], sizes = [8, 128], strides = [1, 1]} : vector<8x512xf32> to vector<8x128xf32>
    %83 = vector.extract_strided_slice %79 {offsets = [0, 128], sizes = [8, 128], strides = [1, 1]} : vector<8x512xf32> to vector<8x128xf32>
    %84 = vector.extract_strided_slice %79 {offsets = [0, 384], sizes = [8, 128], strides = [1, 1]} : vector<8x512xf32> to vector<8x128xf32>
    %85 = arith.mulf %83, %68 : vector<8x128xf32>
    %86 = arith.mulf %82, %81 : vector<8x128xf32>
    %87 = arith.addf %85, %86 : vector<8x128xf32>
    %88 = math.tanh %87 : vector<8x128xf32>
    %89 = arith.mulf %84, %88 : vector<8x128xf32>
    %c0_69 = arith.constant 0 : index
    %c0_70 = arith.constant 0 : index
    %c0_71 = arith.constant 0 : index
    %90 = vector.load %arg13[%c0_69, %c0_70, %c0_71] : memref<2x8x128xf32, #tpu.memory_space<vmem>>, vector<1x8x128xf32>
    %91 = vector.shape_cast %90 : vector<1x8x128xf32> to vector<8x128xf32>
    %92 = vector.shape_cast %87 : vector<8x128xf32> to vector<1x8x128xf32>
    tpu.vector_store %arg13[%c0_69, %c0_70, %c0_71], %92 {strides = array<i32>} : memref<2x8x128xf32, #tpu.memory_space<vmem>>, vector<1x8x128xf32>,
    %c0_72 = arith.constant 0 : index
    %c0_73 = arith.constant 0 : index
    %c0_74 = arith.constant 0 : index
    %93 = vector.load %arg12[%c0_72, %c0_73, %c0_74] : memref<2x8x128xf32, #tpu.memory_space<vmem>>, vector<1x8x128xf32>
    %94 = vector.shape_cast %93 : vector<1x8x128xf32> to vector<8x128xf32>
    %95 = vector.shape_cast %89 : vector<8x128xf32> to vector<1x8x128xf32>
    tpu.vector_store %arg12[%c0_72, %c0_73, %c0_74], %95 {strides = array<i32>} : memref<2x8x128xf32, #tpu.memory_space<vmem>>, vector<1x8x128xf32>,
    %c1_75 = arith.constant 1 : index
    %c0_76 = arith.constant 0 : index
    %c0_77 = arith.constant 0 : index
    %96 = vector.load %arg14[%c1_75, %c0_76, %c0_77] : memref<8x8x128xf32, #tpu.memory_space<vmem>>, vector<1x8x128xf32>
    %97 = vector.shape_cast %96 : vector<1x8x128xf32> to vector<8x128xf32>
    %98 = vector.shape_cast %89 : vector<8x128xf32> to vector<1x8x128xf32>
    tpu.vector_store %arg14[%c1_75, %c0_76, %c0_77], %98 {strides = array<i32>} : memref<8x8x128xf32, #tpu.memory_space<vmem>>, vector<1x8x128xf32>,
    %c0_78 = arith.constant 0 : index
    %c0_79 = arith.constant 0 : index
    %c0_80 = arith.constant 0 : index
    %99 = vector.load %arg12[%c0_78, %c0_79, %c0_80] : memref<2x8x128xf32, #tpu.memory_space<vmem>>, vector<1x8x128xf32>
    %100 = vector.shape_cast %99 : vector<1x8x128xf32> to vector<8x128xf32>
    %c0_81 = arith.constant 0 : index
    %c0_82 = arith.constant 0 : index
    %c0_83 = arith.constant 0 : index
    %101 = vector.load %arg13[%c0_81, %c0_82, %c0_83] : memref<2x8x128xf32, #tpu.memory_space<vmem>>, vector<1x8x128xf32>
    %102 = vector.shape_cast %101 : vector<1x8x128xf32> to vector<8x128xf32>
    %c2 = arith.constant 2 : index
    %c0_84 = arith.constant 0 : index
    %c0_85 = arith.constant 0 : index
    %103 = vector.load %arg15[%c2, %c0_84, %c0_85] : memref<8x8x512xf32, #tpu.memory_space<vmem>>, vector<1x8x512xf32>
    %104 = vector.shape_cast %103 : vector<1x8x512xf32> to vector<8x512xf32>
    %c0_86 = arith.constant 0 : index
    %c0_87 = arith.constant 0 : index
    %c0_88 = arith.constant 0 : index
    %105 = vector.load %arg5[%c0_86, %c0_87, %c0_88] : memref<2x128x512xf32, #tpu.memory_space<vmem>>, vector<1x128x512xf32>
    %106 = vector.shape_cast %105 : vector<1x128x512xf32> to vector<128x512xf32>
    %cst_89 = arith.constant dense<0.000000e+00> : vector<8x512xf32>
    %107 = tpu.matmul %100, %106, %cst_89 {dimension_numbers = #tpu.dot_dimension_numbers<[1], [0], [0], [1], [0, 0, 1, 1], [], []>} : vector<8x128xf32>, vector<128x512xf32>, vector<8x512xf32> -> vector<8x512xf32>
    %108 = arith.addf %104, %107 : vector<8x512xf32>
    %109 = arith.negf %108 : vector<8x512xf32>
    %110 = math.exp %109 : vector<8x512xf32>
    %cst_90 = arith.constant 1.000000e+00 : f32
    %111 = vector.broadcast %cst_90 : f32 to vector<8x512xf32>
    %112 = arith.addf %111, %110 : vector<8x512xf32>
    %113 = arith.divf %111, %112 : vector<8x512xf32>
    %114 = vector.extract_strided_slice %108 {offsets = [0, 256], sizes = [8, 128], strides = [1, 1]} : vector<8x512xf32> to vector<8x128xf32>
    %115 = math.tanh %114 : vector<8x128xf32>
    %116 = vector.extract_strided_slice %113 {offsets = [0, 0], sizes = [8, 128], strides = [1, 1]} : vector<8x512xf32> to vector<8x128xf32>
    %117 = vector.extract_strided_slice %113 {offsets = [0, 128], sizes = [8, 128], strides = [1, 1]} : vector<8x512xf32> to vector<8x128xf32>
    %118 = vector.extract_strided_slice %113 {offsets = [0, 384], sizes = [8, 128], strides = [1, 1]} : vector<8x512xf32> to vector<8x128xf32>
    %119 = arith.mulf %117, %102 : vector<8x128xf32>
    %120 = arith.mulf %116, %115 : vector<8x128xf32>
    %121 = arith.addf %119, %120 : vector<8x128xf32>
    %122 = math.tanh %121 : vector<8x128xf32>
    %123 = arith.mulf %118, %122 : vector<8x128xf32>
    %c0_91 = arith.constant 0 : index
    %c0_92 = arith.constant 0 : index
    %c0_93 = arith.constant 0 : index
    %124 = vector.load %arg13[%c0_91, %c0_92, %c0_93] : memref<2x8x128xf32, #tpu.memory_space<vmem>>, vector<1x8x128xf32>
    %125 = vector.shape_cast %124 : vector<1x8x128xf32> to vector<8x128xf32>
    %126 = vector.shape_cast %121 : vector<8x128xf32> to vector<1x8x128xf32>
    tpu.vector_store %arg13[%c0_91, %c0_92, %c0_93], %126 {strides = array<i32>} : memref<2x8x128xf32, #tpu.memory_space<vmem>>, vector<1x8x128xf32>,
    %c0_94 = arith.constant 0 : index
    %c0_95 = arith.constant 0 : index
    %c0_96 = arith.constant 0 : index
    %127 = vector.load %arg12[%c0_94, %c0_95, %c0_96] : memref<2x8x128xf32, #tpu.memory_space<vmem>>, vector<1x8x128xf32>
    %128 = vector.shape_cast %127 : vector<1x8x128xf32> to vector<8x128xf32>
    %129 = vector.shape_cast %123 : vector<8x128xf32> to vector<1x8x128xf32>
    tpu.vector_store %arg12[%c0_94, %c0_95, %c0_96], %129 {strides = array<i32>} : memref<2x8x128xf32, #tpu.memory_space<vmem>>, vector<1x8x128xf32>,
    %c2_97 = arith.constant 2 : index
    %c0_98 = arith.constant 0 : index
    %c0_99 = arith.constant 0 : index
    %130 = vector.load %arg14[%c2_97, %c0_98, %c0_99] : memref<8x8x128xf32, #tpu.memory_space<vmem>>, vector<1x8x128xf32>
    %131 = vector.shape_cast %130 : vector<1x8x128xf32> to vector<8x128xf32>
    %132 = vector.shape_cast %123 : vector<8x128xf32> to vector<1x8x128xf32>
    tpu.vector_store %arg14[%c2_97, %c0_98, %c0_99], %132 {strides = array<i32>} : memref<8x8x128xf32, #tpu.memory_space<vmem>>, vector<1x8x128xf32>,
    %c0_100 = arith.constant 0 : index
    %c0_101 = arith.constant 0 : index
    %c0_102 = arith.constant 0 : index
    %133 = vector.load %arg12[%c0_100, %c0_101, %c0_102] : memref<2x8x128xf32, #tpu.memory_space<vmem>>, vector<1x8x128xf32>
    %134 = vector.shape_cast %133 : vector<1x8x128xf32> to vector<8x128xf32>
    %c0_103 = arith.constant 0 : index
    %c0_104 = arith.constant 0 : index
    %c0_105 = arith.constant 0 : index
    %135 = vector.load %arg13[%c0_103, %c0_104, %c0_105] : memref<2x8x128xf32, #tpu.memory_space<vmem>>, vector<1x8x128xf32>
    %136 = vector.shape_cast %135 : vector<1x8x128xf32> to vector<8x128xf32>
    %c3 = arith.constant 3 : index
    %c0_106 = arith.constant 0 : index
    %c0_107 = arith.constant 0 : index
    %137 = vector.load %arg15[%c3, %c0_106, %c0_107] : memref<8x8x512xf32, #tpu.memory_space<vmem>>, vector<1x8x512xf32>
    %138 = vector.shape_cast %137 : vector<1x8x512xf32> to vector<8x512xf32>
    %c0_108 = arith.constant 0 : index
    %c0_109 = arith.constant 0 : index
    %c0_110 = arith.constant 0 : index
    %139 = vector.load %arg5[%c0_108, %c0_109, %c0_110] : memref<2x128x512xf32, #tpu.memory_space<vmem>>, vector<1x128x512xf32>
    %140 = vector.shape_cast %139 : vector<1x128x512xf32> to vector<128x512xf32>
    %cst_111 = arith.constant dense<0.000000e+00> : vector<8x512xf32>
    %141 = tpu.matmul %134, %140, %cst_111 {dimension_numbers = #tpu.dot_dimension_numbers<[1], [0], [0], [1], [0, 0, 1, 1], [], []>} : vector<8x128xf32>, vector<128x512xf32>, vector<8x512xf32> -> vector<8x512xf32>
    %142 = arith.addf %138, %141 : vector<8x512xf32>
    %143 = arith.negf %142 : vector<8x512xf32>
    %144 = math.exp %143 : vector<8x512xf32>
    %cst_112 = arith.constant 1.000000e+00 : f32
    %145 = vector.broadcast %cst_112 : f32 to vector<8x512xf32>
    %146 = arith.addf %145, %144 : vector<8x512xf32>
    %147 = arith.divf %145, %146 : vector<8x512xf32>
    %148 = vector.extract_strided_slice %142 {offsets = [0, 256], sizes = [8, 128], strides = [1, 1]} : vector<8x512xf32> to vector<8x128xf32>
    %149 = math.tanh %148 : vector<8x128xf32>
    %150 = vector.extract_strided_slice %147 {offsets = [0, 0], sizes = [8, 128], strides = [1, 1]} : vector<8x512xf32> to vector<8x128xf32>
    %151 = vector.extract_strided_slice %147 {offsets = [0, 128], sizes = [8, 128], strides = [1, 1]} : vector<8x512xf32> to vector<8x128xf32>
    %152 = vector.extract_strided_slice %147 {offsets = [0, 384], sizes = [8, 128], strides = [1, 1]} : vector<8x512xf32> to vector<8x128xf32>
    %153 = arith.mulf %151, %136 : vector<8x128xf32>
    %154 = arith.mulf %150, %149 : vector<8x128xf32>
    %155 = arith.addf %153, %154 : vector<8x128xf32>
    %156 = math.tanh %155 : vector<8x128xf32>
    %157 = arith.mulf %152, %156 : vector<8x128xf32>
    %c0_113 = arith.constant 0 : index
    %c0_114 = arith.constant 0 : index
    %c0_115 = arith.constant 0 : index
    %158 = vector.load %arg13[%c0_113, %c0_114, %c0_115] : memref<2x8x128xf32, #tpu.memory_space<vmem>>, vector<1x8x128xf32>
    %159 = vector.shape_cast %158 : vector<1x8x128xf32> to vector<8x128xf32>
    %160 = vector.shape_cast %155 : vector<8x128xf32> to vector<1x8x128xf32>
    tpu.vector_store %arg13[%c0_113, %c0_114, %c0_115], %160 {strides = array<i32>} : memref<2x8x128xf32, #tpu.memory_space<vmem>>, vector<1x8x128xf32>,
    %c0_116 = arith.constant 0 : index
    %c0_117 = arith.constant 0 : index
    %c0_118 = arith.constant 0 : index
    %161 = vector.load %arg12[%c0_116, %c0_117, %c0_118] : memref<2x8x128xf32, #tpu.memory_space<vmem>>, vector<1x8x128xf32>
    %162 = vector.shape_cast %161 : vector<1x8x128xf32> to vector<8x128xf32>
    %163 = vector.shape_cast %157 : vector<8x128xf32> to vector<1x8x128xf32>
    tpu.vector_store %arg12[%c0_116, %c0_117, %c0_118], %163 {strides = array<i32>} : memref<2x8x128xf32, #tpu.memory_space<vmem>>, vector<1x8x128xf32>,
    %c3_119 = arith.constant 3 : index
    %c0_120 = arith.constant 0 : index
    %c0_121 = arith.constant 0 : index
    %164 = vector.load %arg14[%c3_119, %c0_120, %c0_121] : memref<8x8x128xf32, #tpu.memory_space<vmem>>, vector<1x8x128xf32>
    %165 = vector.shape_cast %164 : vector<1x8x128xf32> to vector<8x128xf32>
    %166 = vector.shape_cast %157 : vector<8x128xf32> to vector<1x8x128xf32>
    tpu.vector_store %arg14[%c3_119, %c0_120, %c0_121], %166 {strides = array<i32>} : memref<8x8x128xf32, #tpu.memory_space<vmem>>, vector<1x8x128xf32>,
    %c0_122 = arith.constant 0 : index
    %c0_123 = arith.constant 0 : index
    %c0_124 = arith.constant 0 : index
    %167 = vector.load %arg12[%c0_122, %c0_123, %c0_124] : memref<2x8x128xf32, #tpu.memory_space<vmem>>, vector<1x8x128xf32>
    %168 = vector.shape_cast %167 : vector<1x8x128xf32> to vector<8x128xf32>
    %c0_125 = arith.constant 0 : index
    %c0_126 = arith.constant 0 : index
    %c0_127 = arith.constant 0 : index
    %169 = vector.load %arg13[%c0_125, %c0_126, %c0_127] : memref<2x8x128xf32, #tpu.memory_space<vmem>>, vector<1x8x128xf32>
    %170 = vector.shape_cast %169 : vector<1x8x128xf32> to vector<8x128xf32>
    %c4 = arith.constant 4 : index
    %c0_128 = arith.constant 0 : index
    %c0_129 = arith.constant 0 : index
    %171 = vector.load %arg15[%c4, %c0_128, %c0_129] : memref<8x8x512xf32, #tpu.memory_space<vmem>>, vector<1x8x512xf32>
    %172 = vector.shape_cast %171 : vector<1x8x512xf32> to vector<8x512xf32>
    %c0_130 = arith.constant 0 : index
    %c0_131 = arith.constant 0 : index
    %c0_132 = arith.constant 0 : index
    %173 = vector.load %arg5[%c0_130, %c0_131, %c0_132] : memref<2x128x512xf32, #tpu.memory_space<vmem>>, vector<1x128x512xf32>
    %174 = vector.shape_cast %173 : vector<1x128x512xf32> to vector<128x512xf32>
    %cst_133 = arith.constant dense<0.000000e+00> : vector<8x512xf32>
    %175 = tpu.matmul %168, %174, %cst_133 {dimension_numbers = #tpu.dot_dimension_numbers<[1], [0], [0], [1], [0, 0, 1, 1], [], []>} : vector<8x128xf32>, vector<128x512xf32>, vector<8x512xf32> -> vector<8x512xf32>
    %176 = arith.addf %172, %175 : vector<8x512xf32>
    %177 = arith.negf %176 : vector<8x512xf32>
    %178 = math.exp %177 : vector<8x512xf32>
    %cst_134 = arith.constant 1.000000e+00 : f32
    %179 = vector.broadcast %cst_134 : f32 to vector<8x512xf32>
    %180 = arith.addf %179, %178 : vector<8x512xf32>
    %181 = arith.divf %179, %180 : vector<8x512xf32>
    %182 = vector.extract_strided_slice %176 {offsets = [0, 256], sizes = [8, 128], strides = [1, 1]} : vector<8x512xf32> to vector<8x128xf32>
    %183 = math.tanh %182 : vector<8x128xf32>
    %184 = vector.extract_strided_slice %181 {offsets = [0, 0], sizes = [8, 128], strides = [1, 1]} : vector<8x512xf32> to vector<8x128xf32>
    %185 = vector.extract_strided_slice %181 {offsets = [0, 128], sizes = [8, 128], strides = [1, 1]} : vector<8x512xf32> to vector<8x128xf32>
    %186 = vector.extract_strided_slice %181 {offsets = [0, 384], sizes = [8, 128], strides = [1, 1]} : vector<8x512xf32> to vector<8x128xf32>
    %187 = arith.mulf %185, %170 : vector<8x128xf32>
    %188 = arith.mulf %184, %183 : vector<8x128xf32>
    %189 = arith.addf %187, %188 : vector<8x128xf32>
    %190 = math.tanh %189 : vector<8x128xf32>
    %191 = arith.mulf %186, %190 : vector<8x128xf32>
    %c0_135 = arith.constant 0 : index
    %c0_136 = arith.constant 0 : index
    %c0_137 = arith.constant 0 : index
    %192 = vector.load %arg13[%c0_135, %c0_136, %c0_137] : memref<2x8x128xf32, #tpu.memory_space<vmem>>, vector<1x8x128xf32>
    %193 = vector.shape_cast %192 : vector<1x8x128xf32> to vector<8x128xf32>
    %194 = vector.shape_cast %189 : vector<8x128xf32> to vector<1x8x128xf32>
    tpu.vector_store %arg13[%c0_135, %c0_136, %c0_137], %194 {strides = array<i32>} : memref<2x8x128xf32, #tpu.memory_space<vmem>>, vector<1x8x128xf32>,
    %c0_138 = arith.constant 0 : index
    %c0_139 = arith.constant 0 : index
    %c0_140 = arith.constant 0 : index
    %195 = vector.load %arg12[%c0_138, %c0_139, %c0_140] : memref<2x8x128xf32, #tpu.memory_space<vmem>>, vector<1x8x128xf32>
    %196 = vector.shape_cast %195 : vector<1x8x128xf32> to vector<8x128xf32>
    %197 = vector.shape_cast %191 : vector<8x128xf32> to vector<1x8x128xf32>
    tpu.vector_store %arg12[%c0_138, %c0_139, %c0_140], %197 {strides = array<i32>} : memref<2x8x128xf32, #tpu.memory_space<vmem>>, vector<1x8x128xf32>,
    %c4_141 = arith.constant 4 : index
    %c0_142 = arith.constant 0 : index
    %c0_143 = arith.constant 0 : index
    %198 = vector.load %arg14[%c4_141, %c0_142, %c0_143] : memref<8x8x128xf32, #tpu.memory_space<vmem>>, vector<1x8x128xf32>
    %199 = vector.shape_cast %198 : vector<1x8x128xf32> to vector<8x128xf32>
    %200 = vector.shape_cast %191 : vector<8x128xf32> to vector<1x8x128xf32>
    tpu.vector_store %arg14[%c4_141, %c0_142, %c0_143], %200 {strides = array<i32>} : memref<8x8x128xf32, #tpu.memory_space<vmem>>, vector<1x8x128xf32>,
    %c0_144 = arith.constant 0 : index
    %c0_145 = arith.constant 0 : index
    %c0_146 = arith.constant 0 : index
    %201 = vector.load %arg12[%c0_144, %c0_145, %c0_146] : memref<2x8x128xf32, #tpu.memory_space<vmem>>, vector<1x8x128xf32>
    %202 = vector.shape_cast %201 : vector<1x8x128xf32> to vector<8x128xf32>
    %c0_147 = arith.constant 0 : index
    %c0_148 = arith.constant 0 : index
    %c0_149 = arith.constant 0 : index
    %203 = vector.load %arg13[%c0_147, %c0_148, %c0_149] : memref<2x8x128xf32, #tpu.memory_space<vmem>>, vector<1x8x128xf32>
    %204 = vector.shape_cast %203 : vector<1x8x128xf32> to vector<8x128xf32>
    %c5 = arith.constant 5 : index
    %c0_150 = arith.constant 0 : index
    %c0_151 = arith.constant 0 : index
    %205 = vector.load %arg15[%c5, %c0_150, %c0_151] : memref<8x8x512xf32, #tpu.memory_space<vmem>>, vector<1x8x512xf32>
    %206 = vector.shape_cast %205 : vector<1x8x512xf32> to vector<8x512xf32>
    %c0_152 = arith.constant 0 : index
    %c0_153 = arith.constant 0 : index
    %c0_154 = arith.constant 0 : index
    %207 = vector.load %arg5[%c0_152, %c0_153, %c0_154] : memref<2x128x512xf32, #tpu.memory_space<vmem>>, vector<1x128x512xf32>
    %208 = vector.shape_cast %207 : vector<1x128x512xf32> to vector<128x512xf32>
    %cst_155 = arith.constant dense<0.000000e+00> : vector<8x512xf32>
    %209 = tpu.matmul %202, %208, %cst_155 {dimension_numbers = #tpu.dot_dimension_numbers<[1], [0], [0], [1], [0, 0, 1, 1], [], []>} : vector<8x128xf32>, vector<128x512xf32>, vector<8x512xf32> -> vector<8x512xf32>
    %210 = arith.addf %206, %209 : vector<8x512xf32>
    %211 = arith.negf %210 : vector<8x512xf32>
    %212 = math.exp %211 : vector<8x512xf32>
    %cst_156 = arith.constant 1.000000e+00 : f32
    %213 = vector.broadcast %cst_156 : f32 to vector<8x512xf32>
    %214 = arith.addf %213, %212 : vector<8x512xf32>
    %215 = arith.divf %213, %214 : vector<8x512xf32>
    %216 = vector.extract_strided_slice %210 {offsets = [0, 256], sizes = [8, 128], strides = [1, 1]} : vector<8x512xf32> to vector<8x128xf32>
    %217 = math.tanh %216 : vector<8x128xf32>
    %218 = vector.extract_strided_slice %215 {offsets = [0, 0], sizes = [8, 128], strides = [1, 1]} : vector<8x512xf32> to vector<8x128xf32>
    %219 = vector.extract_strided_slice %215 {offsets = [0, 128], sizes = [8, 128], strides = [1, 1]} : vector<8x512xf32> to vector<8x128xf32>
    %220 = vector.extract_strided_slice %215 {offsets = [0, 384], sizes = [8, 128], strides = [1, 1]} : vector<8x512xf32> to vector<8x128xf32>
    %221 = arith.mulf %219, %204 : vector<8x128xf32>
    %222 = arith.mulf %218, %217 : vector<8x128xf32>
    %223 = arith.addf %221, %222 : vector<8x128xf32>
    %224 = math.tanh %223 : vector<8x128xf32>
    %225 = arith.mulf %220, %224 : vector<8x128xf32>
    %c0_157 = arith.constant 0 : index
    %c0_158 = arith.constant 0 : index
    %c0_159 = arith.constant 0 : index
    %226 = vector.load %arg13[%c0_157, %c0_158, %c0_159] : memref<2x8x128xf32, #tpu.memory_space<vmem>>, vector<1x8x128xf32>
    %227 = vector.shape_cast %226 : vector<1x8x128xf32> to vector<8x128xf32>
    %228 = vector.shape_cast %223 : vector<8x128xf32> to vector<1x8x128xf32>
    tpu.vector_store %arg13[%c0_157, %c0_158, %c0_159], %228 {strides = array<i32>} : memref<2x8x128xf32, #tpu.memory_space<vmem>>, vector<1x8x128xf32>,
    %c0_160 = arith.constant 0 : index
    %c0_161 = arith.constant 0 : index
    %c0_162 = arith.constant 0 : index
    %229 = vector.load %arg12[%c0_160, %c0_161, %c0_162] : memref<2x8x128xf32, #tpu.memory_space<vmem>>, vector<1x8x128xf32>
    %230 = vector.shape_cast %229 : vector<1x8x128xf32> to vector<8x128xf32>
    %231 = vector.shape_cast %225 : vector<8x128xf32> to vector<1x8x128xf32>
    tpu.vector_store %arg12[%c0_160, %c0_161, %c0_162], %231 {strides = array<i32>} : memref<2x8x128xf32, #tpu.memory_space<vmem>>, vector<1x8x128xf32>,
    %c5_163 = arith.constant 5 : index
    %c0_164 = arith.constant 0 : index
    %c0_165 = arith.constant 0 : index
    %232 = vector.load %arg14[%c5_163, %c0_164, %c0_165] : memref<8x8x128xf32, #tpu.memory_space<vmem>>, vector<1x8x128xf32>
    %233 = vector.shape_cast %232 : vector<1x8x128xf32> to vector<8x128xf32>
    %234 = vector.shape_cast %225 : vector<8x128xf32> to vector<1x8x128xf32>
    tpu.vector_store %arg14[%c5_163, %c0_164, %c0_165], %234 {strides = array<i32>} : memref<8x8x128xf32, #tpu.memory_space<vmem>>, vector<1x8x128xf32>,
    %c0_166 = arith.constant 0 : index
    %c0_167 = arith.constant 0 : index
    %c0_168 = arith.constant 0 : index
    %235 = vector.load %arg12[%c0_166, %c0_167, %c0_168] : memref<2x8x128xf32, #tpu.memory_space<vmem>>, vector<1x8x128xf32>
    %236 = vector.shape_cast %235 : vector<1x8x128xf32> to vector<8x128xf32>
    %c0_169 = arith.constant 0 : index
    %c0_170 = arith.constant 0 : index
    %c0_171 = arith.constant 0 : index
    %237 = vector.load %arg13[%c0_169, %c0_170, %c0_171] : memref<2x8x128xf32, #tpu.memory_space<vmem>>, vector<1x8x128xf32>
    %238 = vector.shape_cast %237 : vector<1x8x128xf32> to vector<8x128xf32>
    %c6 = arith.constant 6 : index
    %c0_172 = arith.constant 0 : index
    %c0_173 = arith.constant 0 : index
    %239 = vector.load %arg15[%c6, %c0_172, %c0_173] : memref<8x8x512xf32, #tpu.memory_space<vmem>>, vector<1x8x512xf32>
    %240 = vector.shape_cast %239 : vector<1x8x512xf32> to vector<8x512xf32>
    %c0_174 = arith.constant 0 : index
    %c0_175 = arith.constant 0 : index
    %c0_176 = arith.constant 0 : index
    %241 = vector.load %arg5[%c0_174, %c0_175, %c0_176] : memref<2x128x512xf32, #tpu.memory_space<vmem>>, vector<1x128x512xf32>
    %242 = vector.shape_cast %241 : vector<1x128x512xf32> to vector<128x512xf32>
    %cst_177 = arith.constant dense<0.000000e+00> : vector<8x512xf32>
    %243 = tpu.matmul %236, %242, %cst_177 {dimension_numbers = #tpu.dot_dimension_numbers<[1], [0], [0], [1], [0, 0, 1, 1], [], []>} : vector<8x128xf32>, vector<128x512xf32>, vector<8x512xf32> -> vector<8x512xf32>
    %244 = arith.addf %240, %243 : vector<8x512xf32>
    %245 = arith.negf %244 : vector<8x512xf32>
    %246 = math.exp %245 : vector<8x512xf32>
    %cst_178 = arith.constant 1.000000e+00 : f32
    %247 = vector.broadcast %cst_178 : f32 to vector<8x512xf32>
    %248 = arith.addf %247, %246 : vector<8x512xf32>
    %249 = arith.divf %247, %248 : vector<8x512xf32>
    %250 = vector.extract_strided_slice %244 {offsets = [0, 256], sizes = [8, 128], strides = [1, 1]} : vector<8x512xf32> to vector<8x128xf32>
    %251 = math.tanh %250 : vector<8x128xf32>
    %252 = vector.extract_strided_slice %249 {offsets = [0, 0], sizes = [8, 128], strides = [1, 1]} : vector<8x512xf32> to vector<8x128xf32>
    %253 = vector.extract_strided_slice %249 {offsets = [0, 128], sizes = [8, 128], strides = [1, 1]} : vector<8x512xf32> to vector<8x128xf32>
    %254 = vector.extract_strided_slice %249 {offsets = [0, 384], sizes = [8, 128], strides = [1, 1]} : vector<8x512xf32> to vector<8x128xf32>
    %255 = arith.mulf %253, %238 : vector<8x128xf32>
    %256 = arith.mulf %252, %251 : vector<8x128xf32>
    %257 = arith.addf %255, %256 : vector<8x128xf32>
    %258 = math.tanh %257 : vector<8x128xf32>
    %259 = arith.mulf %254, %258 : vector<8x128xf32>
    %c0_179 = arith.constant 0 : index
    %c0_180 = arith.constant 0 : index
    %c0_181 = arith.constant 0 : index
    %260 = vector.load %arg13[%c0_179, %c0_180, %c0_181] : memref<2x8x128xf32, #tpu.memory_space<vmem>>, vector<1x8x128xf32>
    %261 = vector.shape_cast %260 : vector<1x8x128xf32> to vector<8x128xf32>
    %262 = vector.shape_cast %257 : vector<8x128xf32> to vector<1x8x128xf32>
    tpu.vector_store %arg13[%c0_179, %c0_180, %c0_181], %262 {strides = array<i32>} : memref<2x8x128xf32, #tpu.memory_space<vmem>>, vector<1x8x128xf32>,
    %c0_182 = arith.constant 0 : index
    %c0_183 = arith.constant 0 : index
    %c0_184 = arith.constant 0 : index
    %263 = vector.load %arg12[%c0_182, %c0_183, %c0_184] : memref<2x8x128xf32, #tpu.memory_space<vmem>>, vector<1x8x128xf32>
    %264 = vector.shape_cast %263 : vector<1x8x128xf32> to vector<8x128xf32>
    %265 = vector.shape_cast %259 : vector<8x128xf32> to vector<1x8x128xf32>
    tpu.vector_store %arg12[%c0_182, %c0_183, %c0_184], %265 {strides = array<i32>} : memref<2x8x128xf32, #tpu.memory_space<vmem>>, vector<1x8x128xf32>,
    %c6_185 = arith.constant 6 : index
    %c0_186 = arith.constant 0 : index
    %c0_187 = arith.constant 0 : index
    %266 = vector.load %arg14[%c6_185, %c0_186, %c0_187] : memref<8x8x128xf32, #tpu.memory_space<vmem>>, vector<1x8x128xf32>
    %267 = vector.shape_cast %266 : vector<1x8x128xf32> to vector<8x128xf32>
    %268 = vector.shape_cast %259 : vector<8x128xf32> to vector<1x8x128xf32>
    tpu.vector_store %arg14[%c6_185, %c0_186, %c0_187], %268 {strides = array<i32>} : memref<8x8x128xf32, #tpu.memory_space<vmem>>, vector<1x8x128xf32>,
    %c0_188 = arith.constant 0 : index
    %c0_189 = arith.constant 0 : index
    %c0_190 = arith.constant 0 : index
    %269 = vector.load %arg12[%c0_188, %c0_189, %c0_190] : memref<2x8x128xf32, #tpu.memory_space<vmem>>, vector<1x8x128xf32>
    %270 = vector.shape_cast %269 : vector<1x8x128xf32> to vector<8x128xf32>
    %c0_191 = arith.constant 0 : index
    %c0_192 = arith.constant 0 : index
    %c0_193 = arith.constant 0 : index
    %271 = vector.load %arg13[%c0_191, %c0_192, %c0_193] : memref<2x8x128xf32, #tpu.memory_space<vmem>>, vector<1x8x128xf32>
    %272 = vector.shape_cast %271 : vector<1x8x128xf32> to vector<8x128xf32>
    %c7 = arith.constant 7 : index
    %c0_194 = arith.constant 0 : index
    %c0_195 = arith.constant 0 : index
    %273 = vector.load %arg15[%c7, %c0_194, %c0_195] : memref<8x8x512xf32, #tpu.memory_space<vmem>>, vector<1x8x512xf32>
    %274 = vector.shape_cast %273 : vector<1x8x512xf32> to vector<8x512xf32>
    %c0_196 = arith.constant 0 : index
    %c0_197 = arith.constant 0 : index
    %c0_198 = arith.constant 0 : index
    %275 = vector.load %arg5[%c0_196, %c0_197, %c0_198] : memref<2x128x512xf32, #tpu.memory_space<vmem>>, vector<1x128x512xf32>
    %276 = vector.shape_cast %275 : vector<1x128x512xf32> to vector<128x512xf32>
    %cst_199 = arith.constant dense<0.000000e+00> : vector<8x512xf32>
    %277 = tpu.matmul %270, %276, %cst_199 {dimension_numbers = #tpu.dot_dimension_numbers<[1], [0], [0], [1], [0, 0, 1, 1], [], []>} : vector<8x128xf32>, vector<128x512xf32>, vector<8x512xf32> -> vector<8x512xf32>
    %278 = arith.addf %274, %277 : vector<8x512xf32>
    %279 = arith.negf %278 : vector<8x512xf32>
    %280 = math.exp %279 : vector<8x512xf32>
    %cst_200 = arith.constant 1.000000e+00 : f32
    %281 = vector.broadcast %cst_200 : f32 to vector<8x512xf32>
    %282 = arith.addf %281, %280 : vector<8x512xf32>
    %283 = arith.divf %281, %282 : vector<8x512xf32>
    %284 = vector.extract_strided_slice %278 {offsets = [0, 256], sizes = [8, 128], strides = [1, 1]} : vector<8x512xf32> to vector<8x128xf32>
    %285 = math.tanh %284 : vector<8x128xf32>
    %286 = vector.extract_strided_slice %283 {offsets = [0, 0], sizes = [8, 128], strides = [1, 1]} : vector<8x512xf32> to vector<8x128xf32>
    %287 = vector.extract_strided_slice %283 {offsets = [0, 128], sizes = [8, 128], strides = [1, 1]} : vector<8x512xf32> to vector<8x128xf32>
    %288 = vector.extract_strided_slice %283 {offsets = [0, 384], sizes = [8, 128], strides = [1, 1]} : vector<8x512xf32> to vector<8x128xf32>
    %289 = arith.mulf %287, %272 : vector<8x128xf32>
    %290 = arith.mulf %286, %285 : vector<8x128xf32>
    %291 = arith.addf %289, %290 : vector<8x128xf32>
    %292 = math.tanh %291 : vector<8x128xf32>
    %293 = arith.mulf %288, %292 : vector<8x128xf32>
    %c0_201 = arith.constant 0 : index
    %c0_202 = arith.constant 0 : index
    %c0_203 = arith.constant 0 : index
    %294 = vector.load %arg13[%c0_201, %c0_202, %c0_203] : memref<2x8x128xf32, #tpu.memory_space<vmem>>, vector<1x8x128xf32>
    %295 = vector.shape_cast %294 : vector<1x8x128xf32> to vector<8x128xf32>
    %296 = vector.shape_cast %291 : vector<8x128xf32> to vector<1x8x128xf32>
    tpu.vector_store %arg13[%c0_201, %c0_202, %c0_203], %296 {strides = array<i32>} : memref<2x8x128xf32, #tpu.memory_space<vmem>>, vector<1x8x128xf32>,
    %c0_204 = arith.constant 0 : index
    %c0_205 = arith.constant 0 : index
    %c0_206 = arith.constant 0 : index
    %297 = vector.load %arg12[%c0_204, %c0_205, %c0_206] : memref<2x8x128xf32, #tpu.memory_space<vmem>>, vector<1x8x128xf32>
    %298 = vector.shape_cast %297 : vector<1x8x128xf32> to vector<8x128xf32>
    %299 = vector.shape_cast %293 : vector<8x128xf32> to vector<1x8x128xf32>
    tpu.vector_store %arg12[%c0_204, %c0_205, %c0_206], %299 {strides = array<i32>} : memref<2x8x128xf32, #tpu.memory_space<vmem>>, vector<1x8x128xf32>,
    %c7_207 = arith.constant 7 : index
    %c0_208 = arith.constant 0 : index
    %c0_209 = arith.constant 0 : index
    %300 = vector.load %arg14[%c7_207, %c0_208, %c0_209] : memref<8x8x128xf32, #tpu.memory_space<vmem>>, vector<1x8x128xf32>
    %301 = vector.shape_cast %300 : vector<1x8x128xf32> to vector<8x128xf32>
    %302 = vector.shape_cast %293 : vector<8x128xf32> to vector<1x8x128xf32>
    tpu.vector_store %arg14[%c7_207, %c0_208, %c0_209], %302 {strides = array<i32>} : memref<8x8x128xf32, #tpu.memory_space<vmem>>, vector<1x8x128xf32>,
    %c0_210 = arith.constant 0 : index
    %c0_211 = arith.constant 0 : index
    %c0_212 = arith.constant 0 : index
    %303 = vector.load %arg14[%c0_210, %c0_211, %c0_212] : memref<8x8x128xf32, #tpu.memory_space<vmem>>, vector<8x8x128xf32>
    %304 = vector.shape_cast %303 : vector<8x8x128xf32> to vector<64x128xf32>
    %c1_213 = arith.constant 1 : index
    %c0_214 = arith.constant 0 : index
    %c0_215 = arith.constant 0 : index
    %305 = vector.load %arg4[%c1_213, %c0_214, %c0_215] : memref<2x128x512xf32, #tpu.memory_space<vmem>>, vector<1x128x512xf32>
    %306 = vector.shape_cast %305 : vector<1x128x512xf32> to vector<128x512xf32>
    %cst_216 = arith.constant dense<0.000000e+00> : vector<64x512xf32>
    %307 = tpu.matmul %304, %306, %cst_216 {dimension_numbers = #tpu.dot_dimension_numbers<[1], [0], [0], [1], [0, 0, 1, 1], [], []>} : vector<64x128xf32>, vector<128x512xf32>, vector<64x512xf32> -> vector<64x512xf32>
    %c1_217 = arith.constant 1 : index
    %c0_218 = arith.constant 0 : index
    %308 = vector.load %arg6[%c1_217, %c0_218] : memref<2x512xf32, #tpu.memory_space<vmem>>, vector<1x512xf32>
    %309 = vector.shape_cast %308 : vector<1x512xf32> to vector<512xf32>
    %310 = vector.shape_cast %309 : vector<512xf32> to vector<1x512xf32>
    %311 = vector.broadcast %310 : vector<1x512xf32> to vector<64x512xf32>
    %312 = arith.addf %307, %311 : vector<64x512xf32>
    %313 = vector.shape_cast %312 : vector<64x512xf32> to vector<8x8x512xf32>
    %c0_219 = arith.constant 0 : index
    %c0_220 = arith.constant 0 : index
    %c0_221 = arith.constant 0 : index
    %314 = vector.load %arg15[%c0_219, %c0_220, %c0_221] : memref<8x8x512xf32, #tpu.memory_space<vmem>>, vector<8x8x512xf32>
    tpu.vector_store %arg15[%c0_219, %c0_220, %c0_221], %313 {strides = array<i32>} : memref<8x8x512xf32, #tpu.memory_space<vmem>>, vector<8x8x512xf32>,
    %c1_222 = arith.constant 1 : index
    %c0_223 = arith.constant 0 : index
    %c0_224 = arith.constant 0 : index
    %315 = vector.load %arg9[%c1_222, %c0_223, %c0_224] : memref<2x8x128xf32, #tpu.memory_space<vmem>>, vector<1x8x128xf32>
    %316 = vector.shape_cast %315 : vector<1x8x128xf32> to vector<8x128xf32>
    %c1_225 = arith.constant 1 : index
    %c0_226 = arith.constant 0 : index
    %c0_227 = arith.constant 0 : index
    %317 = vector.load %arg12[%c1_225, %c0_226, %c0_227] : memref<2x8x128xf32, #tpu.memory_space<vmem>>, vector<1x8x128xf32>
    %318 = vector.shape_cast %317 : vector<1x8x128xf32> to vector<8x128xf32>
    %319 = vector.shape_cast %316 : vector<8x128xf32> to vector<1x8x128xf32>
    tpu.vector_store %arg12[%c1_225, %c0_226, %c0_227], %319 {strides = array<i32>} : memref<2x8x128xf32, #tpu.memory_space<vmem>>, vector<1x8x128xf32>,
    %c1_228 = arith.constant 1 : index
    %c0_229 = arith.constant 0 : index
    %c0_230 = arith.constant 0 : index
    %320 = vector.load %arg10[%c1_228, %c0_229, %c0_230] : memref<2x8x128xf32, #tpu.memory_space<vmem>>, vector<1x8x128xf32>
    %321 = vector.shape_cast %320 : vector<1x8x128xf32> to vector<8x128xf32>
    %c1_231 = arith.constant 1 : index
    %c0_232 = arith.constant 0 : index
    %c0_233 = arith.constant 0 : index
    %322 = vector.load %arg13[%c1_231, %c0_232, %c0_233] : memref<2x8x128xf32, #tpu.memory_space<vmem>>, vector<1x8x128xf32>
    %323 = vector.shape_cast %322 : vector<1x8x128xf32> to vector<8x128xf32>
    %324 = vector.shape_cast %321 : vector<8x128xf32> to vector<1x8x128xf32>
    tpu.vector_store %arg13[%c1_231, %c0_232, %c0_233], %324 {strides = array<i32>} : memref<2x8x128xf32, #tpu.memory_space<vmem>>, vector<1x8x128xf32>,
    %c1_234 = arith.constant 1 : index
    %c0_235 = arith.constant 0 : index
    %c0_236 = arith.constant 0 : index
    %325 = vector.load %arg12[%c1_234, %c0_235, %c0_236] : memref<2x8x128xf32, #tpu.memory_space<vmem>>, vector<1x8x128xf32>
    %326 = vector.shape_cast %325 : vector<1x8x128xf32> to vector<8x128xf32>
    %c1_237 = arith.constant 1 : index
    %c0_238 = arith.constant 0 : index
    %c0_239 = arith.constant 0 : index
    %327 = vector.load %arg13[%c1_237, %c0_238, %c0_239] : memref<2x8x128xf32, #tpu.memory_space<vmem>>, vector<1x8x128xf32>
    %328 = vector.shape_cast %327 : vector<1x8x128xf32> to vector<8x128xf32>
    %c0_240 = arith.constant 0 : index
    %c0_241 = arith.constant 0 : index
    %c0_242 = arith.constant 0 : index
    %329 = vector.load %arg15[%c0_240, %c0_241, %c0_242] : memref<8x8x512xf32, #tpu.memory_space<vmem>>, vector<1x8x512xf32>
    %330 = vector.shape_cast %329 : vector<1x8x512xf32> to vector<8x512xf32>
    %c1_243 = arith.constant 1 : index
    %c0_244 = arith.constant 0 : index
    %c0_245 = arith.constant 0 : index
    %331 = vector.load %arg5[%c1_243, %c0_244, %c0_245] : memref<2x128x512xf32, #tpu.memory_space<vmem>>, vector<1x128x512xf32>
    %332 = vector.shape_cast %331 : vector<1x128x512xf32> to vector<128x512xf32>
    %cst_246 = arith.constant dense<0.000000e+00> : vector<8x512xf32>
    %333 = tpu.matmul %326, %332, %cst_246 {dimension_numbers = #tpu.dot_dimension_numbers<[1], [0], [0], [1], [0, 0, 1, 1], [], []>} : vector<8x128xf32>, vector<128x512xf32>, vector<8x512xf32> -> vector<8x512xf32>
    %334 = arith.addf %330, %333 : vector<8x512xf32>
    %335 = arith.negf %334 : vector<8x512xf32>
    %336 = math.exp %335 : vector<8x512xf32>
    %cst_247 = arith.constant 1.000000e+00 : f32
    %337 = vector.broadcast %cst_247 : f32 to vector<8x512xf32>
    %338 = arith.addf %337, %336 : vector<8x512xf32>
    %339 = arith.divf %337, %338 : vector<8x512xf32>
    %340 = vector.extract_strided_slice %334 {offsets = [0, 256], sizes = [8, 128], strides = [1, 1]} : vector<8x512xf32> to vector<8x128xf32>
    %341 = math.tanh %340 : vector<8x128xf32>
    %342 = vector.extract_strided_slice %339 {offsets = [0, 0], sizes = [8, 128], strides = [1, 1]} : vector<8x512xf32> to vector<8x128xf32>
    %343 = vector.extract_strided_slice %339 {offsets = [0, 128], sizes = [8, 128], strides = [1, 1]} : vector<8x512xf32> to vector<8x128xf32>
    %344 = vector.extract_strided_slice %339 {offsets = [0, 384], sizes = [8, 128], strides = [1, 1]} : vector<8x512xf32> to vector<8x128xf32>
    %345 = arith.mulf %343, %328 : vector<8x128xf32>
    %346 = arith.mulf %342, %341 : vector<8x128xf32>
    %347 = arith.addf %345, %346 : vector<8x128xf32>
    %348 = math.tanh %347 : vector<8x128xf32>
    %349 = arith.mulf %344, %348 : vector<8x128xf32>
    %c1_248 = arith.constant 1 : index
    %c0_249 = arith.constant 0 : index
    %c0_250 = arith.constant 0 : index
    %350 = vector.load %arg13[%c1_248, %c0_249, %c0_250] : memref<2x8x128xf32, #tpu.memory_space<vmem>>, vector<1x8x128xf32>
    %351 = vector.shape_cast %350 : vector<1x8x128xf32> to vector<8x128xf32>
    %352 = vector.shape_cast %347 : vector<8x128xf32> to vector<1x8x128xf32>
    tpu.vector_store %arg13[%c1_248, %c0_249, %c0_250], %352 {strides = array<i32>} : memref<2x8x128xf32, #tpu.memory_space<vmem>>, vector<1x8x128xf32>,
    %c1_251 = arith.constant 1 : index
    %c0_252 = arith.constant 0 : index
    %c0_253 = arith.constant 0 : index
    %353 = vector.load %arg12[%c1_251, %c0_252, %c0_253] : memref<2x8x128xf32, #tpu.memory_space<vmem>>, vector<1x8x128xf32>
    %354 = vector.shape_cast %353 : vector<1x8x128xf32> to vector<8x128xf32>
    %355 = vector.shape_cast %349 : vector<8x128xf32> to vector<1x8x128xf32>
    tpu.vector_store %arg12[%c1_251, %c0_252, %c0_253], %355 {strides = array<i32>} : memref<2x8x128xf32, #tpu.memory_space<vmem>>, vector<1x8x128xf32>,
    %c0_254 = arith.constant 0 : index
    %c0_255 = arith.constant 0 : index
    %c0_256 = arith.constant 0 : index
    %356 = vector.load %arg14[%c0_254, %c0_255, %c0_256] : memref<8x8x128xf32, #tpu.memory_space<vmem>>, vector<1x8x128xf32>
    %357 = vector.shape_cast %356 : vector<1x8x128xf32> to vector<8x128xf32>
    %358 = vector.shape_cast %349 : vector<8x128xf32> to vector<1x8x128xf32>
    tpu.vector_store %arg14[%c0_254, %c0_255, %c0_256], %358 {strides = array<i32>} : memref<8x8x128xf32, #tpu.memory_space<vmem>>, vector<1x8x128xf32>,
    %c1_257 = arith.constant 1 : index
    %c0_258 = arith.constant 0 : index
    %c0_259 = arith.constant 0 : index
    %359 = vector.load %arg12[%c1_257, %c0_258, %c0_259] : memref<2x8x128xf32, #tpu.memory_space<vmem>>, vector<1x8x128xf32>
    %360 = vector.shape_cast %359 : vector<1x8x128xf32> to vector<8x128xf32>
    %c1_260 = arith.constant 1 : index
    %c0_261 = arith.constant 0 : index
    %c0_262 = arith.constant 0 : index
    %361 = vector.load %arg13[%c1_260, %c0_261, %c0_262] : memref<2x8x128xf32, #tpu.memory_space<vmem>>, vector<1x8x128xf32>
    %362 = vector.shape_cast %361 : vector<1x8x128xf32> to vector<8x128xf32>
    %c1_263 = arith.constant 1 : index
    %c0_264 = arith.constant 0 : index
    %c0_265 = arith.constant 0 : index
    %363 = vector.load %arg15[%c1_263, %c0_264, %c0_265] : memref<8x8x512xf32, #tpu.memory_space<vmem>>, vector<1x8x512xf32>
    %364 = vector.shape_cast %363 : vector<1x8x512xf32> to vector<8x512xf32>
    %c1_266 = arith.constant 1 : index
    %c0_267 = arith.constant 0 : index
    %c0_268 = arith.constant 0 : index
    %365 = vector.load %arg5[%c1_266, %c0_267, %c0_268] : memref<2x128x512xf32, #tpu.memory_space<vmem>>, vector<1x128x512xf32>
    %366 = vector.shape_cast %365 : vector<1x128x512xf32> to vector<128x512xf32>
    %cst_269 = arith.constant dense<0.000000e+00> : vector<8x512xf32>
    %367 = tpu.matmul %360, %366, %cst_269 {dimension_numbers = #tpu.dot_dimension_numbers<[1], [0], [0], [1], [0, 0, 1, 1], [], []>} : vector<8x128xf32>, vector<128x512xf32>, vector<8x512xf32> -> vector<8x512xf32>
    %368 = arith.addf %364, %367 : vector<8x512xf32>
    %369 = arith.negf %368 : vector<8x512xf32>
    %370 = math.exp %369 : vector<8x512xf32>
    %cst_270 = arith.constant 1.000000e+00 : f32
    %371 = vector.broadcast %cst_270 : f32 to vector<8x512xf32>
    %372 = arith.addf %371, %370 : vector<8x512xf32>
    %373 = arith.divf %371, %372 : vector<8x512xf32>
    %374 = vector.extract_strided_slice %368 {offsets = [0, 256], sizes = [8, 128], strides = [1, 1]} : vector<8x512xf32> to vector<8x128xf32>
    %375 = math.tanh %374 : vector<8x128xf32>
    %376 = vector.extract_strided_slice %373 {offsets = [0, 0], sizes = [8, 128], strides = [1, 1]} : vector<8x512xf32> to vector<8x128xf32>
    %377 = vector.extract_strided_slice %373 {offsets = [0, 128], sizes = [8, 128], strides = [1, 1]} : vector<8x512xf32> to vector<8x128xf32>
    %378 = vector.extract_strided_slice %373 {offsets = [0, 384], sizes = [8, 128], strides = [1, 1]} : vector<8x512xf32> to vector<8x128xf32>
    %379 = arith.mulf %377, %362 : vector<8x128xf32>
    %380 = arith.mulf %376, %375 : vector<8x128xf32>
    %381 = arith.addf %379, %380 : vector<8x128xf32>
    %382 = math.tanh %381 : vector<8x128xf32>
    %383 = arith.mulf %378, %382 : vector<8x128xf32>
    %c1_271 = arith.constant 1 : index
    %c0_272 = arith.constant 0 : index
    %c0_273 = arith.constant 0 : index
    %384 = vector.load %arg13[%c1_271, %c0_272, %c0_273] : memref<2x8x128xf32, #tpu.memory_space<vmem>>, vector<1x8x128xf32>
    %385 = vector.shape_cast %384 : vector<1x8x128xf32> to vector<8x128xf32>
    %386 = vector.shape_cast %381 : vector<8x128xf32> to vector<1x8x128xf32>
    tpu.vector_store %arg13[%c1_271, %c0_272, %c0_273], %386 {strides = array<i32>} : memref<2x8x128xf32, #tpu.memory_space<vmem>>, vector<1x8x128xf32>,
    %c1_274 = arith.constant 1 : index
    %c0_275 = arith.constant 0 : index
    %c0_276 = arith.constant 0 : index
    %387 = vector.load %arg12[%c1_274, %c0_275, %c0_276] : memref<2x8x128xf32, #tpu.memory_space<vmem>>, vector<1x8x128xf32>
    %388 = vector.shape_cast %387 : vector<1x8x128xf32> to vector<8x128xf32>
    %389 = vector.shape_cast %383 : vector<8x128xf32> to vector<1x8x128xf32>
    tpu.vector_store %arg12[%c1_274, %c0_275, %c0_276], %389 {strides = array<i32>} : memref<2x8x128xf32, #tpu.memory_space<vmem>>, vector<1x8x128xf32>,
    %c1_277 = arith.constant 1 : index
    %c0_278 = arith.constant 0 : index
    %c0_279 = arith.constant 0 : index
    %390 = vector.load %arg14[%c1_277, %c0_278, %c0_279] : memref<8x8x128xf32, #tpu.memory_space<vmem>>, vector<1x8x128xf32>
    %391 = vector.shape_cast %390 : vector<1x8x128xf32> to vector<8x128xf32>
    %392 = vector.shape_cast %383 : vector<8x128xf32> to vector<1x8x128xf32>
    tpu.vector_store %arg14[%c1_277, %c0_278, %c0_279], %392 {strides = array<i32>} : memref<8x8x128xf32, #tpu.memory_space<vmem>>, vector<1x8x128xf32>,
    %c1_280 = arith.constant 1 : index
    %c0_281 = arith.constant 0 : index
    %c0_282 = arith.constant 0 : index
    %393 = vector.load %arg12[%c1_280, %c0_281, %c0_282] : memref<2x8x128xf32, #tpu.memory_space<vmem>>, vector<1x8x128xf32>
    %394 = vector.shape_cast %393 : vector<1x8x128xf32> to vector<8x128xf32>
    %c1_283 = arith.constant 1 : index
    %c0_284 = arith.constant 0 : index
    %c0_285 = arith.constant 0 : index
    %395 = vector.load %arg13[%c1_283, %c0_284, %c0_285] : memref<2x8x128xf32, #tpu.memory_space<vmem>>, vector<1x8x128xf32>
    %396 = vector.shape_cast %395 : vector<1x8x128xf32> to vector<8x128xf32>
    %c2_286 = arith.constant 2 : index
    %c0_287 = arith.constant 0 : index
    %c0_288 = arith.constant 0 : index
    %397 = vector.load %arg15[%c2_286, %c0_287, %c0_288] : memref<8x8x512xf32, #tpu.memory_space<vmem>>, vector<1x8x512xf32>
    %398 = vector.shape_cast %397 : vector<1x8x512xf32> to vector<8x512xf32>
    %c1_289 = arith.constant 1 : index
    %c0_290 = arith.constant 0 : index
    %c0_291 = arith.constant 0 : index
    %399 = vector.load %arg5[%c1_289, %c0_290, %c0_291] : memref<2x128x512xf32, #tpu.memory_space<vmem>>, vector<1x128x512xf32>
    %400 = vector.shape_cast %399 : vector<1x128x512xf32> to vector<128x512xf32>
    %cst_292 = arith.constant dense<0.000000e+00> : vector<8x512xf32>
    %401 = tpu.matmul %394, %400, %cst_292 {dimension_numbers = #tpu.dot_dimension_numbers<[1], [0], [0], [1], [0, 0, 1, 1], [], []>} : vector<8x128xf32>, vector<128x512xf32>, vector<8x512xf32> -> vector<8x512xf32>
    %402 = arith.addf %398, %401 : vector<8x512xf32>
    %403 = arith.negf %402 : vector<8x512xf32>
    %404 = math.exp %403 : vector<8x512xf32>
    %cst_293 = arith.constant 1.000000e+00 : f32
    %405 = vector.broadcast %cst_293 : f32 to vector<8x512xf32>
    %406 = arith.addf %405, %404 : vector<8x512xf32>
    %407 = arith.divf %405, %406 : vector<8x512xf32>
    %408 = vector.extract_strided_slice %402 {offsets = [0, 256], sizes = [8, 128], strides = [1, 1]} : vector<8x512xf32> to vector<8x128xf32>
    %409 = math.tanh %408 : vector<8x128xf32>
    %410 = vector.extract_strided_slice %407 {offsets = [0, 0], sizes = [8, 128], strides = [1, 1]} : vector<8x512xf32> to vector<8x128xf32>
    %411 = vector.extract_strided_slice %407 {offsets = [0, 128], sizes = [8, 128], strides = [1, 1]} : vector<8x512xf32> to vector<8x128xf32>
    %412 = vector.extract_strided_slice %407 {offsets = [0, 384], sizes = [8, 128], strides = [1, 1]} : vector<8x512xf32> to vector<8x128xf32>
    %413 = arith.mulf %411, %396 : vector<8x128xf32>
    %414 = arith.mulf %410, %409 : vector<8x128xf32>
    %415 = arith.addf %413, %414 : vector<8x128xf32>
    %416 = math.tanh %415 : vector<8x128xf32>
    %417 = arith.mulf %412, %416 : vector<8x128xf32>
    %c1_294 = arith.constant 1 : index
    %c0_295 = arith.constant 0 : index
    %c0_296 = arith.constant 0 : index
    %418 = vector.load %arg13[%c1_294, %c0_295, %c0_296] : memref<2x8x128xf32, #tpu.memory_space<vmem>>, vector<1x8x128xf32>
    %419 = vector.shape_cast %418 : vector<1x8x128xf32> to vector<8x128xf32>
    %420 = vector.shape_cast %415 : vector<8x128xf32> to vector<1x8x128xf32>
    tpu.vector_store %arg13[%c1_294, %c0_295, %c0_296], %420 {strides = array<i32>} : memref<2x8x128xf32, #tpu.memory_space<vmem>>, vector<1x8x128xf32>,
    %c1_297 = arith.constant 1 : index
    %c0_298 = arith.constant 0 : index
    %c0_299 = arith.constant 0 : index
    %421 = vector.load %arg12[%c1_297, %c0_298, %c0_299] : memref<2x8x128xf32, #tpu.memory_space<vmem>>, vector<1x8x128xf32>
    %422 = vector.shape_cast %421 : vector<1x8x128xf32> to vector<8x128xf32>
    %423 = vector.shape_cast %417 : vector<8x128xf32> to vector<1x8x128xf32>
    tpu.vector_store %arg12[%c1_297, %c0_298, %c0_299], %423 {strides = array<i32>} : memref<2x8x128xf32, #tpu.memory_space<vmem>>, vector<1x8x128xf32>,
    %c2_300 = arith.constant 2 : index
    %c0_301 = arith.constant 0 : index
    %c0_302 = arith.constant 0 : index
    %424 = vector.load %arg14[%c2_300, %c0_301, %c0_302] : memref<8x8x128xf32, #tpu.memory_space<vmem>>, vector<1x8x128xf32>
    %425 = vector.shape_cast %424 : vector<1x8x128xf32> to vector<8x128xf32>
    %426 = vector.shape_cast %417 : vector<8x128xf32> to vector<1x8x128xf32>
    tpu.vector_store %arg14[%c2_300, %c0_301, %c0_302], %426 {strides = array<i32>} : memref<8x8x128xf32, #tpu.memory_space<vmem>>, vector<1x8x128xf32>,
    %c1_303 = arith.constant 1 : index
    %c0_304 = arith.constant 0 : index
    %c0_305 = arith.constant 0 : index
    %427 = vector.load %arg12[%c1_303, %c0_304, %c0_305] : memref<2x8x128xf32, #tpu.memory_space<vmem>>, vector<1x8x128xf32>
    %428 = vector.shape_cast %427 : vector<1x8x128xf32> to vector<8x128xf32>
    %c1_306 = arith.constant 1 : index
    %c0_307 = arith.constant 0 : index
    %c0_308 = arith.constant 0 : index
    %429 = vector.load %arg13[%c1_306, %c0_307, %c0_308] : memref<2x8x128xf32, #tpu.memory_space<vmem>>, vector<1x8x128xf32>
    %430 = vector.shape_cast %429 : vector<1x8x128xf32> to vector<8x128xf32>
    %c3_309 = arith.constant 3 : index
    %c0_310 = arith.constant 0 : index
    %c0_311 = arith.constant 0 : index
    %431 = vector.load %arg15[%c3_309, %c0_310, %c0_311] : memref<8x8x512xf32, #tpu.memory_space<vmem>>, vector<1x8x512xf32>
    %432 = vector.shape_cast %431 : vector<1x8x512xf32> to vector<8x512xf32>
    %c1_312 = arith.constant 1 : index
    %c0_313 = arith.constant 0 : index
    %c0_314 = arith.constant 0 : index
    %433 = vector.load %arg5[%c1_312, %c0_313, %c0_314] : memref<2x128x512xf32, #tpu.memory_space<vmem>>, vector<1x128x512xf32>
    %434 = vector.shape_cast %433 : vector<1x128x512xf32> to vector<128x512xf32>
    %cst_315 = arith.constant dense<0.000000e+00> : vector<8x512xf32>
    %435 = tpu.matmul %428, %434, %cst_315 {dimension_numbers = #tpu.dot_dimension_numbers<[1], [0], [0], [1], [0, 0, 1, 1], [], []>} : vector<8x128xf32>, vector<128x512xf32>, vector<8x512xf32> -> vector<8x512xf32>
    %436 = arith.addf %432, %435 : vector<8x512xf32>
    %437 = arith.negf %436 : vector<8x512xf32>
    %438 = math.exp %437 : vector<8x512xf32>
    %cst_316 = arith.constant 1.000000e+00 : f32
    %439 = vector.broadcast %cst_316 : f32 to vector<8x512xf32>
    %440 = arith.addf %439, %438 : vector<8x512xf32>
    %441 = arith.divf %439, %440 : vector<8x512xf32>
    %442 = vector.extract_strided_slice %436 {offsets = [0, 256], sizes = [8, 128], strides = [1, 1]} : vector<8x512xf32> to vector<8x128xf32>
    %443 = math.tanh %442 : vector<8x128xf32>
    %444 = vector.extract_strided_slice %441 {offsets = [0, 0], sizes = [8, 128], strides = [1, 1]} : vector<8x512xf32> to vector<8x128xf32>
    %445 = vector.extract_strided_slice %441 {offsets = [0, 128], sizes = [8, 128], strides = [1, 1]} : vector<8x512xf32> to vector<8x128xf32>
    %446 = vector.extract_strided_slice %441 {offsets = [0, 384], sizes = [8, 128], strides = [1, 1]} : vector<8x512xf32> to vector<8x128xf32>
    %447 = arith.mulf %445, %430 : vector<8x128xf32>
    %448 = arith.mulf %444, %443 : vector<8x128xf32>
    %449 = arith.addf %447, %448 : vector<8x128xf32>
    %450 = math.tanh %449 : vector<8x128xf32>
    %451 = arith.mulf %446, %450 : vector<8x128xf32>
    %c1_317 = arith.constant 1 : index
    %c0_318 = arith.constant 0 : index
    %c0_319 = arith.constant 0 : index
    %452 = vector.load %arg13[%c1_317, %c0_318, %c0_319] : memref<2x8x128xf32, #tpu.memory_space<vmem>>, vector<1x8x128xf32>
    %453 = vector.shape_cast %452 : vector<1x8x128xf32> to vector<8x128xf32>
    %454 = vector.shape_cast %449 : vector<8x128xf32> to vector<1x8x128xf32>
    tpu.vector_store %arg13[%c1_317, %c0_318, %c0_319], %454 {strides = array<i32>} : memref<2x8x128xf32, #tpu.memory_space<vmem>>, vector<1x8x128xf32>,
    %c1_320 = arith.constant 1 : index
    %c0_321 = arith.constant 0 : index
    %c0_322 = arith.constant 0 : index
    %455 = vector.load %arg12[%c1_320, %c0_321, %c0_322] : memref<2x8x128xf32, #tpu.memory_space<vmem>>, vector<1x8x128xf32>
    %456 = vector.shape_cast %455 : vector<1x8x128xf32> to vector<8x128xf32>
    %457 = vector.shape_cast %451 : vector<8x128xf32> to vector<1x8x128xf32>
    tpu.vector_store %arg12[%c1_320, %c0_321, %c0_322], %457 {strides = array<i32>} : memref<2x8x128xf32, #tpu.memory_space<vmem>>, vector<1x8x128xf32>,
    %c3_323 = arith.constant 3 : index
    %c0_324 = arith.constant 0 : index
    %c0_325 = arith.constant 0 : index
    %458 = vector.load %arg14[%c3_323, %c0_324, %c0_325] : memref<8x8x128xf32, #tpu.memory_space<vmem>>, vector<1x8x128xf32>
    %459 = vector.shape_cast %458 : vector<1x8x128xf32> to vector<8x128xf32>
    %460 = vector.shape_cast %451 : vector<8x128xf32> to vector<1x8x128xf32>
    tpu.vector_store %arg14[%c3_323, %c0_324, %c0_325], %460 {strides = array<i32>} : memref<8x8x128xf32, #tpu.memory_space<vmem>>, vector<1x8x128xf32>,
    %c1_326 = arith.constant 1 : index
    %c0_327 = arith.constant 0 : index
    %c0_328 = arith.constant 0 : index
    %461 = vector.load %arg12[%c1_326, %c0_327, %c0_328] : memref<2x8x128xf32, #tpu.memory_space<vmem>>, vector<1x8x128xf32>
    %462 = vector.shape_cast %461 : vector<1x8x128xf32> to vector<8x128xf32>
    %c1_329 = arith.constant 1 : index
    %c0_330 = arith.constant 0 : index
    %c0_331 = arith.constant 0 : index
    %463 = vector.load %arg13[%c1_329, %c0_330, %c0_331] : memref<2x8x128xf32, #tpu.memory_space<vmem>>, vector<1x8x128xf32>
    %464 = vector.shape_cast %463 : vector<1x8x128xf32> to vector<8x128xf32>
    %c4_332 = arith.constant 4 : index
    %c0_333 = arith.constant 0 : index
    %c0_334 = arith.constant 0 : index
    %465 = vector.load %arg15[%c4_332, %c0_333, %c0_334] : memref<8x8x512xf32, #tpu.memory_space<vmem>>, vector<1x8x512xf32>
    %466 = vector.shape_cast %465 : vector<1x8x512xf32> to vector<8x512xf32>
    %c1_335 = arith.constant 1 : index
    %c0_336 = arith.constant 0 : index
    %c0_337 = arith.constant 0 : index
    %467 = vector.load %arg5[%c1_335, %c0_336, %c0_337] : memref<2x128x512xf32, #tpu.memory_space<vmem>>, vector<1x128x512xf32>
    %468 = vector.shape_cast %467 : vector<1x128x512xf32> to vector<128x512xf32>
    %cst_338 = arith.constant dense<0.000000e+00> : vector<8x512xf32>
    %469 = tpu.matmul %462, %468, %cst_338 {dimension_numbers = #tpu.dot_dimension_numbers<[1], [0], [0], [1], [0, 0, 1, 1], [], []>} : vector<8x128xf32>, vector<128x512xf32>, vector<8x512xf32> -> vector<8x512xf32>
    %470 = arith.addf %466, %469 : vector<8x512xf32>
    %471 = arith.negf %470 : vector<8x512xf32>
    %472 = math.exp %471 : vector<8x512xf32>
    %cst_339 = arith.constant 1.000000e+00 : f32
    %473 = vector.broadcast %cst_339 : f32 to vector<8x512xf32>
    %474 = arith.addf %473, %472 : vector<8x512xf32>
    %475 = arith.divf %473, %474 : vector<8x512xf32>
    %476 = vector.extract_strided_slice %470 {offsets = [0, 256], sizes = [8, 128], strides = [1, 1]} : vector<8x512xf32> to vector<8x128xf32>
    %477 = math.tanh %476 : vector<8x128xf32>
    %478 = vector.extract_strided_slice %475 {offsets = [0, 0], sizes = [8, 128], strides = [1, 1]} : vector<8x512xf32> to vector<8x128xf32>
    %479 = vector.extract_strided_slice %475 {offsets = [0, 128], sizes = [8, 128], strides = [1, 1]} : vector<8x512xf32> to vector<8x128xf32>
    %480 = vector.extract_strided_slice %475 {offsets = [0, 384], sizes = [8, 128], strides = [1, 1]} : vector<8x512xf32> to vector<8x128xf32>
    %481 = arith.mulf %479, %464 : vector<8x128xf32>
    %482 = arith.mulf %478, %477 : vector<8x128xf32>
    %483 = arith.addf %481, %482 : vector<8x128xf32>
    %484 = math.tanh %483 : vector<8x128xf32>
    %485 = arith.mulf %480, %484 : vector<8x128xf32>
    %c1_340 = arith.constant 1 : index
    %c0_341 = arith.constant 0 : index
    %c0_342 = arith.constant 0 : index
    %486 = vector.load %arg13[%c1_340, %c0_341, %c0_342] : memref<2x8x128xf32, #tpu.memory_space<vmem>>, vector<1x8x128xf32>
    %487 = vector.shape_cast %486 : vector<1x8x128xf32> to vector<8x128xf32>
    %488 = vector.shape_cast %483 : vector<8x128xf32> to vector<1x8x128xf32>
    tpu.vector_store %arg13[%c1_340, %c0_341, %c0_342], %488 {strides = array<i32>} : memref<2x8x128xf32, #tpu.memory_space<vmem>>, vector<1x8x128xf32>,
    %c1_343 = arith.constant 1 : index
    %c0_344 = arith.constant 0 : index
    %c0_345 = arith.constant 0 : index
    %489 = vector.load %arg12[%c1_343, %c0_344, %c0_345] : memref<2x8x128xf32, #tpu.memory_space<vmem>>, vector<1x8x128xf32>
    %490 = vector.shape_cast %489 : vector<1x8x128xf32> to vector<8x128xf32>
    %491 = vector.shape_cast %485 : vector<8x128xf32> to vector<1x8x128xf32>
    tpu.vector_store %arg12[%c1_343, %c0_344, %c0_345], %491 {strides = array<i32>} : memref<2x8x128xf32, #tpu.memory_space<vmem>>, vector<1x8x128xf32>,
    %c4_346 = arith.constant 4 : index
    %c0_347 = arith.constant 0 : index
    %c0_348 = arith.constant 0 : index
    %492 = vector.load %arg14[%c4_346, %c0_347, %c0_348] : memref<8x8x128xf32, #tpu.memory_space<vmem>>, vector<1x8x128xf32>
    %493 = vector.shape_cast %492 : vector<1x8x128xf32> to vector<8x128xf32>
    %494 = vector.shape_cast %485 : vector<8x128xf32> to vector<1x8x128xf32>
    tpu.vector_store %arg14[%c4_346, %c0_347, %c0_348], %494 {strides = array<i32>} : memref<8x8x128xf32, #tpu.memory_space<vmem>>, vector<1x8x128xf32>,
    %c1_349 = arith.constant 1 : index
    %c0_350 = arith.constant 0 : index
    %c0_351 = arith.constant 0 : index
    %495 = vector.load %arg12[%c1_349, %c0_350, %c0_351] : memref<2x8x128xf32, #tpu.memory_space<vmem>>, vector<1x8x128xf32>
    %496 = vector.shape_cast %495 : vector<1x8x128xf32> to vector<8x128xf32>
    %c1_352 = arith.constant 1 : index
    %c0_353 = arith.constant 0 : index
    %c0_354 = arith.constant 0 : index
    %497 = vector.load %arg13[%c1_352, %c0_353, %c0_354] : memref<2x8x128xf32, #tpu.memory_space<vmem>>, vector<1x8x128xf32>
    %498 = vector.shape_cast %497 : vector<1x8x128xf32> to vector<8x128xf32>
    %c5_355 = arith.constant 5 : index
    %c0_356 = arith.constant 0 : index
    %c0_357 = arith.constant 0 : index
    %499 = vector.load %arg15[%c5_355, %c0_356, %c0_357] : memref<8x8x512xf32, #tpu.memory_space<vmem>>, vector<1x8x512xf32>
    %500 = vector.shape_cast %499 : vector<1x8x512xf32> to vector<8x512xf32>
    %c1_358 = arith.constant 1 : index
    %c0_359 = arith.constant 0 : index
    %c0_360 = arith.constant 0 : index
    %501 = vector.load %arg5[%c1_358, %c0_359, %c0_360] : memref<2x128x512xf32, #tpu.memory_space<vmem>>, vector<1x128x512xf32>
    %502 = vector.shape_cast %501 : vector<1x128x512xf32> to vector<128x512xf32>
    %cst_361 = arith.constant dense<0.000000e+00> : vector<8x512xf32>
    %503 = tpu.matmul %496, %502, %cst_361 {dimension_numbers = #tpu.dot_dimension_numbers<[1], [0], [0], [1], [0, 0, 1, 1], [], []>} : vector<8x128xf32>, vector<128x512xf32>, vector<8x512xf32> -> vector<8x512xf32>
    %504 = arith.addf %500, %503 : vector<8x512xf32>
    %505 = arith.negf %504 : vector<8x512xf32>
    %506 = math.exp %505 : vector<8x512xf32>
    %cst_362 = arith.constant 1.000000e+00 : f32
    %507 = vector.broadcast %cst_362 : f32 to vector<8x512xf32>
    %508 = arith.addf %507, %506 : vector<8x512xf32>
    %509 = arith.divf %507, %508 : vector<8x512xf32>
    %510 = vector.extract_strided_slice %504 {offsets = [0, 256], sizes = [8, 128], strides = [1, 1]} : vector<8x512xf32> to vector<8x128xf32>
    %511 = math.tanh %510 : vector<8x128xf32>
    %512 = vector.extract_strided_slice %509 {offsets = [0, 0], sizes = [8, 128], strides = [1, 1]} : vector<8x512xf32> to vector<8x128xf32>
    %513 = vector.extract_strided_slice %509 {offsets = [0, 128], sizes = [8, 128], strides = [1, 1]} : vector<8x512xf32> to vector<8x128xf32>
    %514 = vector.extract_strided_slice %509 {offsets = [0, 384], sizes = [8, 128], strides = [1, 1]} : vector<8x512xf32> to vector<8x128xf32>
    %515 = arith.mulf %513, %498 : vector<8x128xf32>
    %516 = arith.mulf %512, %511 : vector<8x128xf32>
    %517 = arith.addf %515, %516 : vector<8x128xf32>
    %518 = math.tanh %517 : vector<8x128xf32>
    %519 = arith.mulf %514, %518 : vector<8x128xf32>
    %c1_363 = arith.constant 1 : index
    %c0_364 = arith.constant 0 : index
    %c0_365 = arith.constant 0 : index
    %520 = vector.load %arg13[%c1_363, %c0_364, %c0_365] : memref<2x8x128xf32, #tpu.memory_space<vmem>>, vector<1x8x128xf32>
    %521 = vector.shape_cast %520 : vector<1x8x128xf32> to vector<8x128xf32>
    %522 = vector.shape_cast %517 : vector<8x128xf32> to vector<1x8x128xf32>
    tpu.vector_store %arg13[%c1_363, %c0_364, %c0_365], %522 {strides = array<i32>} : memref<2x8x128xf32, #tpu.memory_space<vmem>>, vector<1x8x128xf32>,
    %c1_366 = arith.constant 1 : index
    %c0_367 = arith.constant 0 : index
    %c0_368 = arith.constant 0 : index
    %523 = vector.load %arg12[%c1_366, %c0_367, %c0_368] : memref<2x8x128xf32, #tpu.memory_space<vmem>>, vector<1x8x128xf32>
    %524 = vector.shape_cast %523 : vector<1x8x128xf32> to vector<8x128xf32>
    %525 = vector.shape_cast %519 : vector<8x128xf32> to vector<1x8x128xf32>
    tpu.vector_store %arg12[%c1_366, %c0_367, %c0_368], %525 {strides = array<i32>} : memref<2x8x128xf32, #tpu.memory_space<vmem>>, vector<1x8x128xf32>,
    %c5_369 = arith.constant 5 : index
    %c0_370 = arith.constant 0 : index
    %c0_371 = arith.constant 0 : index
    %526 = vector.load %arg14[%c5_369, %c0_370, %c0_371] : memref<8x8x128xf32, #tpu.memory_space<vmem>>, vector<1x8x128xf32>
    %527 = vector.shape_cast %526 : vector<1x8x128xf32> to vector<8x128xf32>
    %528 = vector.shape_cast %519 : vector<8x128xf32> to vector<1x8x128xf32>
    tpu.vector_store %arg14[%c5_369, %c0_370, %c0_371], %528 {strides = array<i32>} : memref<8x8x128xf32, #tpu.memory_space<vmem>>, vector<1x8x128xf32>,
    %c1_372 = arith.constant 1 : index
    %c0_373 = arith.constant 0 : index
    %c0_374 = arith.constant 0 : index
    %529 = vector.load %arg12[%c1_372, %c0_373, %c0_374] : memref<2x8x128xf32, #tpu.memory_space<vmem>>, vector<1x8x128xf32>
    %530 = vector.shape_cast %529 : vector<1x8x128xf32> to vector<8x128xf32>
    %c1_375 = arith.constant 1 : index
    %c0_376 = arith.constant 0 : index
    %c0_377 = arith.constant 0 : index
    %531 = vector.load %arg13[%c1_375, %c0_376, %c0_377] : memref<2x8x128xf32, #tpu.memory_space<vmem>>, vector<1x8x128xf32>
    %532 = vector.shape_cast %531 : vector<1x8x128xf32> to vector<8x128xf32>
    %c6_378 = arith.constant 6 : index
    %c0_379 = arith.constant 0 : index
    %c0_380 = arith.constant 0 : index
    %533 = vector.load %arg15[%c6_378, %c0_379, %c0_380] : memref<8x8x512xf32, #tpu.memory_space<vmem>>, vector<1x8x512xf32>
    %534 = vector.shape_cast %533 : vector<1x8x512xf32> to vector<8x512xf32>
    %c1_381 = arith.constant 1 : index
    %c0_382 = arith.constant 0 : index
    %c0_383 = arith.constant 0 : index
    %535 = vector.load %arg5[%c1_381, %c0_382, %c0_383] : memref<2x128x512xf32, #tpu.memory_space<vmem>>, vector<1x128x512xf32>
    %536 = vector.shape_cast %535 : vector<1x128x512xf32> to vector<128x512xf32>
    %cst_384 = arith.constant dense<0.000000e+00> : vector<8x512xf32>
    %537 = tpu.matmul %530, %536, %cst_384 {dimension_numbers = #tpu.dot_dimension_numbers<[1], [0], [0], [1], [0, 0, 1, 1], [], []>} : vector<8x128xf32>, vector<128x512xf32>, vector<8x512xf32> -> vector<8x512xf32>
    %538 = arith.addf %534, %537 : vector<8x512xf32>
    %539 = arith.negf %538 : vector<8x512xf32>
    %540 = math.exp %539 : vector<8x512xf32>
    %cst_385 = arith.constant 1.000000e+00 : f32
    %541 = vector.broadcast %cst_385 : f32 to vector<8x512xf32>
    %542 = arith.addf %541, %540 : vector<8x512xf32>
    %543 = arith.divf %541, %542 : vector<8x512xf32>
    %544 = vector.extract_strided_slice %538 {offsets = [0, 256], sizes = [8, 128], strides = [1, 1]} : vector<8x512xf32> to vector<8x128xf32>
    %545 = math.tanh %544 : vector<8x128xf32>
    %546 = vector.extract_strided_slice %543 {offsets = [0, 0], sizes = [8, 128], strides = [1, 1]} : vector<8x512xf32> to vector<8x128xf32>
    %547 = vector.extract_strided_slice %543 {offsets = [0, 128], sizes = [8, 128], strides = [1, 1]} : vector<8x512xf32> to vector<8x128xf32>
    %548 = vector.extract_strided_slice %543 {offsets = [0, 384], sizes = [8, 128], strides = [1, 1]} : vector<8x512xf32> to vector<8x128xf32>
    %549 = arith.mulf %547, %532 : vector<8x128xf32>
    %550 = arith.mulf %546, %545 : vector<8x128xf32>
    %551 = arith.addf %549, %550 : vector<8x128xf32>
    %552 = math.tanh %551 : vector<8x128xf32>
    %553 = arith.mulf %548, %552 : vector<8x128xf32>
    %c1_386 = arith.constant 1 : index
    %c0_387 = arith.constant 0 : index
    %c0_388 = arith.constant 0 : index
    %554 = vector.load %arg13[%c1_386, %c0_387, %c0_388] : memref<2x8x128xf32, #tpu.memory_space<vmem>>, vector<1x8x128xf32>
    %555 = vector.shape_cast %554 : vector<1x8x128xf32> to vector<8x128xf32>
    %556 = vector.shape_cast %551 : vector<8x128xf32> to vector<1x8x128xf32>
    tpu.vector_store %arg13[%c1_386, %c0_387, %c0_388], %556 {strides = array<i32>} : memref<2x8x128xf32, #tpu.memory_space<vmem>>, vector<1x8x128xf32>,
    %c1_389 = arith.constant 1 : index
    %c0_390 = arith.constant 0 : index
    %c0_391 = arith.constant 0 : index
    %557 = vector.load %arg12[%c1_389, %c0_390, %c0_391] : memref<2x8x128xf32, #tpu.memory_space<vmem>>, vector<1x8x128xf32>
    %558 = vector.shape_cast %557 : vector<1x8x128xf32> to vector<8x128xf32>
    %559 = vector.shape_cast %553 : vector<8x128xf32> to vector<1x8x128xf32>
    tpu.vector_store %arg12[%c1_389, %c0_390, %c0_391], %559 {strides = array<i32>} : memref<2x8x128xf32, #tpu.memory_space<vmem>>, vector<1x8x128xf32>,
    %c6_392 = arith.constant 6 : index
    %c0_393 = arith.constant 0 : index
    %c0_394 = arith.constant 0 : index
    %560 = vector.load %arg14[%c6_392, %c0_393, %c0_394] : memref<8x8x128xf32, #tpu.memory_space<vmem>>, vector<1x8x128xf32>
    %561 = vector.shape_cast %560 : vector<1x8x128xf32> to vector<8x128xf32>
    %562 = vector.shape_cast %553 : vector<8x128xf32> to vector<1x8x128xf32>
    tpu.vector_store %arg14[%c6_392, %c0_393, %c0_394], %562 {strides = array<i32>} : memref<8x8x128xf32, #tpu.memory_space<vmem>>, vector<1x8x128xf32>,
    %c1_395 = arith.constant 1 : index
    %c0_396 = arith.constant 0 : index
    %c0_397 = arith.constant 0 : index
    %563 = vector.load %arg12[%c1_395, %c0_396, %c0_397] : memref<2x8x128xf32, #tpu.memory_space<vmem>>, vector<1x8x128xf32>
    %564 = vector.shape_cast %563 : vector<1x8x128xf32> to vector<8x128xf32>
    %c1_398 = arith.constant 1 : index
    %c0_399 = arith.constant 0 : index
    %c0_400 = arith.constant 0 : index
    %565 = vector.load %arg13[%c1_398, %c0_399, %c0_400] : memref<2x8x128xf32, #tpu.memory_space<vmem>>, vector<1x8x128xf32>
    %566 = vector.shape_cast %565 : vector<1x8x128xf32> to vector<8x128xf32>
    %c7_401 = arith.constant 7 : index
    %c0_402 = arith.constant 0 : index
    %c0_403 = arith.constant 0 : index
    %567 = vector.load %arg15[%c7_401, %c0_402, %c0_403] : memref<8x8x512xf32, #tpu.memory_space<vmem>>, vector<1x8x512xf32>
    %568 = vector.shape_cast %567 : vector<1x8x512xf32> to vector<8x512xf32>
    %c1_404 = arith.constant 1 : index
    %c0_405 = arith.constant 0 : index
    %c0_406 = arith.constant 0 : index
    %569 = vector.load %arg5[%c1_404, %c0_405, %c0_406] : memref<2x128x512xf32, #tpu.memory_space<vmem>>, vector<1x128x512xf32>
    %570 = vector.shape_cast %569 : vector<1x128x512xf32> to vector<128x512xf32>
    %cst_407 = arith.constant dense<0.000000e+00> : vector<8x512xf32>
    %571 = tpu.matmul %564, %570, %cst_407 {dimension_numbers = #tpu.dot_dimension_numbers<[1], [0], [0], [1], [0, 0, 1, 1], [], []>} : vector<8x128xf32>, vector<128x512xf32>, vector<8x512xf32> -> vector<8x512xf32>
    %572 = arith.addf %568, %571 : vector<8x512xf32>
    %573 = arith.negf %572 : vector<8x512xf32>
    %574 = math.exp %573 : vector<8x512xf32>
    %cst_408 = arith.constant 1.000000e+00 : f32
    %575 = vector.broadcast %cst_408 : f32 to vector<8x512xf32>
    %576 = arith.addf %575, %574 : vector<8x512xf32>
    %577 = arith.divf %575, %576 : vector<8x512xf32>
    %578 = vector.extract_strided_slice %572 {offsets = [0, 256], sizes = [8, 128], strides = [1, 1]} : vector<8x512xf32> to vector<8x128xf32>
    %579 = math.tanh %578 : vector<8x128xf32>
    %580 = vector.extract_strided_slice %577 {offsets = [0, 0], sizes = [8, 128], strides = [1, 1]} : vector<8x512xf32> to vector<8x128xf32>
    %581 = vector.extract_strided_slice %577 {offsets = [0, 128], sizes = [8, 128], strides = [1, 1]} : vector<8x512xf32> to vector<8x128xf32>
    %582 = vector.extract_strided_slice %577 {offsets = [0, 384], sizes = [8, 128], strides = [1, 1]} : vector<8x512xf32> to vector<8x128xf32>
    %583 = arith.mulf %581, %566 : vector<8x128xf32>
    %584 = arith.mulf %580, %579 : vector<8x128xf32>
    %585 = arith.addf %583, %584 : vector<8x128xf32>
    %586 = math.tanh %585 : vector<8x128xf32>
    %587 = arith.mulf %582, %586 : vector<8x128xf32>
    %c1_409 = arith.constant 1 : index
    %c0_410 = arith.constant 0 : index
    %c0_411 = arith.constant 0 : index
    %588 = vector.load %arg13[%c1_409, %c0_410, %c0_411] : memref<2x8x128xf32, #tpu.memory_space<vmem>>, vector<1x8x128xf32>
    %589 = vector.shape_cast %588 : vector<1x8x128xf32> to vector<8x128xf32>
    %590 = vector.shape_cast %585 : vector<8x128xf32> to vector<1x8x128xf32>
    tpu.vector_store %arg13[%c1_409, %c0_410, %c0_411], %590 {strides = array<i32>} : memref<2x8x128xf32, #tpu.memory_space<vmem>>, vector<1x8x128xf32>,
    %c1_412 = arith.constant 1 : index
    %c0_413 = arith.constant 0 : index
    %c0_414 = arith.constant 0 : index
    %591 = vector.load %arg12[%c1_412, %c0_413, %c0_414] : memref<2x8x128xf32, #tpu.memory_space<vmem>>, vector<1x8x128xf32>
    %592 = vector.shape_cast %591 : vector<1x8x128xf32> to vector<8x128xf32>
    %593 = vector.shape_cast %587 : vector<8x128xf32> to vector<1x8x128xf32>
    tpu.vector_store %arg12[%c1_412, %c0_413, %c0_414], %593 {strides = array<i32>} : memref<2x8x128xf32, #tpu.memory_space<vmem>>, vector<1x8x128xf32>,
    %c7_415 = arith.constant 7 : index
    %c0_416 = arith.constant 0 : index
    %c0_417 = arith.constant 0 : index
    %594 = vector.load %arg14[%c7_415, %c0_416, %c0_417] : memref<8x8x128xf32, #tpu.memory_space<vmem>>, vector<1x8x128xf32>
    %595 = vector.shape_cast %594 : vector<1x8x128xf32> to vector<8x128xf32>
    %596 = vector.shape_cast %587 : vector<8x128xf32> to vector<1x8x128xf32>
    tpu.vector_store %arg14[%c7_415, %c0_416, %c0_417], %596 {strides = array<i32>} : memref<8x8x128xf32, #tpu.memory_space<vmem>>, vector<1x8x128xf32>,
    %c7_418 = arith.constant 7 : index
    %c0_419 = arith.constant 0 : index
    %c0_420 = arith.constant 0 : index
    %597 = vector.load %arg14[%c7_418, %c0_419, %c0_420] : memref<8x8x128xf32, #tpu.memory_space<vmem>>, vector<1x8x128xf32>
    %598 = vector.shape_cast %597 : vector<1x8x128xf32> to vector<8x128xf32>
    %c0_421 = arith.constant 0 : index
    %c0_422 = arith.constant 0 : index
    %599 = vector.load %arg7[%c0_421, %c0_422] : memref<128x128xf32, #tpu.memory_space<vmem>>, vector<128x128xf32>
    %cst_423 = arith.constant dense<0.000000e+00> : vector<8x128xf32>
    %600 = tpu.matmul %598, %599, %cst_423 {dimension_numbers = #tpu.dot_dimension_numbers<[1], [0], [0], [1], [0, 0, 1, 1], [], []>} : vector<8x128xf32>, vector<128x128xf32>, vector<8x128xf32> -> vector<8x128xf32>
    %c0_424 = arith.constant 0 : index
    %c0_425 = arith.constant 0 : index
    %601 = vector.load %arg8[%c0_424, %c0_425] : memref<1x128xf32, #tpu.memory_space<vmem>>, vector<1x128xf32>
    %602 = vector.broadcast %601 : vector<1x128xf32> to vector<8x128xf32>
    %603 = arith.addf %600, %602 : vector<8x128xf32>
    %c0_426 = arith.constant 0 : index
    %c0_427 = arith.constant 0 : index
    %604 = vector.load %arg11[%c0_426, %c0_427] : memref<8x128xf32, #tpu.memory_space<vmem>>, vector<8x128xf32>
    tpu.vector_store %arg11[%c0_426, %c0_427], %603 {strides = array<i32>} : memref<8x128xf32, #tpu.memory_space<vmem>>, vector<8x128xf32>,
    return
  }
  func.func @transform_0(%arg0: i32) -> (i32, i32, i32) {
    %c0_i32 = arith.constant 0 : i32
    %c0_i32_0 = arith.constant 0 : i32
    %c0_i32_1 = arith.constant 0 : i32
    return %c0_i32, %arg0, %c0_i32_0 : i32, i32, i32
  }
  func.func @transform_1(%arg0: i32) -> (i32, i32) {
    %c0_i32 = arith.constant 0 : i32
    %c0_i32_0 = arith.constant 0 : i32
    %c0_i32_1 = arith.constant 0 : i32
    return %c0_i32, %c0_i32_0 : i32, i32
  }
  func.func @transform_2(%arg0: i32) -> (i32, i32) {
    %c0_i32 = arith.constant 0 : i32
    %c0_i32_0 = arith.constant 0 : i32
    %c0_i32_1 = arith.constant 0 : i32
    return %c0_i32, %c0_i32_0 : i32, i32
  }
  func.func @transform_3(%arg0: i32) -> (i32, i32, i32) {
    %c0_i32 = arith.constant 0 : i32
    %c0_i32_0 = arith.constant 0 : i32
    %c0_i32_1 = arith.constant 0 : i32
    %c0_i32_2 = arith.constant 0 : i32
    return %c0_i32, %c0_i32_0, %c0_i32_1 : i32, i32, i32
  }
  func.func @transform_4(%arg0: i32) -> (i32, i32, i32) {
    %c0_i32 = arith.constant 0 : i32
    %c0_i32_0 = arith.constant 0 : i32
    %c0_i32_1 = arith.constant 0 : i32
    %c0_i32_2 = arith.constant 0 : i32
    return %c0_i32, %c0_i32_0, %c0_i32_1 : i32, i32, i32
  }
  func.func @transform_5(%arg0: i32) -> (i32, i32) {
    %c0_i32 = arith.constant 0 : i32
    %c0_i32_0 = arith.constant 0 : i32
    %c0_i32_1 = arith.constant 0 : i32
    return %c0_i32, %c0_i32_0 : i32, i32
  }
  func.func @transform_6(%arg0: i32) -> (i32, i32) {
    %c0_i32 = arith.constant 0 : i32
    %c0_i32_0 = arith.constant 0 : i32
    %c0_i32_1 = arith.constant 0 : i32
    return %c0_i32, %c0_i32_0 : i32, i32
  }
  func.func @transform_7(%arg0: i32) -> (i32, i32) {
    %c0_i32 = arith.constant 0 : i32
    %c0_i32_0 = arith.constant 0 : i32
    %c0_i32_1 = arith.constant 0 : i32
    return %c0_i32, %c0_i32_0 : i32, i32
  }
  func.func @transform_8(%arg0: i32) -> (i32, i32, i32) {
    %c0_i32 = arith.constant 0 : i32
    %c0_i32_0 = arith.constant 0 : i32
    %c0_i32_1 = arith.constant 0 : i32
    return %c0_i32, %arg0, %c0_i32_0 : i32, i32, i32
  }
  func.func @transform_9(%arg0: i32) -> (i32, i32, i32) {
    %c0_i32 = arith.constant 0 : i32
    %c0_i32_0 = arith.constant 0 : i32
    %c0_i32_1 = arith.constant 0 : i32
    return %c0_i32, %arg0, %c0_i32_0 : i32, i32, i32
  }
  func.func @transform_10(%arg0: i32) -> (i32, i32) {
    %c0_i32 = arith.constant 0 : i32
    %c0_i32_0 = arith.constant 0 : i32
    return %arg0, %c0_i32 : i32, i32
  }
  func.func @transform_11(%arg0: i32) -> (i32, i32, i32) {
    %c0_i32 = arith.constant 0 : i32
    %c0_i32_0 = arith.constant 0 : i32
    %c0_i32_1 = arith.constant 0 : i32
    return %c0_i32, %arg0, %c0_i32_0 : i32, i32, i32
  }
  func.func @transform_12(%arg0: i32) -> (i32, i32, i32) {
    %c0_i32 = arith.constant 0 : i32
    %c0_i32_0 = arith.constant 0 : i32
    %c0_i32_1 = arith.constant 0 : i32
    return %c0_i32, %arg0, %c0_i32_0 : i32, i32, i32
  }
}

</mosaic_0001>

<bundles_post_ra>
// kernel: recurrent_forward.1
= control target key start
LH: loop header
LB: loop body
LE: loop exit
PB: predicated region body
PF: predicated region fallthrough
CT: control target
= control target key end

     0   :  { %vm55_vm0 = vcmask 130048   ;;  %vm7239_vm1 = vmmov 0   ;;  %s9751_s1 = inlined_call_operand.vmem [shape: f32[16,128], index: 1, kind: input, shape index: {}]   ;;  %s9752_s0 = inlined_call_operand.vmem [shape: f32[8,8,16], index: 0, kind: input, shape index: {}]   ;;  %s9753_s3 = inlined_call_operand.vmem [shape: f32[2,128,512], index: 3, kind: input, shape index: {}]   ;;  %s9754_s4 = inlined_call_operand.vmem [shape: f32[2,128,512], index: 4, kind: input, shape index: {}]   ;;  %s9755_s2 = inlined_call_operand.vmem [shape: f32[1,128], index: 2, kind: input, shape index: {}]   ;;  %s9756_s8 = inlined_call_operand.vmem [shape: f32[2,8,128], index: 8, kind: input, shape index: {}, may-alias: {8,11}]   ;;  %s9757_s5 = inlined_call_operand.vmem [shape: f32[2,512], index: 5, kind: input, shape index: {}]   ;;  %s9758_s9 = inlined_call_operand.vmem [shape: f32[2,8,128], index: 9, kind: input, shape index: {}, may-alias: {9,12}]   ;;  %s9759_s12 = inlined_call_operand.vmem [shape: f32[2,8,128], index: 12, kind: output, shape index: {2}, may-alias: {9,12}]   ;;  %s9760_s11 = inlined_call_operand.vmem [shape: f32[2,8,128], index: 11, kind: output, shape index: {1}, may-alias: {8,11}]   ;;  %s9761_s6 = inlined_call_operand.vmem [shape: f32[128,128], index: 6, kind: input, shape index: {}]   ;;  %s9762_s7 = inlined_call_operand.vmem [shape: f32[1,128], index: 7, kind: input, shape index: {}]   ;;  %s9763_s10 = inlined_call_operand.vmem [shape: f32[8,128], index: 10, kind: output, shape index: {0}]  }
   0x1   :  { %v46_v0 = vld [vmem:[%s9751_s1] sm:$0xff]  ;;  %v47_v1 = vld [vmem:[%s9751_s1 + $0x8] sm:$0xff]  ;;  %v40_v5 = vld [vmem:[%s9752_s0 + $0x10] sm:$0xff] }
   0x2   :  { %v38_v2 = vld [vmem:[%s9752_s0] sm:$0xff]  ;;  %v5670_v3 = vpack.c.bf16 %v47_v1, %v46_v0  ;;  %v39_v4 = vld [vmem:[%s9752_s0 + $0x8] sm:$0xff]  ;;  %v204_v11 = vld [vmem:[%s9753_s3 + $0x18] sm:$0xff] }
   0x3   :  { %5623 = vmatprep.mubr.msk.f32.mxu0 %vm55_vm0, %v38_v2  ;;  %v202_v6 = vld [vmem:[%s9753_s3 + $0x8] sm:$0xff]  ;;  %v201_v9 = vld [vmem:[%s9753_s3] sm:$0xff]  ;;  %v208_v13 = vld [vmem:[%s9753_s3 + $0x38] sm:$0xff] }
   0x4   :  { %5671 = vmatprep.subr.bf16.mxu0 %v5670_v3  ;;  %v206_v7 = vld [vmem:[%s9753_s3 + $0x28] sm:$0xff]  ;;  %v205_v10 = vld [vmem:[%s9753_s3 + $0x20] sm:$0xff]  ;;  %v203_v14 = vld [vmem:[%s9753_s3 + $0x10] sm:$0xff]  ;;  %v5706_v17 = vpack.c.bf16 %v208_v13, %v204_v11 }
   0x5   :  { %5673 = vmatpush3.bf16.msra.mxu0 %v5670_v3  ;;  %v5674_v8 = vpack.c.bf16 %v206_v7, %v202_v6  ;;  %v5676_v12 = vpack.c.bf16 %v205_v10, %v201_v9  ;;  %v207_v15 = vld [vmem:[%s9753_s3 + $0x30] sm:$0xff]  ;;  %v41_v16 = vld [vmem:[%s9752_s0 + $0x18] sm:$0xff]  ;;  %v210_v19 = vld [vmem:[%s9753_s3 + $0x48] sm:$0xff] }
   0x6   :  { %v5708_v18 = vpack.c.bf16 %v207_v15, %v203_v14  ;;  %v214_v20 = vld [vmem:[%s9753_s3 + $0x68] sm:$0xff]  ;;  %v209_v21 = vld [vmem:[%s9753_s3 + $0x40] sm:$0xff]  ;;  %v212_v25 = vld [vmem:[%s9753_s3 + $0x58] sm:$0xff]  ;;  %5707 = vmatprep.subr.bf16.mxu0 %v5706_v17 }
   0x7   :  { %5675 = vmatprep.subr.bf16.mxu1 %v5674_v8  ;;  %v42_v22 = vld [vmem:[%s9752_s0 + $0x20] sm:$0xff]  ;;  %v5678_v23 = vpack.c.bf16 %v214_v20, %v210_v19  ;;  %v216_v26 = vld [vmem:[%s9753_s3 + $0x78] sm:$0xff]  ;;  %v211_v29 = vld [vmem:[%s9753_s3 + $0x50] sm:$0xff] }
   0x8   :  { %5624 = vmatmul.mubr.msk.f32.vlgmr.msra.gmra.mrb[0].mxu0 %vm55_vm0, %v39_v4  ;;  %5677 = vmatpush1.bf16.msra.mxu1 %v5676_v12  ;;  %v213_v24 = vld [vmem:[%s9753_s3 + $0x60] sm:$0xff]  ;;  %v5710_v28 = vpack.c.bf16 %v216_v26, %v212_v25  ;;  %v215_v30 = vld [vmem:[%s9753_s3 + $0x70] sm:$0xff]  ;;  %v218_v31 = vld [vmem:[%s9753_s3 + $0x88] sm:$0xff] }
   0x9   :  { %5626 = vmatprep.mubr.msk.f32.mxu0 %vm55_vm0, %v40_v5  ;;  %v5680_v27 = vpack.c.bf16 %v213_v24, %v209_v21  ;;  %5709 = vmatpush1.bf16.msra.mxu0 %v5708_v18  ;;  %v5712_v32 = vpack.c.bf16 %v215_v30, %v211_v29  ;;  %v222_v33 = vld [vmem:[%s9753_s3 + $0xa8] sm:$0xff]  ;;  %v217_v34 = vld [vmem:[%s9753_s3 + $0x80] sm:$0xff]  ;;  %v220_v38 = vld [vmem:[%s9753_s3 + $0x98] sm:$0xff] }
   0xa   :  { %5679 = vmatprep.subr.bf16.mxu1 %v5678_v23  ;;  %v221_v35 = vld [vmem:[%s9753_s3 + $0xa0] sm:$0xff]  ;;  %v43_v36 = vld [vmem:[%s9752_s0 + $0x28] sm:$0xff]  ;;  %5711 = vmatprep.subr.bf16.mxu0 %v5710_v28  ;;  %v5682_v37 = vpack.c.bf16 %v222_v33, %v218_v31  ;;  %v224_v39 = vld [vmem:[%s9753_s3 + $0xb8] sm:$0xff] }
   0xb   :  { %v219_v40 = vld [vmem:[%s9753_s3 + $0x90] sm:$0xff]  ;;  %v5684_v41 = vpack.c.bf16 %v221_v35, %v217_v34  ;;  %v5714_v42 = vpack.c.bf16 %v224_v39, %v220_v38  ;;  %v226_v44 = vld [vmem:[%s9753_s3 + $0xc8] sm:$0xff]  ;;  %v225_v47 = vld [vmem:[%s9753_s3 + $0xc0] sm:$0xff] }
   0xc   :  { %5627 = vmatmul.mubr.msk.f32.gmra.mrb[2].mxu0 %vm55_vm0, %v41_v16  ;;  %5681 = vmatpush1.bf16.msra.mxu1 %v5680_v27  ;;  %v223_v43 = vld [vmem:[%s9753_s3 + $0xb0] sm:$0xff]  ;;  %v230_v45 = vld [vmem:[%s9753_s3 + $0xe8] sm:$0xff]  ;;  %v229_v48 = vld [vmem:[%s9753_s3 + $0xe0] sm:$0xff] }
   0xd   :  { %5629 = vmatprep.mubr.msk.f32.mxu0 %vm55_vm0, %v42_v22  ;;  %5683 = vmatprep.subr.bf16.mxu1 %v5682_v37  ;;  %v5686_v46 = vpack.c.bf16 %v230_v45, %v226_v44  ;;  %v228_v49 = vld [vmem:[%s9753_s3 + $0xd8] sm:$0xff]  ;;  %v44_v50 = vld [vmem:[%s9752_s0 + $0x30] sm:$0xff]  ;;  %v5716_v51 = vpack.c.bf16 %v223_v43, %v219_v40  ;;  %v234_v56 = vld [vmem:[%s9753_s3 + $0x108] sm:$0xff]  ;;  %v5688_v58 = vpack.c.bf16 %v229_v48, %v225_v47  ;;  %v7237_v48 = vmov 0.0  }
   0xe   :  { %5713 = vmatpush1.bf16.msra.mxu0 %v5712_v32  ;;  %v232_v52 = vld [vmem:[%s9753_s3 + $0xf8] sm:$0xff]  ;;  %v227_v53 = vld [vmem:[%s9753_s3 + $0xd0] sm:$0xff]  ;;  %v238_v57 = vld [vmem:[%s9753_s3 + $0x128] sm:$0xff]  ;;  %351 = vmatprep.mubr.f32.mxu1 %v7237_v48 }
   0xf   :  { %5715 = vmatprep.subr.bf16.mxu0 %v5714_v42  ;;  %v5718_v54 = vpack.c.bf16 %v232_v52, %v228_v49  ;;  %v231_v55 = vld [vmem:[%s9753_s3 + $0xf0] sm:$0xff]  ;;  %v236_v59 = vld [vmem:[%s9753_s3 + $0x118] sm:$0xff]  ;;  %v5690_v62 = vpack.c.bf16 %v238_v57, %v234_v56  ;;  %v233_v63 = vld [vmem:[%s9753_s3 + $0x100] sm:$0xff] }
  0x10   :  { %5630 = vmatmul.mubr.msk.f32.gmra.mrb[4].mxu0 %vm55_vm0, %v43_v36  ;;  %5685 = vmatpush1.bf16.msra.mxu1 %v5684_v41  ;;  %v240_v60 = vld [vmem:[%s9753_s3 + $0x138] sm:$0xff]  ;;  %v237_v0 = vld [vmem:[%s9753_s3 + $0x120] sm:$0xff]  ;;  %v5720_v1 = vpack.c.bf16 %v231_v55, %v227_v53  ;;  %v242_v2 = vld [vmem:[%s9753_s3 + $0x148] sm:$0xff] }
  0x11   :  { %5632 = vmatprep.mubr.msk.f32.mxu0 %vm55_vm0, %v44_v50  ;;  %v45_v61 = vld [vmem:[%s9752_s0 + $0x38] sm:$0xff]  ;;  %5687 = vmatprep.subr.bf16.mxu1 %v5686_v46  ;;  %v246_v3 = vld [vmem:[%s9753_s3 + $0x168] sm:$0xff]  ;;  %v5722_v4 = vpack.c.bf16 %v240_v60, %v236_v59  ;;  %v235_v5 = vld [vmem:[%s9753_s3 + $0x110] sm:$0xff]  ;;  %v5692_v7 = vpack.c.bf16 %v237_v0, %v233_v63 }
  0x12   :  { %5717 = vmatpush1.bf16.msra.mxu0 %v5716_v51  ;;  %v239_v6 = vld [vmem:[%s9753_s3 + $0x130] sm:$0xff]  ;;  %v244_v8 = vld [vmem:[%s9753_s3 + $0x158] sm:$0xff]  ;;  %v5694_v10 = vpack.c.bf16 %v246_v3, %v242_v2  ;;  %v241_v11 = vld [vmem:[%s9753_s3 + $0x140] sm:$0xff] }
  0x13   :  { %5719 = vmatprep.subr.bf16.mxu0 %v5718_v54  ;;  %v248_v9 = vld [vmem:[%s9753_s3 + $0x178] sm:$0xff]  ;;  %v245_v12 = vld [vmem:[%s9753_s3 + $0x160] sm:$0xff]  ;;  %v5724_v13 = vpack.c.bf16 %v239_v6, %v235_v5  ;;  %v250_v14 = vld [vmem:[%s9753_s3 + $0x188] sm:$0xff] }
  0x14   :  { %5633 = vmatmul.mubr.msk.f32.gmra.mrb[6].mxu0 %vm55_vm0, %v45_v61  ;;  %5689 = vmatpush1.bf16.msra.mxu1 %v5688_v58  ;;  %v254_v15 = vld [vmem:[%s9753_s3 + $0x1a8] sm:$0xff]  ;;  %v5726_v16 = vpack.c.bf16 %v248_v9, %v244_v8  ;;  %v243_v17 = vld [vmem:[%s9753_s3 + $0x150] sm:$0xff]  ;;  %v5696_v19 = vpack.c.bf16 %v245_v12, %v241_v11  ;;  %v252_v20 = vld [vmem:[%s9753_s3 + $0x198] sm:$0xff] }
  0x15   :  { %5691 = vmatprep.subr.bf16.mxu1 %v5690_v62  ;;  %v247_v18 = vld [vmem:[%s9753_s3 + $0x170] sm:$0xff]  ;;  %v256_v21 = vld [vmem:[%s9753_s3 + $0x1b8] sm:$0xff]  ;;  %v5698_v22 = vpack.c.bf16 %v254_v15, %v250_v14  ;;  %v249_v23 = vld [vmem:[%s9753_s3 + $0x180] sm:$0xff]  ;;  %464 = vmatprep.mubr.f32.mxu0 %v7237_v48 }
  0x16   :  { %5721 = vmatpush1.bf16.msra.mxu0 %v5720_v1  ;;  %v253_v24 = vld [vmem:[%s9753_s3 + $0x1a0] sm:$0xff]  ;;  %v5728_v25 = vpack.c.bf16 %v247_v18, %v243_v17  ;;  %v258_v26 = vld [vmem:[%s9753_s3 + $0x1c8] sm:$0xff]  ;;  %v5730_v28 = vpack.c.bf16 %v256_v21, %v252_v20  ;;  %v251_v29 = vld [vmem:[%s9753_s3 + $0x190] sm:$0xff] }
  0x17   :  { %5723 = vmatprep.subr.bf16.mxu0 %v5722_v4  ;;  %v262_v27 = vld [vmem:[%s9753_s3 + $0x1e8] sm:$0xff]  ;;  %v255_v30 = vld [vmem:[%s9753_s3 + $0x1b0] sm:$0xff]  ;;  %v5700_v31 = vpack.c.bf16 %v253_v24, %v249_v23  ;;  %v260_v34 = vld [vmem:[%s9753_s3 + $0x1d8] sm:$0xff] }
  0x18   :  { %5693 = vmatpush1.bf16.msra.mxu1 %v5692_v7  ;;  %v5702_v32 = vpack.c.bf16 %v262_v27, %v258_v26  ;;  %v5732_v33 = vpack.c.bf16 %v255_v30, %v251_v29  ;;  %v264_v35 = vld [vmem:[%s9753_s3 + $0x1f8] sm:$0xff]  ;;  %v257_v36 = vld [vmem:[%s9753_s3 + $0x1c0] sm:$0xff]  ;;  %v259_v39 = vld [vmem:[%s9753_s3 + $0x1d0] sm:$0xff] }
  0x19   :  { %5695 = vmatprep.subr.bf16.mxu1 %v5694_v10  ;;  %v261_v37 = vld [vmem:[%s9753_s3 + $0x1e0] sm:$0xff]  ;;  %v5734_v38 = vpack.c.bf16 %v264_v35, %v260_v34  ;;  %v263_v41 = vld [vmem:[%s9753_s3 + $0x1f0] sm:$0xff]  ;;  %v556_v43 = vld [vmem:[%s9754_s4 + $0x8] sm:$0xff] }
  0x1a   :  { %5725 = vmatpush1.bf16.msra.mxu0 %v5724_v13  ;;  %v5704_v40 = vpack.c.bf16 %v261_v37, %v257_v36  ;;  %v5736_v42 = vpack.c.bf16 %v263_v41, %v259_v39  ;;  %v560_v44 = vld [vmem:[%s9754_s4 + $0x28] sm:$0xff]  ;;  %v558_v45 = vld [vmem:[%s9754_s4 + $0x18] sm:$0xff]  ;;  %v555_v50 = vld [vmem:[%s9754_s4] sm:$0xff] }
  0x1b   :  { %5727 = vmatprep.subr.bf16.mxu0 %v5726_v16  ;;  %v7544_v46 = vpack.c.bf16 %v560_v44, %v556_v43  ;;  %v562_v47 = vld [vmem:[%s9754_s4 + $0x38] sm:$0xff]  ;;  %v559_v51 = vld [vmem:[%s9754_s4 + $0x20] sm:$0xff]  ;;  %v557_v52 = vld [vmem:[%s9754_s4 + $0x10] sm:$0xff] }
  0x1c   :  { %5697 = vmatpush1.bf16.msra.mxu1 %v5696_v19  ;;  %v7551_v49 = vpack.c.bf16 %v562_v47, %v558_v45  ;;  %v561_v53 = vld [vmem:[%s9754_s4 + $0x30] sm:$0xff]  ;;  %v7570_v54 = vld [vmem:[%s9755_s2] ss:$0 sm:$0xff]  ;;  %v564_v55 = vld [vmem:[%s9754_s4 + $0x48] sm:$0xff]  ;;  %v7584_v61 = vpack.c.bf16 %v559_v51, %v555_v50 }
  0x1d   :  { %5699 = vmatprep.subr.bf16.mxu1 %v5698_v22  ;;  %v568_v57 = vld [vmem:[%s9754_s4 + $0x68] sm:$0xff]  ;;  %v566_v58 = vld [vmem:[%s9754_s4 + $0x58] sm:$0xff]  ;;  %v7586_v62 = vpack.c.bf16 %v561_v53, %v557_v52  ;;  %v563_v63 = vld [vmem:[%s9754_s4 + $0x40] sm:$0xff] }
  0x1e   :  { %5729 = vmatpush1.bf16.msra.mxu0 %v5728_v25  ;;  %v570_v59 = vld [vmem:[%s9754_s4 + $0x78] sm:$0xff]  ;;  %v567_v1 = vld [vmem:[%s9754_s4 + $0x60] sm:$0xff]  ;;  %v565_v2 = vld [vmem:[%s9754_s4 + $0x50] sm:$0xff]  ;;  %v7601_v4 = vpack.c.bf16 %v568_v57, %v564_v55 }
  0x1f   :  { %5731 = vmatprep.subr.bf16.mxu0 %v5730_v28  ;;  %v569_v3 = vld [vmem:[%s9754_s4 + $0x70] sm:$0xff]  ;;  %v7603_v5 = vpack.c.bf16 %v570_v59, %v566_v58  ;;  %v572_v6 = vld [vmem:[%s9754_s4 + $0x88] sm:$0xff]  ;;  %v574_v9 = vld [vmem:[%s9754_s4 + $0x98] sm:$0xff]  ;;  %v7619_v12 = vpack.c.bf16 %v567_v1, %v563_v63 }
  0x20   :  { %5701 = vmatpush1.bf16.msra.mxu1 %v5700_v31  ;;  %v576_v8 = vld [vmem:[%s9754_s4 + $0xa8] sm:$0xff]  ;;  %v578_v10 = vld [vmem:[%s9754_s4 + $0xb8] sm:$0xff]  ;;  %v7621_v13 = vpack.c.bf16 %v569_v3, %v565_v2  ;;  %v571_v14 = vld [vmem:[%s9754_s4 + $0x80] sm:$0xff] }
  0x21   :  { %5703 = vmatprep.subr.bf16.mxu1 %v5702_v32  ;;  %v575_v16 = vld [vmem:[%s9754_s4 + $0xa0] sm:$0xff]  ;;  %v573_v17 = vld [vmem:[%s9754_s4 + $0x90] sm:$0xff]  ;;  %v7640_v19 = vpack.c.bf16 %v576_v8, %v572_v6  ;;  %v7642_v20 = vpack.c.bf16 %v578_v10, %v574_v9  ;;  %v580_v21 = vld [vmem:[%s9754_s4 + $0xc8] sm:$0xff] }
  0x22   :  { %5733 = vmatpush1.bf16.msra.mxu0 %v5732_v33  ;;  %v577_v18 = vld [vmem:[%s9754_s4 + $0xb0] sm:$0xff]  ;;  %v584_v24 = vld [vmem:[%s9754_s4 + $0xe8] sm:$0xff]  ;;  %v582_v25 = vld [vmem:[%s9754_s4 + $0xd8] sm:$0xff]  ;;  %v7661_v27 = vpack.c.bf16 %v575_v16, %v571_v14 }
  0x23   :  { %5735 = vmatprep.subr.bf16.mxu0 %v5734_v38  ;;  %v586_v26 = vld [vmem:[%s9754_s4 + $0xf8] sm:$0xff]  ;;  %v7663_v28 = vpack.c.bf16 %v577_v18, %v573_v17  ;;  %v579_v30 = vld [vmem:[%s9754_s4 + $0xc0] sm:$0xff]  ;;  %v581_v32 = vld [vmem:[%s9754_s4 + $0xd0] sm:$0xff]  ;;  %v7681_v34 = vpack.c.bf16 %v584_v24, %v580_v21 }
  0x24   :  { %5705 = vmatpush1.bf16.msra.mxu1 %v5704_v40  ;;  %v583_v31 = vld [vmem:[%s9754_s4 + $0xe0] sm:$0xff]  ;;  %v585_v33 = vld [vmem:[%s9754_s4 + $0xf0] sm:$0xff]  ;;  %v7683_v35 = vpack.c.bf16 %v586_v26, %v582_v25  ;;  %v588_v36 = vld [vmem:[%s9754_s4 + $0x108] sm:$0xff] }
  0x25   :  { %5739 = vmatprep.subr.bf16.mxu1 %v7544_v46  ;;  %v592_v37 = vld [vmem:[%s9754_s4 + $0x128] sm:$0xff]  ;;  %v590_v38 = vld [vmem:[%s9754_s4 + $0x118] sm:$0xff]  ;;  %v7701_v41 = vpack.c.bf16 %v583_v31, %v579_v30  ;;  %v587_v43 = vld [vmem:[%s9754_s4 + $0x100] sm:$0xff] }
  0x26   :  { %5737 = vmatpush1.bf16.msra.mxu0 %v5736_v42  ;;  %v594_v39 = vld [vmem:[%s9754_s4 + $0x138] sm:$0xff]  ;;  %v7703_v42 = vpack.c.bf16 %v585_v33, %v581_v32  ;;  %v591_v47 = vld [vmem:[%s9754_s4 + $0x120] sm:$0xff]  ;;  %v589_v50 = vld [vmem:[%s9754_s4 + $0x110] sm:$0xff]  ;;  %v7722_v52 = vpack.c.bf16 %v592_v37, %v588_v36 }
  0x27   :  { %5771 = vmatprep.subr.bf16.mxu0 %v7551_v49  ;;  %v593_v51 = vld [vmem:[%s9754_s4 + $0x130] sm:$0xff]  ;;  %v7724_v53 = vpack.c.bf16 %v594_v39, %v590_v38  ;;  %v596_v55 = vld [vmem:[%s9754_s4 + $0x148] sm:$0xff]  ;;  %v598_v58 = vld [vmem:[%s9754_s4 + $0x158] sm:$0xff] }
  0x28   :  { %v600_v57 = vld [vmem:[%s9754_s4 + $0x168] sm:$0xff]  ;;  %v602_v59 = vld [vmem:[%s9754_s4 + $0x178] sm:$0xff]  ;;  %v7743_v63 = vpack.c.bf16 %v593_v51, %v589_v50  ;;  %v599_v1 = vld [vmem:[%s9754_s4 + $0x160] sm:$0xff] }
  0x29   :  { %v597_v2 = vld [vmem:[%s9754_s4 + $0x150] sm:$0xff]  ;;  %v7761_v6 = vpack.c.bf16 %v600_v57, %v596_v55  ;;  %v604_v8 = vld [vmem:[%s9754_s4 + $0x188] sm:$0xff]  ;;  %v606_v10 = vld [vmem:[%s9754_s4 + $0x198] sm:$0xff] }
  0x2a   :  { %v601_v3 = vld [vmem:[%s9754_s4 + $0x170] sm:$0xff]  ;;  %v608_v9 = vld [vmem:[%s9754_s4 + $0x1a8] sm:$0xff]  ;;  %v603_v16 = vld [vmem:[%s9754_s4 + $0x180] sm:$0xff] }
  0x2b   :  { %v607_v18 = vld [vmem:[%s9754_s4 + $0x1a0] sm:$0xff]  ;;  %v605_v21 = vld [vmem:[%s9754_s4 + $0x190] sm:$0xff]  ;;  %v612_v25 = vld [vmem:[%s9754_s4 + $0x1c8] sm:$0xff] }
  0x2c   :  { %v614_v30 = vld [vmem:[%s9754_s4 + $0x1d8] sm:$0xff]  ;;  %v7820_v32 = vpack.c.bf16 %v607_v18, %v603_v16  ;;  %v611_v36 = vld [vmem:[%s9754_s4 + $0x1c0] sm:$0xff]  ;;  %v613_v38 = vld [vmem:[%s9754_s4 + $0x1d0] sm:$0xff] }
  0x2d   :  { %v618_v31 = vld [vmem:[%s9754_s4 + $0x1f8] sm:$0xff]  ;;  %v615_v37 = vld [vmem:[%s9754_s4 + $0x1e0] sm:$0xff]  ;;  %v617_v39 = vld [vmem:[%s9754_s4 + $0x1f0] sm:$0xff] }
  0x2e   :  { %v545_v51 = vld [vmem:[%s9756_s8] sm:$0xff] }
  0xdb   :  { %v5625_v56 = vpop.f32.mrb[0].mxu0 }
  0xdc   :  { %v146_v60 = vpop.f32.mrb[1].mxu0  ;;  %v152_v15 = vadd.f32 %v5625_v56, %v7570_v54 }
  0xdd   :  { %v147_v0 = vadd.f32 %v7570_v54, %v146_v60  ;;  %v7741_v60 = vpack.c.bf16 %v591_v47, %v587_v43  ;;  %v7848_v47 = vpack.c.bf16 %v617_v39, %v613_v38 }
  0xdf   :  { %352 = vmatmul.mubr.f32.vlgmr.msra.gmra.mrb[0].mxu1 %v147_v0  ;;  %465 = vmatmul.mubr.f32.vlgmr.msra.gmra.mrb[8].mxu0 %v147_v0  ;;  %v5628_v7 = vpop.f32.mrb[2].mxu0  ;;  %v595_v0 = vld [vmem:[%s9754_s4 + $0x140] sm:$0xff] }
  0xe0   :  { %5741 = vmatpush1.bf16.msra.mxu1 %v7584_v61  ;;  %5773 = vmatpush1.bf16.msra.mxu0 %v7586_v62  ;;  %v156_v11 = vpop.f32.mrb[3].mxu0  ;;  %v162_v45 = vadd.f32 %v5628_v7, %v7570_v54  ;;  %v7763_v7 = vpack.c.bf16 %v602_v59, %v598_v58  ;;  %v7779_v14 = vpack.c.bf16 %v599_v1, %v595_v0 }
  0xe1   :  { %357 = vmatprep.mubr.f32.mxu1 %v7237_v48  ;;  %470 = vmatprep.mubr.f32.mxu0 %v7237_v48  ;;  %v157_v22 = vadd.f32 %v7570_v54, %v156_v11  ;;  %v610_v11 = vld [vmem:[%s9754_s4 + $0x1b8] sm:$0xff] }
  0xe2   :  { %5743 = vmatprep.subr.bf16.mxu1 %v7601_v4  ;;  %5775 = vmatprep.subr.bf16.mxu0 %v7603_v5  ;;  %v7803_v24 = vpack.c.bf16 %v610_v11, %v606_v10 }
  0xe3   :  { %358 = vmatmul.mubr.f32.gmra.mrb[2].mxu1 %v152_v15  ;;  %471 = vmatmul.mubr.f32.gmra.mrb[10].mxu0 %v152_v15  ;;  %v7648_v23 = vpop.f32.mrb[4].mxu0  ;;  %v7781_v15 = vpack.c.bf16 %v601_v3, %v597_v2 }
  0xe4   :  { %5745 = vmatpush1.bf16.msra.mxu1 %v7619_v12  ;;  %5777 = vmatpush1.bf16.msra.mxu0 %v7621_v13  ;;  %v166_v29 = vpop.f32.mrb[5].mxu0  ;;  %v172_v17 = vadd.f32 %v7648_v23, %v7570_v54  ;;  %v7801_v23 = vpack.c.bf16 %v608_v9, %v604_v8 }
  0xe5   :  { %363 = vmatprep.mubr.f32.mxu1 %v7237_v48  ;;  %476 = vmatprep.mubr.f32.mxu0 %v7237_v48  ;;  %v167_v56 = vadd.f32 %v7570_v54, %v166_v29  ;;  %v616_v29 = vld [vmem:[%s9754_s4 + $0x1e8] sm:$0xff] }
  0xe6   :  { %5747 = vmatprep.subr.bf16.mxu1 %v7640_v19  ;;  %5779 = vmatprep.subr.bf16.mxu0 %v7642_v20  ;;  %v7840_v43 = vpack.c.bf16 %v616_v29, %v612_v25 }
  0xe7   :  { %364 = vmatmul.mubr.f32.gmra.mrb[4].mxu1 %v157_v22  ;;  %477 = vmatmul.mubr.f32.gmra.mrb[12].mxu0 %v157_v22  ;;  %v7697_v40 = vpop.f32.mrb[6].mxu0  ;;  %v609_v22 = vld [vmem:[%s9754_s4 + $0x1b0] sm:$0xff] }
  0xe8   :  { %5749 = vmatpush1.bf16.msra.mxu1 %v7661_v27  ;;  %5781 = vmatpush1.bf16.msra.mxu0 %v7663_v28  ;;  %v176_v44 = vpop.f32.mrb[7].mxu0  ;;  %v7822_v33 = vpack.c.bf16 %v609_v22, %v605_v21  ;;  %v182_v50 = vadd.f32 %v7697_v40, %v7570_v54 }
  0xe9   :  { %369 = vmatprep.mubr.f32.mxu1 %v7237_v48  ;;  %482 = vmatprep.mubr.f32.mxu0 %v7237_v48  ;;  %v177_v26 = vadd.f32 %v7570_v54, %v176_v44  ;;  %v7842_v44 = vpack.c.bf16 %v618_v31, %v614_v30  ;;  %v267_v54 = vlaneseq }
  0xea   :  { %5751 = vmatprep.subr.bf16.mxu1 %v7681_v34  ;;  %5783 = vmatprep.subr.bf16.mxu0 %v7683_v35 }
  0xeb   :  { %370 = vmatmul.mubr.f32.gmra.mrb[6].mxu1 %v162_v45  ;;  %483 = vmatmul.mubr.f32.gmra.mrb[14].mxu0 %v162_v45  ;;  %v7846_v45 = vpack.c.bf16 %v615_v37, %v611_v36  ;;  %v7899_v40 = vshrl.u32 %v267_v54, 7  ;;  %v547_v37 = vld [vmem:[%s9758_s9] sm:$0xff] }
  0xec   :  { %5753 = vmatpush1.bf16.msra.mxu1 %v7701_v41  ;;  %5785 = vmatpush1.bf16.msra.mxu0 %v7703_v42 }
  0xed   :  { %375 = vmatprep.mubr.f32.mxu1 %v7237_v48  ;;  %488 = vmatprep.mubr.f32.mxu0 %v7237_v48  ;;  %v269_v55 = vsub.s32 0, %v7899_v40  ;;  %v273_v57 = vsub.s32 1, %v7899_v40  ;;  %v281_v0 = vsub.s32 3, %v7899_v40  ;;  %v277_v16 = vsub.s32 2, %v7899_v40 }
  0xee   :  { %5755 = vmatprep.subr.bf16.mxu1 %v7722_v52  ;;  %5787 = vmatprep.subr.bf16.mxu0 %v7724_v53 }
  0xef   :  { %376 = vmatmul.mubr.f32.gmra.mrb[8].mxu1 %v167_v56  ;;  %489 = vmatmul.mubr.f32.gmra.mrb[16].mxu0 %v167_v56  ;;  %v265_v56 = vld [vmem:[%s9757_s5] ss:$2 sm:$0xf] }
  0xf0   :  { %5757 = vmatpush1.bf16.msra.mxu1 %v7741_v60  ;;  %5789 = vmatpush1.bf16.msra.mxu0 %v7743_v63  ;;  %v7908_v58 = vrot.slane %v265_v56, %v269_v55  ;;  %v7919_v11 = vrot.slane %v265_v56, %v281_v0  ;;  %v7925_v18 = vrot.slane %v265_v56, %v277_v16 }
  0xf1   :  { %381 = vmatprep.mubr.f32.mxu1 %v7237_v48  ;;  %494 = vmatprep.mubr.f32.mxu0 %v7237_v48 }
  0xf2   :  { %5759 = vmatprep.subr.bf16.mxu1 %v7761_v6  ;;  %5791 = vmatprep.subr.bf16.mxu0 %v7763_v7 }
  0xf3   :  { %382 = vmatmul.mubr.f32.gmra.mrb[10].mxu1 %v172_v17  ;;  %495 = vmatmul.mubr.f32.gmra.mrb[18].mxu0 %v172_v17 }
  0xf4   :  { %5761 = vmatpush1.bf16.msra.mxu1 %v7779_v14  ;;  %5793 = vmatpush1.bf16.msra.mxu0 %v7781_v15 }
  0xf5   :  { %387 = vmatprep.mubr.f32.mxu1 %v7237_v48  ;;  %500 = vmatprep.mubr.f32.mxu0 %v7237_v48 }
  0xf6   :  { %5763 = vmatprep.subr.bf16.mxu1 %v7801_v23  ;;  %5795 = vmatprep.subr.bf16.mxu0 %v7803_v24 }
  0xf7   :  { %388 = vmatmul.mubr.f32.gmra.mrb[12].mxu1 %v177_v26  ;;  %501 = vmatmul.mubr.f32.gmra.mrb[20].mxu0 %v177_v26 }
  0xf8   :  { %5765 = vmatpush1.bf16.msra.mxu1 %v7820_v32  ;;  %5797 = vmatpush1.bf16.msra.mxu0 %v7822_v33 }
  0xf9   :  { %393 = vmatprep.mubr.f32.mxu1 %v7237_v48  ;;  %506 = vmatprep.mubr.f32.mxu0 %v7237_v48 }
  0xfa   :  { %5767 = vmatprep.subr.bf16.mxu1 %v7840_v43  ;;  %5799 = vmatprep.subr.bf16.mxu0 %v7842_v44 }
  0xfb   :  { %394 = vmatmul.mubr.f32.gmra.mrb[14].mxu1 %v182_v50  ;;  %507 = vmatmul.mubr.f32.gmra.mrb[22].mxu0 %v182_v50 }
  0xfc   :  { %5769 = vmatpush1.bf16.msra.mxu1 %v7846_v45  ;;  %5801 = vmatpush1.bf16.msra.mxu0 %v7848_v47 }
  0xfd   :  { %683 = vmatprep.mubr.f32.mxu1 %v7237_v48  ;;  %754 = vmatprep.mubr.f32.mxu0 %v7237_v48 }
  0xfe   :  { %5803 = vmatprep.subr.bf16.mxu1 %v7544_v46  ;;  %5835 = vmatprep.subr.bf16.mxu0 %v7551_v49 }
  0xff   :  { %684 = vmatmul.mubr.f32.vlgmr.msra.gmra.mrb[0].mxu1 %v545_v51  ;;  %755 = vmatmul.mubr.f32.vlgmr.msra.gmra.mrb[8].mxu0 %v545_v51 }
 0x100   :  { %5805 = vmatpush1.bf16.msra.mxu1 %v7584_v61  ;;  %5837 = vmatpush1.bf16.msra.mxu0 %v7586_v62 }
 0x101   :  { %5807 = vmatprep.subr.bf16.mxu1 %v7601_v4  ;;  %5839 = vmatprep.subr.bf16.mxu0 %v7603_v5 }
 0x102   :  { %927 = vmatprep.mubr.f32.mxu1 %v7237_v48  ;;  %998 = vmatprep.mubr.f32.mxu0 %v7237_v48 }
 0x104   :  { %5809 = vmatpush1.bf16.msra.mxu1 %v7619_v12  ;;  %5841 = vmatpush1.bf16.msra.mxu0 %v7621_v13 }
 0x105   :  { %5811 = vmatprep.subr.bf16.mxu1 %v7640_v19  ;;  %5843 = vmatprep.subr.bf16.mxu0 %v7642_v20 }
 0x108   :  { %5813 = vmatpush1.bf16.msra.mxu1 %v7661_v27  ;;  %5845 = vmatpush1.bf16.msra.mxu0 %v7663_v28 }
 0x109   :  { %5815 = vmatprep.subr.bf16.mxu1 %v7681_v34  ;;  %5847 = vmatprep.subr.bf16.mxu0 %v7683_v35 }
 0x10c   :  { %5817 = vmatpush1.bf16.msra.mxu1 %v7701_v41  ;;  %5849 = vmatpush1.bf16.msra.mxu0 %v7703_v42 }
 0x10d   :  { %5819 = vmatprep.subr.bf16.mxu1 %v7722_v52  ;;  %5851 = vmatprep.subr.bf16.mxu0 %v7724_v53 }
 0x110   :  { %5821 = vmatpush1.bf16.msra.mxu1 %v7741_v60  ;;  %5853 = vmatpush1.bf16.msra.mxu0 %v7743_v63 }
 0x111   :  { %5823 = vmatprep.subr.bf16.mxu1 %v7761_v6  ;;  %5855 = vmatprep.subr.bf16.mxu0 %v7763_v7 }
 0x114   :  { %5825 = vmatpush1.bf16.msra.mxu1 %v7779_v14  ;;  %5857 = vmatpush1.bf16.msra.mxu0 %v7781_v15 }
 0x115   :  { %5827 = vmatprep.subr.bf16.mxu1 %v7801_v23  ;;  %5859 = vmatprep.subr.bf16.mxu0 %v7803_v24 }
 0x118   :  { %5829 = vmatpush1.bf16.msra.mxu1 %v7820_v32  ;;  %5861 = vmatpush1.bf16.msra.mxu0 %v7822_v33 }
 0x119   :  { %5831 = vmatprep.subr.bf16.mxu1 %v7840_v43  ;;  %5863 = vmatprep.subr.bf16.mxu0 %v7842_v44 }
 0x11c   :  { %5833 = vmatpush1.bf16.msra.mxu1 %v7846_v45  ;;  %5865 = vmatpush1.bf16.msra.mxu0 %v7848_v47 }
 0x11d   :  { %5867 = vmatprep.subr.bf16.mxu1 %v7544_v46  ;;  %5899 = vmatprep.subr.bf16.mxu0 %v7551_v49  ;;  %v7912_v46 = vrot.slane %v265_v56, %v273_v57 }
 0x1d2   :  { %v685_v49 = vpop.f32.mrb[0].mxu1  ;;  %v756_v59 = vpop.f32.mrb[8].mxu0 }
 0x1d3   :  { %v6850_v1 = vadd.f32 %v685_v49, %v7908_v58  ;;  %v687_v2 = vpop.f32.mrb[1].mxu1  ;;  %v758_v3 = vpop.f32.mrb[9].mxu0  ;;  %v6866_v22 = vadd.f32 %v756_v59, %v7925_v18 }
 0x1d4   :  { %v6851_v8 = vadd.f32 %v687_v2, %v7912_v46  ;;  %v6867_v17 = vadd.f32 %v758_v3, %v7919_v11 }
 0x1d5   :  { %v4930_v9 = vmul.f32 -1.442695, %v6850_v1 }
 0x1d6   :  { %v4931_v10 = vmul.f32 -1.442695, %v6851_v8  ;;  %v4932_v21 = vmul.f32 -1.442695, %v6867_v17  ;;  %v1294_v17 = vld [vmem:[%s9754_s4 + $0x28] sm:$0xff] }
 0x1d7   :  { %6981 = vpow2.f32 %v4930_v9 }
 0x1d8   :  { %6983 = vpow2.f32 %v4931_v10  ;;  %v1290_v10 = vld [vmem:[%s9754_s4 + $0x8] sm:$0xff] }
 0x1d9   :  { %6985 = vpow2.f32 %v4932_v21  ;;  %v1292_v21 = vld [vmem:[%s9754_s4 + $0x18] sm:$0xff] }
 0x1da   :  { %6987 = vtanh.f32 %v6866_v22  ;;  %v7993_v22 = vpack.c.bf16 %v1294_v17, %v1290_v10 }
 0x1e1   :  { %v6982_v25 = vpop.eup %6981 }
 0x1e2   :  { %v6984_v26 = vpop.eup %6983  ;;  %v774_v29 = vadd.f32 1.0, %v6982_v25  ;;  %v1296_v25 = vld [vmem:[%s9754_s4 + $0x38] sm:$0xff] }
 0x1e3   :  { %v775_v30 = vadd.f32 1.0, %v6984_v26  ;;  %v6986_v31 = vpop.eup %6985  ;;  %v1289_v26 = vld [vmem:[%s9754_s4] sm:$0xff] }
 0x1e4   :  { %6989 = vrcp.f32 %v774_v29  ;;  %v6988_v36 = vpop.eup %6987  ;;  %v776_v51 = vadd.f32 1.0, %v6986_v31  ;;  %v1293_v29 = vld [vmem:[%s9754_s4 + $0x20] sm:$0xff] }
 0x1e5   :  { %6991 = vrcp.f32 %v775_v30  ;;  %v8004_v30 = vpack.c.bf16 %v1296_v25, %v1292_v21  ;;  %v8006_v31 = vpack.c.bf16 %v1293_v29, %v1289_v26  ;;  %v1315_v21 = vld [vmem:[%s9754_s4 + $0xd0] sm:$0xff]  ;;  %v1322_v29 = vld [vmem:[%s9754_s4 + $0x108] sm:$0xff] }
 0x1e6   :  { %6993 = vrcp.f32 %v776_v51  ;;  %v1300_v51 = vld [vmem:[%s9754_s4 + $0x58] sm:$0xff]  ;;  %v1319_v25 = vld [vmem:[%s9754_s4 + $0xf0] sm:$0xff] }
 0x1e7   :  { %v8123_v26 = vpack.c.bf16 %v1319_v25, %v1315_v21 }
 0x1ee   :  { %v6990_v38 = vpop.eup %6989 }
 0x1ef   :  { %v6992_v39 = vpop.eup %6991  ;;  %v785_v50 = vmul.f32 %v6990_v38, %v6988_v36  ;;  %v1291_v36 = vld [vmem:[%s9754_s4 + $0x10] sm:$0xff] }
 0x1f0   :  { %v784_v54 = vmul.f32 %v6992_v39, %v547_v37  ;;  %v6994_v49 = vpop.eup %6993  ;;  %v1295_v37 = vld [vmem:[%s9754_s4 + $0x30] sm:$0xff]  ;;  %v1298_v39 = vld [vmem:[%s9754_s4 + $0x48] sm:$0xff] }
 0x1f1   :  { %v8015_v38 = vpack.c.bf16 %v1295_v37, %v1291_v36  ;;  %v1326_v36 = vld [vmem:[%s9754_s4 + $0x128] sm:$0xff]  ;;  %v1324_v37 = vld [vmem:[%s9754_s4 + $0x118] sm:$0xff] }
 0x1f2   :  { %v7931_v56 = vadd.f32 %v785_v50, %v784_v54  ;;  %v1302_v50 = vld [vmem:[%s9754_s4 + $0x68] sm:$0xff] }
 0x1f3   :  { %v8029_v54 = vpack.c.bf16 %v1302_v50, %v1298_v39  ;;  %v8137_v39 = vpack.c.bf16 %v1326_v36, %v1322_v29  ;;  %v1328_v50 = vld [vmem:[%s9754_s4 + $0x138] sm:$0xff] }
 0x1f4   :  { %6995 = vtanh.f32 %v7931_v56 }
 0x1fe   :  { %v6996_v59 = vpop.eup %6995 }
 0x1ff   :  { %v7934_v1 = vmul.f32 %v6996_v59, %v6994_v49  ;;  %v1297_v49 = vld [vmem:[%s9754_s4 + $0x40] sm:$0xff] }
 0x200   :  { %v1301_v59 = vld [vmem:[%s9754_s4 + $0x60] sm:$0xff] }
 0x201   :  { %928 = vmatmul.mubr.f32.vlgmr.msra.gmra.mrb[2].mxu1 %v7934_v1  ;;  %999 = vmatmul.mubr.f32.vlgmr.msra.gmra.mrb[10].mxu0 %v7934_v1 }
 0x202   :  { %5869 = vmatpush1.bf16.msra.mxu1 %v7584_v61  ;;  %5901 = vmatpush1.bf16.msra.mxu0 %v7586_v62 }
 0x203   :  { %5871 = vmatprep.subr.bf16.mxu1 %v7601_v4  ;;  %5903 = vmatprep.subr.bf16.mxu0 %v7603_v5 }
 0x204   :  { %1172 = vmatprep.mubr.f32.mxu1 %v7237_v48  ;;  %1243 = vmatprep.mubr.f32.mxu0 %v7237_v48 }
 0x206   :  { %5873 = vmatpush1.bf16.msra.mxu1 %v7619_v12  ;;  %5905 = vmatpush1.bf16.msra.mxu0 %v7621_v13 }
 0x207   :  { %5875 = vmatprep.subr.bf16.mxu1 %v7640_v19  ;;  %5907 = vmatprep.subr.bf16.mxu0 %v7642_v20 }
 0x20a   :  { %5877 = vmatpush1.bf16.msra.mxu1 %v7661_v27  ;;  %5909 = vmatpush1.bf16.msra.mxu0 %v7663_v28 }
 0x20b   :  { %5879 = vmatprep.subr.bf16.mxu1 %v7681_v34  ;;  %5911 = vmatprep.subr.bf16.mxu0 %v7683_v35 }
 0x20e   :  { %5881 = vmatpush1.bf16.msra.mxu1 %v7701_v41  ;;  %5913 = vmatpush1.bf16.msra.mxu0 %v7703_v42 }
 0x20f   :  { %5883 = vmatprep.subr.bf16.mxu1 %v7722_v52  ;;  %5915 = vmatprep.subr.bf16.mxu0 %v7724_v53 }
 0x212   :  { %5885 = vmatpush1.bf16.msra.mxu1 %v7741_v60  ;;  %5917 = vmatpush1.bf16.msra.mxu0 %v7743_v63 }
 0x213   :  { %5887 = vmatprep.subr.bf16.mxu1 %v7761_v6  ;;  %5919 = vmatprep.subr.bf16.mxu0 %v7763_v7 }
 0x216   :  { %5889 = vmatpush1.bf16.msra.mxu1 %v7779_v14  ;;  %5921 = vmatpush1.bf16.msra.mxu0 %v7781_v15 }
 0x217   :  { %5891 = vmatprep.subr.bf16.mxu1 %v7801_v23  ;;  %5923 = vmatprep.subr.bf16.mxu0 %v7803_v24 }
 0x21a   :  { %5893 = vmatpush1.bf16.msra.mxu1 %v7820_v32  ;;  %5925 = vmatpush1.bf16.msra.mxu0 %v7822_v33 }
 0x21b   :  { %5895 = vmatprep.subr.bf16.mxu1 %v7840_v43  ;;  %5927 = vmatprep.subr.bf16.mxu0 %v7842_v44 }
 0x21e   :  { %5897 = vmatpush1.bf16.msra.mxu1 %v7846_v45  ;;  %5929 = vmatpush1.bf16.msra.mxu0 %v7848_v47 }
 0x21f   :  { %5931 = vmatprep.subr.bf16.mxu1 %v7993_v22  ;;  %5963 = vmatprep.subr.bf16.mxu0 %v8004_v30 }
 0x2d4   :  { %v929_v61 = vpop.f32.mrb[2].mxu1  ;;  %v1000_v62 = vpop.f32.mrb[10].mxu0 }
 0x2d5   :  { %v6852_v4 = vadd.f32 %v929_v61, %v7908_v58  ;;  %v931_v5 = vpop.f32.mrb[3].mxu1  ;;  %v1002_v12 = vpop.f32.mrb[11].mxu0  ;;  %v6868_v34 = vadd.f32 %v1000_v62, %v7925_v18  ;;  %v8042_v62 = vpack.c.bf16 %v1301_v59, %v1297_v49  ;;  %v8148_v49 = vpack.c.bf16 %v1328_v50, %v1324_v37 }
 0x2d6   :  { %v6853_v13 = vadd.f32 %v931_v5, %v7912_v46  ;;  %v6869_v27 = vadd.f32 %v1002_v12, %v7919_v11  ;;  %v1303_v5 = vld [vmem:[%s9754_s4 + $0x70] sm:$0xff] }
 0x2d7   :  { %v4933_v19 = vmul.f32 -1.442695, %v6852_v4  ;;  %v1299_v4 = vld [vmem:[%s9754_s4 + $0x50] sm:$0xff] }
 0x2d8   :  { %v4934_v20 = vmul.f32 -1.442695, %v6853_v13  ;;  %v4935_v28 = vmul.f32 -1.442695, %v6869_v27  ;;  %v8051_v12 = vpack.c.bf16 %v1303_v5, %v1299_v4  ;;  %v1306_v13 = vld [vmem:[%s9754_s4 + $0x88] sm:$0xff]  ;;  %v1323_v4 = vld [vmem:[%s9754_s4 + $0x110] sm:$0xff] }
 0x2d9   :  { %6997 = vpow2.f32 %v4933_v19  ;;  %v1310_v19 = vld [vmem:[%s9754_s4 + $0xa8] sm:$0xff]  ;;  %v1327_v5 = vld [vmem:[%s9754_s4 + $0x130] sm:$0xff] }
 0x2da   :  { %6999 = vpow2.f32 %v4934_v20  ;;  %v1308_v20 = vld [vmem:[%s9754_s4 + $0x98] sm:$0xff]  ;;  %v8065_v27 = vpack.c.bf16 %v1310_v19, %v1306_v13  ;;  %v8159_v13 = vpack.c.bf16 %v1327_v5, %v1323_v4  ;;  %v1330_v19 = vld [vmem:[%s9754_s4 + $0x148] sm:$0xff] }
 0x2db   :  { %7001 = vpow2.f32 %v4935_v28  ;;  %v1312_v28 = vld [vmem:[%s9754_s4 + $0xb8] sm:$0xff] }
 0x2dc   :  { %7003 = vtanh.f32 %v6868_v34  ;;  %v1305_v34 = vld [vmem:[%s9754_s4 + $0x80] sm:$0xff] }
 0x2e3   :  { %v6998_v35 = vpop.eup %6997 }
 0x2e4   :  { %v7000_v41 = vpop.eup %6999  ;;  %v1018_v42 = vadd.f32 1.0, %v6998_v35  ;;  %v1309_v35 = vld [vmem:[%s9754_s4 + $0xa0] sm:$0xff] }
 0x2e5   :  { %v1019_v52 = vadd.f32 1.0, %v7000_v41  ;;  %v7002_v53 = vpop.eup %7001  ;;  %v8076_v41 = vpack.c.bf16 %v1312_v28, %v1308_v20  ;;  %v1334_v20 = vld [vmem:[%s9754_s4 + $0x168] sm:$0xff] }
 0x2e6   :  { %7005 = vrcp.f32 %v1018_v42  ;;  %v7004_v60 = vpop.eup %7003  ;;  %v1020_v15 = vadd.f32 1.0, %v7002_v53  ;;  %v8078_v42 = vpack.c.bf16 %v1309_v35, %v1305_v34  ;;  %v1311_v53 = vld [vmem:[%s9754_s4 + $0xb0] sm:$0xff]  ;;  %v8170_v28 = vpack.c.bf16 %v1334_v20, %v1330_v19  ;;  %v1329_v34 = vld [vmem:[%s9754_s4 + $0x140] sm:$0xff] }
 0x2e7   :  { %7007 = vrcp.f32 %v1019_v52  ;;  %v1307_v52 = vld [vmem:[%s9754_s4 + $0x90] sm:$0xff]  ;;  %v1333_v35 = vld [vmem:[%s9754_s4 + $0x160] sm:$0xff] }
 0x2e8   :  { %7009 = vrcp.f32 %v1020_v15 }
 0x2f0   :  { %v7006_v63 = vpop.eup %7005 }
 0x2f1   :  { %v7008_v6 = vpop.eup %7007  ;;  %v1029_v14 = vmul.f32 %v7006_v63, %v7004_v60  ;;  %v8087_v60 = vpack.c.bf16 %v1311_v53, %v1307_v52  ;;  %v1314_v63 = vld [vmem:[%s9754_s4 + $0xc8] sm:$0xff]  ;;  %v1331_v52 = vld [vmem:[%s9754_s4 + $0x150] sm:$0xff]  ;;  %v8182_v53 = vpack.c.bf16 %v1333_v35, %v1329_v34 }
 0x2f2   :  { %v1028_v32 = vmul.f32 %v7008_v6, %v7931_v56  ;;  %v7010_v3 = vpop.eup %7009  ;;  %v1304_v56 = vld [vmem:[%s9754_s4 + $0x78] sm:$0xff]  ;;  %v1318_v6 = vld [vmem:[%s9754_s4 + $0xe8] sm:$0xff] }
 0x2f3   :  { %v8040_v61 = vpack.c.bf16 %v1304_v56, %v1300_v51  ;;  %v8101_v15 = vpack.c.bf16 %v1318_v6, %v1314_v63  ;;  %v1321_v51 = vld [vmem:[%s9754_s4 + $0x100] sm:$0xff]  ;;  %v1335_v63 = vld [vmem:[%s9754_s4 + $0x170] sm:$0xff] }
 0x2f4   :  { %v7975_v2 = vadd.f32 %v1029_v14, %v1028_v32  ;;  %v1316_v14 = vld [vmem:[%s9754_s4 + $0xd8] sm:$0xff]  ;;  %v1325_v56 = vld [vmem:[%s9754_s4 + $0x120] sm:$0xff]  ;;  %v8188_v6 = vpack.c.bf16 %v1335_v63, %v1331_v52 }
 0x2f5   :  { %v1320_v32 = vld [vmem:[%s9754_s4 + $0xf8] sm:$0xff]  ;;  %v8150_v59 = vpack.c.bf16 %v1325_v56, %v1321_v51 }
 0x2f6   :  { %7011 = vtanh.f32 %v7975_v2  ;;  %v8112_v10 = vpack.c.bf16 %v1320_v32, %v1316_v14  ;;  %v1341_v14 = vld [vmem:[%s9754_s4 + $0x1a0] sm:$0xff] }
 0x300   :  { %v7012_v8 = vpop.eup %7011 }
 0x301   :  { %v7978_v9 = vmul.f32 %v7012_v8, %v7010_v3  ;;  %v1313_v3 = vld [vmem:[%s9754_s4 + $0xc0] sm:$0xff] }
 0x302   :  { %v1317_v8 = vld [vmem:[%s9754_s4 + $0xe0] sm:$0xff] }
 0x303   :  { %1173 = vmatmul.mubr.f32.vlgmr.msra.gmra.mrb[4].mxu1 %v7978_v9  ;;  %1244 = vmatmul.mubr.f32.vlgmr.msra.gmra.mrb[12].mxu0 %v7978_v9  ;;  %v8114_v17 = vpack.c.bf16 %v1317_v8, %v1313_v3 }
 0x304   :  { %1417 = vmatprep.mubr.f32.mxu1 %v7237_v48  ;;  %1488 = vmatprep.mubr.f32.mxu0 %v7237_v48 }
 0x305   :  { %5933 = vmatpush1.bf16.msra.mxu1 %v8006_v31  ;;  %5965 = vmatpush1.bf16.msra.mxu0 %v8015_v38 }
 0x306   :  { %5935 = vmatprep.subr.bf16.mxu1 %v8029_v54  ;;  %5967 = vmatprep.subr.bf16.mxu0 %v8040_v61 }
 0x309   :  { %5937 = vmatpush1.bf16.msra.mxu1 %v8042_v62  ;;  %5969 = vmatpush1.bf16.msra.mxu0 %v8051_v12 }
 0x30a   :  { %5939 = vmatprep.subr.bf16.mxu1 %v8065_v27  ;;  %5971 = vmatprep.subr.bf16.mxu0 %v8076_v41 }
 0x30d   :  { %5941 = vmatpush1.bf16.msra.mxu1 %v8078_v42  ;;  %5973 = vmatpush1.bf16.msra.mxu0 %v8087_v60 }
 0x30e   :  { %5943 = vmatprep.subr.bf16.mxu1 %v8101_v15  ;;  %5975 = vmatprep.subr.bf16.mxu0 %v8112_v10 }
 0x311   :  { %5945 = vmatpush1.bf16.msra.mxu1 %v8114_v17  ;;  %5977 = vmatpush1.bf16.msra.mxu0 %v8123_v26 }
 0x312   :  { %5947 = vmatprep.subr.bf16.mxu1 %v8137_v39  ;;  %5979 = vmatprep.subr.bf16.mxu0 %v8148_v49 }
 0x315   :  { %5949 = vmatpush1.bf16.msra.mxu1 %v8150_v59  ;;  %5981 = vmatpush1.bf16.msra.mxu0 %v8159_v13 }
 0x316   :  { %5983 = vmatprep.subr.bf16.mxu0 %v7763_v7  ;;  %5951 = vmatprep.subr.bf16.mxu1 %v8170_v28  ;;  %v1337_v7 = vld [vmem:[%s9754_s4 + $0x180] sm:$0xff] }
 0x317   :  { %v8200_v32 = vpack.c.bf16 %v1341_v14, %v1337_v7  ;;  %v1581_v14 = vld [vmem:[%s9754_s4 + $0x178] sm:$0xff] }
 0x319   :  { %5953 = vmatpush1.bf16.msra.mxu1 %v8182_v53  ;;  %5985 = vmatpush1.bf16.msra.mxu0 %v8188_v6 }
 0x31a   :  { %5955 = vmatprep.subr.bf16.mxu1 %v7801_v23  ;;  %5987 = vmatprep.subr.bf16.mxu0 %v7803_v24 }
 0x31d   :  { %5957 = vmatpush1.bf16.msra.mxu1 %v8200_v32  ;;  %5989 = vmatpush1.bf16.msra.mxu0 %v7822_v33 }
 0x31e   :  { %5959 = vmatprep.subr.bf16.mxu1 %v7840_v43  ;;  %5991 = vmatprep.subr.bf16.mxu0 %v7842_v44 }
 0x321   :  { %5961 = vmatpush1.bf16.msra.mxu1 %v7846_v45  ;;  %5993 = vmatpush1.bf16.msra.mxu0 %v7848_v47 }
 0x322   :  { %5995 = vmatprep.subr.bf16.mxu1 %v7993_v22  ;;  %6027 = vmatprep.subr.bf16.mxu0 %v8004_v30 }
 0x3d6   :  { %v1174_v23 = vpop.f32.mrb[4].mxu1  ;;  %v1245_v24 = vpop.f32.mrb[12].mxu0 }
 0x3d7   :  { %v6854_v3 = vadd.f32 %v1174_v23, %v7908_v58  ;;  %v1176_v8 = vpop.f32.mrb[5].mxu1  ;;  %v1247_v21 = vpop.f32.mrb[13].mxu0  ;;  %v6870_v47 = vadd.f32 %v1245_v24, %v7925_v18  ;;  %v1583_v24 = vld [vmem:[%s9754_s4 + $0x188] sm:$0xff] }
 0x3d8   :  { %v6855_v33 = vadd.f32 %v1176_v8, %v7912_v46  ;;  %v6871_v44 = vadd.f32 %v1247_v21, %v7919_v11  ;;  %v1585_v8 = vld [vmem:[%s9754_s4 + $0x198] sm:$0xff] }
 0x3d9   :  { %v4936_v25 = vmul.f32 -1.442695, %v6854_v3  ;;  %v1587_v3 = vld [vmem:[%s9754_s4 + $0x1a8] sm:$0xff] }
 0x3da   :  { %v4937_v43 = vmul.f32 -1.442695, %v6855_v33  ;;  %v4938_v45 = vmul.f32 -1.442695, %v6871_v44  ;;  %v8263_v21 = vpack.c.bf16 %v1587_v3, %v1583_v24  ;;  %v1589_v33 = vld [vmem:[%s9754_s4 + $0x1b8] sm:$0xff] }
 0x3db   :  { %7013 = vpow2.f32 %v4936_v25  ;;  %v1584_v25 = vld [vmem:[%s9754_s4 + $0x190] sm:$0xff]  ;;  %v8274_v44 = vpack.c.bf16 %v1589_v33, %v1585_v8 }
 0x3dc   :  { %7015 = vpow2.f32 %v4937_v43  ;;  %v1588_v43 = vld [vmem:[%s9754_s4 + $0x1b0] sm:$0xff] }
 0x3dd   :  { %7017 = vpow2.f32 %v4938_v45  ;;  %v8276_v45 = vpack.c.bf16 %v1588_v43, %v1584_v25 }
 0x3de   :  { %7019 = vtanh.f32 %v6870_v47  ;;  %v1591_v47 = vld [vmem:[%s9754_s4 + $0x1c8] sm:$0xff] }
 0x3e5   :  { %v7014_v29 = vpop.eup %7013 }
 0x3e6   :  { %v7016_v36 = vpop.eup %7015  ;;  %v1263_v37 = vadd.f32 1.0, %v7014_v29  ;;  %v1595_v29 = vld [vmem:[%s9754_s4 + $0x1e8] sm:$0xff] }
 0x3e7   :  { %v1264_v50 = vadd.f32 1.0, %v7016_v36  ;;  %v7018_v51 = vpop.eup %7017  ;;  %v1593_v36 = vld [vmem:[%s9754_s4 + $0x1d8] sm:$0xff] }
 0x3e8   :  { %7021 = vrcp.f32 %v1263_v37  ;;  %v7020_v56 = vpop.eup %7019  ;;  %v1265_v20 = vadd.f32 1.0, %v7018_v51  ;;  %v8291_v37 = vpack.c.bf16 %v1595_v29, %v1591_v47  ;;  %v1590_v51 = vld [vmem:[%s9754_s4 + $0x1c0] sm:$0xff] }
 0x3e9   :  { %7023 = vrcp.f32 %v1264_v50  ;;  %v1597_v50 = vld [vmem:[%s9754_s4 + $0x1f8] sm:$0xff] }
 0x3ea   :  { %7025 = vrcp.f32 %v1265_v20  ;;  %v1596_v20 = vld [vmem:[%s9754_s4 + $0x1f0] sm:$0xff] }
 0x3f2   :  { %v7022_v4 = vpop.eup %7021 }
 0x3f3   :  { %v7024_v5 = vpop.eup %7023  ;;  %v1274_v19 = vmul.f32 %v7022_v4, %v7020_v56  ;;  %v1594_v56 = vld [vmem:[%s9754_s4 + $0x1e0] sm:$0xff]  ;;  %v8302_v4 = vpack.c.bf16 %v1597_v50, %v1593_v36 }
 0x3f4   :  { %v1273_v34 = vmul.f32 %v7024_v5, %v7975_v2  ;;  %v7026_v52 = vpop.eup %7025  ;;  %v1577_v2 = vld [vmem:[%s9754_s4 + $0x158] sm:$0xff]  ;;  %v8304_v5 = vpack.c.bf16 %v1594_v56, %v1590_v51 }
 0x3f5   :  { %v8250_v23 = vpack.c.bf16 %v1581_v14, %v1577_v2 }
 0x3f6   :  { %v8215_v35 = vadd.f32 %v1274_v19, %v1273_v34  ;;  %v1592_v19 = vld [vmem:[%s9754_s4 + $0x1d0] sm:$0xff] }
 0x3f7   :  { %v8313_v34 = vpack.c.bf16 %v1596_v20, %v1592_v19 }
 0x3f8   :  { %7027 = vtanh.f32 %v8215_v35 }
 0x402   :  { %v7028_v63 = vpop.eup %7027 }
 0x403   :  { %v8218_v7 = vmul.f32 %v7028_v63, %v7026_v52 }
 0x405   :  { %1418 = vmatmul.mubr.f32.vlgmr.msra.gmra.mrb[6].mxu1 %v8218_v7  ;;  %1489 = vmatmul.mubr.f32.vlgmr.msra.gmra.mrb[14].mxu0 %v8218_v7 }
 0x406   :  { %5997 = vmatpush1.bf16.msra.mxu1 %v8006_v31  ;;  %6029 = vmatpush1.bf16.msra.mxu0 %v8015_v38 }
 0x407   :  { %5999 = vmatprep.subr.bf16.mxu1 %v8029_v54  ;;  %6031 = vmatprep.subr.bf16.mxu0 %v8040_v61 }
 0x408   :  { %1662 = vmatprep.mubr.f32.mxu1 %v7237_v48  ;;  %1733 = vmatprep.mubr.f32.mxu0 %v7237_v48 }
 0x40a   :  { %6001 = vmatpush1.bf16.msra.mxu1 %v8042_v62  ;;  %6033 = vmatpush1.bf16.msra.mxu0 %v8051_v12 }
 0x40b   :  { %6003 = vmatprep.subr.bf16.mxu1 %v8065_v27  ;;  %6035 = vmatprep.subr.bf16.mxu0 %v8076_v41 }
 0x40e   :  { %6005 = vmatpush1.bf16.msra.mxu1 %v8078_v42  ;;  %6037 = vmatpush1.bf16.msra.mxu0 %v8087_v60 }
 0x40f   :  { %6007 = vmatprep.subr.bf16.mxu1 %v8101_v15  ;;  %6039 = vmatprep.subr.bf16.mxu0 %v8112_v10 }
 0x412   :  { %6009 = vmatpush1.bf16.msra.mxu1 %v8114_v17  ;;  %6041 = vmatpush1.bf16.msra.mxu0 %v8123_v26 }
 0x413   :  { %6011 = vmatprep.subr.bf16.mxu1 %v8137_v39  ;;  %6043 = vmatprep.subr.bf16.mxu0 %v8148_v49 }
 0x416   :  { %6013 = vmatpush1.bf16.msra.mxu1 %v8150_v59  ;;  %6045 = vmatpush1.bf16.msra.mxu0 %v8159_v13 }
 0x417   :  { %6015 = vmatprep.subr.bf16.mxu1 %v8170_v28  ;;  %6047 = vmatprep.subr.bf16.mxu0 %v8250_v23 }
 0x41a   :  { %6017 = vmatpush1.bf16.msra.mxu1 %v8182_v53  ;;  %6049 = vmatpush1.bf16.msra.mxu0 %v8188_v6 }
 0x41b   :  { %6019 = vmatprep.subr.bf16.mxu1 %v8263_v21  ;;  %6051 = vmatprep.subr.bf16.mxu0 %v8274_v44 }
 0x41e   :  { %6021 = vmatpush1.bf16.msra.mxu1 %v8200_v32  ;;  %6053 = vmatpush1.bf16.msra.mxu0 %v8276_v45 }
 0x41f   :  { %6023 = vmatprep.subr.bf16.mxu1 %v8291_v37  ;;  %6055 = vmatprep.subr.bf16.mxu0 %v8302_v4 }
 0x422   :  { %6025 = vmatpush1.bf16.msra.mxu1 %v8304_v5  ;;  %6057 = vmatpush1.bf16.msra.mxu0 %v8313_v34 }
 0x423   :  { %6059 = vmatprep.subr.bf16.mxu1 %v7993_v22  ;;  %6091 = vmatprep.subr.bf16.mxu0 %v8004_v30 }
 0x4d8   :  { %v1419_v52 = vpop.f32.mrb[6].mxu1  ;;  %v1490_v63 = vpop.f32.mrb[14].mxu0 }
 0x4d9   :  { %v6856_v2 = vadd.f32 %v1419_v52, %v7908_v58  ;;  %v1421_v14 = vpop.f32.mrb[7].mxu1  ;;  %v1492_v24 = vpop.f32.mrb[15].mxu0  ;;  %v6872_v47 = vadd.f32 %v1490_v63, %v7925_v18 }
 0x4da   :  { %v6857_v3 = vadd.f32 %v1421_v14, %v7912_v46  ;;  %v6873_v25 = vadd.f32 %v1492_v24, %v7919_v11 }
 0x4db   :  { %v4939_v8 = vmul.f32 -1.442695, %v6856_v2 }
 0x4dc   :  { %v4940_v33 = vmul.f32 -1.442695, %v6857_v3  ;;  %v4941_v43 = vmul.f32 -1.442695, %v6873_v25 }
 0x4dd   :  { %7029 = vpow2.f32 %v4939_v8 }
 0x4de   :  { %7031 = vpow2.f32 %v4940_v33 }
 0x4df   :  { %7033 = vpow2.f32 %v4941_v43 }
 0x4e0   :  { %7035 = vtanh.f32 %v6872_v47 }
 0x4e7   :  { %v7030_v29 = vpop.eup %7029 }
 0x4e8   :  { %v7032_v36 = vpop.eup %7031  ;;  %v1508_v50 = vadd.f32 1.0, %v7030_v29 }
 0x4e9   :  { %v1509_v51 = vadd.f32 1.0, %v7032_v36  ;;  %v7034_v56 = vpop.eup %7033 }
 0x4ea   :  { %7037 = vrcp.f32 %v1508_v50  ;;  %v7036_v19 = vpop.eup %7035  ;;  %v1510_v14 = vadd.f32 1.0, %v7034_v56 }
 0x4eb   :  { %7039 = vrcp.f32 %v1509_v51 }
 0x4ec   :  { %7041 = vrcp.f32 %v1510_v14 }
 0x4f4   :  { %v7038_v20 = vpop.eup %7037 }
 0x4f5   :  { %v7040_v52 = vpop.eup %7039  ;;  %v1519_v2 = vmul.f32 %v7038_v20, %v7036_v19 }
 0x4f6   :  { %v1518_v3 = vmul.f32 %v7040_v52, %v8215_v35  ;;  %v7042_v63 = vpop.eup %7041 }
 0x4f8   :  { %v8325_v24 = vadd.f32 %v1519_v2, %v1518_v3 }
 0x4fa   :  { %7043 = vtanh.f32 %v8325_v24 }
 0x504   :  { %v7044_v8 = vpop.eup %7043 }
 0x505   :  { %v8328_v33 = vmul.f32 %v7044_v8, %v7042_v63 }
 0x507   :  { %1663 = vmatmul.mubr.f32.vlgmr.msra.gmra.mrb[8].mxu1 %v8328_v33  ;;  %1734 = vmatmul.mubr.f32.vlgmr.msra.gmra.mrb[16].mxu0 %v8328_v33 }
 0x508   :  { %6061 = vmatpush1.bf16.msra.mxu1 %v8006_v31  ;;  %6093 = vmatpush1.bf16.msra.mxu0 %v8015_v38 }
 0x509   :  { %6063 = vmatprep.subr.bf16.mxu1 %v8029_v54  ;;  %6095 = vmatprep.subr.bf16.mxu0 %v8040_v61 }
 0x50a   :  { %1907 = vmatprep.mubr.f32.mxu1 %v7237_v48  ;;  %1978 = vmatprep.mubr.f32.mxu0 %v7237_v48 }
 0x50c   :  { %6065 = vmatpush1.bf16.msra.mxu1 %v8042_v62  ;;  %6097 = vmatpush1.bf16.msra.mxu0 %v8051_v12 }
 0x50d   :  { %6067 = vmatprep.subr.bf16.mxu1 %v8065_v27  ;;  %6099 = vmatprep.subr.bf16.mxu0 %v8076_v41 }
 0x510   :  { %6069 = vmatpush1.bf16.msra.mxu1 %v8078_v42  ;;  %6101 = vmatpush1.bf16.msra.mxu0 %v8087_v60 }
 0x511   :  { %6071 = vmatprep.subr.bf16.mxu1 %v8101_v15  ;;  %6103 = vmatprep.subr.bf16.mxu0 %v8112_v10 }
 0x514   :  { %6073 = vmatpush1.bf16.msra.mxu1 %v8114_v17  ;;  %6105 = vmatpush1.bf16.msra.mxu0 %v8123_v26 }
 0x515   :  { %6075 = vmatprep.subr.bf16.mxu1 %v8137_v39  ;;  %6107 = vmatprep.subr.bf16.mxu0 %v8148_v49 }
 0x518   :  { %6077 = vmatpush1.bf16.msra.mxu1 %v8150_v59  ;;  %6109 = vmatpush1.bf16.msra.mxu0 %v8159_v13 }
 0x519   :  { %6079 = vmatprep.subr.bf16.mxu1 %v8170_v28  ;;  %6111 = vmatprep.subr.bf16.mxu0 %v8250_v23 }
 0x51c   :  { %6081 = vmatpush1.bf16.msra.mxu1 %v8182_v53  ;;  %6113 = vmatpush1.bf16.msra.mxu0 %v8188_v6 }
 0x51d   :  { %6083 = vmatprep.subr.bf16.mxu1 %v8263_v21  ;;  %6115 = vmatprep.subr.bf16.mxu0 %v8274_v44 }
 0x520   :  { %6085 = vmatpush1.bf16.msra.mxu1 %v8200_v32  ;;  %6117 = vmatpush1.bf16.msra.mxu0 %v8276_v45 }
 0x521   :  { %6087 = vmatprep.subr.bf16.mxu1 %v8291_v37  ;;  %6119 = vmatprep.subr.bf16.mxu0 %v8302_v4 }
 0x524   :  { %6089 = vmatpush1.bf16.msra.mxu1 %v8304_v5  ;;  %6121 = vmatpush1.bf16.msra.mxu0 %v8313_v34 }
 0x525   :  { %6123 = vmatprep.subr.bf16.mxu1 %v7993_v22  ;;  %6155 = vmatprep.subr.bf16.mxu0 %v8004_v30 }
 0x5da   :  { %v1664_v35 = vpop.f32.mrb[8].mxu1  ;;  %v1735_v25 = vpop.f32.mrb[16].mxu0 }
 0x5db   :  { %v6858_v43 = vadd.f32 %v1664_v35, %v7908_v58  ;;  %v1666_v47 = vpop.f32.mrb[9].mxu1  ;;  %v1737_v29 = vpop.f32.mrb[17].mxu0  ;;  %v6874_v20 = vadd.f32 %v1735_v25, %v7925_v18 }
 0x5dc   :  { %v6859_v36 = vadd.f32 %v1666_v47, %v7912_v46  ;;  %v6875_v56 = vadd.f32 %v1737_v29, %v7919_v11 }
 0x5dd   :  { %v4942_v50 = vmul.f32 -1.442695, %v6858_v43 }
 0x5de   :  { %v4943_v51 = vmul.f32 -1.442695, %v6859_v36  ;;  %v4944_v19 = vmul.f32 -1.442695, %v6875_v56 }
 0x5df   :  { %7045 = vpow2.f32 %v4942_v50 }
 0x5e0   :  { %7047 = vpow2.f32 %v4943_v51 }
 0x5e1   :  { %7049 = vpow2.f32 %v4944_v19 }
 0x5e2   :  { %7051 = vtanh.f32 %v6874_v20  ;;  %v2270_v20 = vld [vmem:[%s9754_s4 + $0x8] sm:$0xff] }
 0x5e9   :  { %v7046_v22 = vpop.eup %7045 }
 0x5ea   :  { %v7048_v52 = vpop.eup %7047  ;;  %v1753_v30 = vadd.f32 1.0, %v7046_v22  ;;  %v2274_v22 = vld [vmem:[%s9754_s4 + $0x28] sm:$0xff] }
 0x5eb   :  { %v1754_v2 = vadd.f32 1.0, %v7048_v52  ;;  %v7050_v14 = vpop.eup %7049  ;;  %v2272_v52 = vld [vmem:[%s9754_s4 + $0x18] sm:$0xff] }
 0x5ec   :  { %7053 = vrcp.f32 %v1753_v30  ;;  %v7052_v3 = vpop.eup %7051  ;;  %v1755_v43 = vadd.f32 1.0, %v7050_v14  ;;  %v6186_v30 = vpack.c.bf16 %v2274_v22, %v2270_v20  ;;  %v2269_v14 = vld [vmem:[%s9754_s4] sm:$0xff]  ;;  %v2300_v22 = vld [vmem:[%s9754_s4 + $0xf8] sm:$0xff] }
 0x5ed   :  { %7055 = vrcp.f32 %v1754_v2  ;;  %v2276_v2 = vld [vmem:[%s9754_s4 + $0x38] sm:$0xff] }
 0x5ee   :  { %7057 = vrcp.f32 %v1755_v43  ;;  %v2275_v43 = vld [vmem:[%s9754_s4 + $0x30] sm:$0xff] }
 0x5f6   :  { %v7054_v63 = vpop.eup %7053 }
 0x5f7   :  { %v7056_v8 = vpop.eup %7055  ;;  %v1764_v35 = vmul.f32 %v7054_v63, %v7052_v3  ;;  %v2273_v3 = vld [vmem:[%s9754_s4 + $0x20] sm:$0xff]  ;;  %v6218_v63 = vpack.c.bf16 %v2276_v2, %v2272_v52 }
 0x5f8   :  { %v1763_v47 = vmul.f32 %v7056_v8, %v8325_v24  ;;  %v7058_v25 = vpop.eup %7057  ;;  %v6188_v8 = vpack.c.bf16 %v2273_v3, %v2269_v14  ;;  %v2293_v52 = vld [vmem:[%s9754_s4 + $0xc0] sm:$0xff]  ;;  %v2295_v3 = vld [vmem:[%s9754_s4 + $0xd0] sm:$0xff] }
 0x5fa   :  { %v8371_v29 = vadd.f32 %v1764_v35, %v1763_v47  ;;  %v2271_v35 = vld [vmem:[%s9754_s4 + $0x10] sm:$0xff] }
 0x5fb   :  { %v6220_v47 = vpack.c.bf16 %v2275_v43, %v2271_v35  ;;  %v2302_v35 = vld [vmem:[%s9754_s4 + $0x108] sm:$0xff] }
 0x5fc   :  { %7059 = vtanh.f32 %v8371_v29  ;;  %v2306_v43 = vld [vmem:[%s9754_s4 + $0x128] sm:$0xff] }
 0x606   :  { %v7060_v36 = vpop.eup %7059 }
 0x607   :  { %v8374_v50 = vmul.f32 %v7060_v36, %v7058_v25  ;;  %v2282_v25 = vld [vmem:[%s9754_s4 + $0x68] sm:$0xff]  ;;  %v2280_v36 = vld [vmem:[%s9754_s4 + $0x58] sm:$0xff] }
 0x609   :  { %1908 = vmatmul.mubr.f32.vlgmr.msra.gmra.mrb[10].mxu1 %v8374_v50  ;;  %1979 = vmatmul.mubr.f32.vlgmr.msra.gmra.mrb[18].mxu0 %v8374_v50 }
 0x60a   :  { %6125 = vmatpush1.bf16.msra.mxu1 %v8006_v31  ;;  %6157 = vmatpush1.bf16.msra.mxu0 %v8015_v38 }
 0x60b   :  { %6127 = vmatprep.subr.bf16.mxu1 %v8029_v54  ;;  %6159 = vmatprep.subr.bf16.mxu0 %v8040_v61 }
 0x60c   :  { %2152 = vmatprep.mubr.f32.mxu1 %v7237_v48  ;;  %2223 = vmatprep.mubr.f32.mxu0 %v7237_v48 }
 0x60e   :  { %6129 = vmatpush1.bf16.msra.mxu1 %v8042_v62  ;;  %6161 = vmatpush1.bf16.msra.mxu0 %v8051_v12 }
 0x60f   :  { %6131 = vmatprep.subr.bf16.mxu1 %v8065_v27  ;;  %6163 = vmatprep.subr.bf16.mxu0 %v8076_v41 }
 0x612   :  { %6133 = vmatpush1.bf16.msra.mxu1 %v8078_v42  ;;  %6165 = vmatpush1.bf16.msra.mxu0 %v8087_v60 }
 0x613   :  { %6135 = vmatprep.subr.bf16.mxu1 %v8101_v15  ;;  %6167 = vmatprep.subr.bf16.mxu0 %v8112_v10 }
 0x616   :  { %6137 = vmatpush1.bf16.msra.mxu1 %v8114_v17  ;;  %6169 = vmatpush1.bf16.msra.mxu0 %v8123_v26 }
 0x617   :  { %6139 = vmatprep.subr.bf16.mxu1 %v8137_v39  ;;  %6171 = vmatprep.subr.bf16.mxu0 %v8148_v49 }
 0x61a   :  { %6141 = vmatpush1.bf16.msra.mxu1 %v8150_v59  ;;  %6173 = vmatpush1.bf16.msra.mxu0 %v8159_v13 }
 0x61b   :  { %6143 = vmatprep.subr.bf16.mxu1 %v8170_v28  ;;  %6175 = vmatprep.subr.bf16.mxu0 %v8250_v23 }
 0x61e   :  { %6145 = vmatpush1.bf16.msra.mxu1 %v8182_v53  ;;  %6177 = vmatpush1.bf16.msra.mxu0 %v8188_v6 }
 0x61f   :  { %6147 = vmatprep.subr.bf16.mxu1 %v8263_v21  ;;  %6179 = vmatprep.subr.bf16.mxu0 %v8274_v44 }
 0x622   :  { %6149 = vmatpush1.bf16.msra.mxu1 %v8200_v32  ;;  %6181 = vmatpush1.bf16.msra.mxu0 %v8276_v45 }
 0x623   :  { %6151 = vmatprep.subr.bf16.mxu1 %v8291_v37  ;;  %6183 = vmatprep.subr.bf16.mxu0 %v8302_v4 }
 0x626   :  { %6153 = vmatpush1.bf16.msra.mxu1 %v8304_v5  ;;  %6185 = vmatpush1.bf16.msra.mxu0 %v8313_v34 }
 0x627   :  { %6187 = vmatprep.subr.bf16.mxu1 %v6186_v30  ;;  %6219 = vmatprep.subr.bf16.mxu0 %v6218_v63  ;;  %v2297_v30 = vld [vmem:[%s9754_s4 + $0xe0] sm:$0xff]  ;;  %v2299_v63 = vld [vmem:[%s9754_s4 + $0xf0] sm:$0xff] }
 0x628   :  { %v6200_v14 = vpack.c.bf16 %v2297_v30, %v2293_v52 }
 0x6dc   :  { %v1909_v31 = vpop.f32.mrb[10].mxu1  ;;  %v1980_v38 = vpop.f32.mrb[18].mxu0 }
 0x6dd   :  { %v6860_v54 = vadd.f32 %v1909_v31, %v7908_v58  ;;  %v1911_v61 = vpop.f32.mrb[11].mxu1  ;;  %v1982_v62 = vpop.f32.mrb[19].mxu0  ;;  %v6876_v15 = vadd.f32 %v1980_v38, %v7925_v18  ;;  %v2284_v38 = vld [vmem:[%s9754_s4 + $0x78] sm:$0xff] }
 0x6de   :  { %v6861_v12 = vadd.f32 %v1911_v61, %v7912_v46  ;;  %v6877_v42 = vadd.f32 %v1982_v62, %v7919_v11  ;;  %v2281_v61 = vld [vmem:[%s9754_s4 + $0x60] sm:$0xff]  ;;  %v6222_v62 = vpack.c.bf16 %v2284_v38, %v2280_v36 }
 0x6df   :  { %v4945_v27 = vmul.f32 -1.442695, %v6860_v54  ;;  %v2277_v54 = vld [vmem:[%s9754_s4 + $0x40] sm:$0xff] }
 0x6e0   :  { %v4946_v41 = vmul.f32 -1.442695, %v6861_v12  ;;  %v4947_v60 = vmul.f32 -1.442695, %v6877_v42  ;;  %v6192_v12 = vpack.c.bf16 %v2281_v61, %v2277_v54  ;;  %v2301_v36 = vld [vmem:[%s9754_s4 + $0x100] sm:$0xff]  ;;  %v2303_v61 = vld [vmem:[%s9754_s4 + $0x110] sm:$0xff] }
 0x6e1   :  { %7061 = vpow2.f32 %v4945_v27  ;;  %v2279_v27 = vld [vmem:[%s9754_s4 + $0x50] sm:$0xff] }
 0x6e2   :  { %7063 = vpow2.f32 %v4946_v41  ;;  %v2283_v41 = vld [vmem:[%s9754_s4 + $0x70] sm:$0xff] }
 0x6e3   :  { %7065 = vpow2.f32 %v4947_v60  ;;  %v6224_v42 = vpack.c.bf16 %v2283_v41, %v2279_v27  ;;  %v2286_v60 = vld [vmem:[%s9754_s4 + $0x88] sm:$0xff] }
 0x6e4   :  { %7067 = vtanh.f32 %v6876_v15  ;;  %v2290_v15 = vld [vmem:[%s9754_s4 + $0xa8] sm:$0xff] }
 0x6e5   :  { %v2310_v27 = vld [vmem:[%s9754_s4 + $0x148] sm:$0xff] }
 0x6e6   :  { %v2314_v41 = vld [vmem:[%s9754_s4 + $0x168] sm:$0xff] }
 0x6eb   :  { %v7062_v10 = vpop.eup %7061 }
 0x6ec   :  { %v7064_v17 = vpop.eup %7063  ;;  %v1998_v26 = vadd.f32 1.0, %v7062_v10  ;;  %v2288_v10 = vld [vmem:[%s9754_s4 + $0x98] sm:$0xff] }
 0x6ed   :  { %v1999_v39 = vadd.f32 1.0, %v7064_v17  ;;  %v7066_v49 = vpop.eup %7065  ;;  %v6194_v17 = vpack.c.bf16 %v2290_v15, %v2286_v60  ;;  %v2309_v60 = vld [vmem:[%s9754_s4 + $0x140] sm:$0xff] }
 0x6ee   :  { %7069 = vrcp.f32 %v1998_v26  ;;  %v7068_v59 = vpop.eup %7067  ;;  %v2000_v6 = vadd.f32 1.0, %v7066_v49  ;;  %v2292_v26 = vld [vmem:[%s9754_s4 + $0xb8] sm:$0xff]  ;;  %v2289_v49 = vld [vmem:[%s9754_s4 + $0xa0] sm:$0xff] }
 0x6ef   :  { %7071 = vrcp.f32 %v1999_v39  ;;  %v2285_v39 = vld [vmem:[%s9754_s4 + $0x80] sm:$0xff] }
 0x6f0   :  { %7073 = vrcp.f32 %v2000_v6  ;;  %v2313_v15 = vld [vmem:[%s9754_s4 + $0x160] sm:$0xff] }
 0x6f8   :  { %v7070_v13 = vpop.eup %7069 }
 0x6f9   :  { %v7072_v28 = vpop.eup %7071  ;;  %v2009_v53 = vmul.f32 %v7070_v13, %v7068_v59  ;;  %v6226_v59 = vpack.c.bf16 %v2292_v26, %v2288_v10  ;;  %v6196_v13 = vpack.c.bf16 %v2289_v49, %v2285_v39  ;;  %v2311_v10 = vld [vmem:[%s9754_s4 + $0x150] sm:$0xff]  ;;  %v2317_v49 = vld [vmem:[%s9754_s4 + $0x180] sm:$0xff] }
 0x6fa   :  { %v2008_v32 = vmul.f32 %v7072_v28, %v8371_v29  ;;  %v7074_v51 = vpop.eup %7073  ;;  %v2278_v29 = vld [vmem:[%s9754_s4 + $0x48] sm:$0xff]  ;;  %v2287_v28 = vld [vmem:[%s9754_s4 + $0x90] sm:$0xff] }
 0x6fb   :  { %v6190_v31 = vpack.c.bf16 %v2282_v25, %v2278_v29  ;;  %v6202_v29 = vpack.c.bf16 %v2306_v43, %v2302_v35  ;;  %v2308_v25 = vld [vmem:[%s9754_s4 + $0x138] sm:$0xff]  ;;  %v2315_v26 = vld [vmem:[%s9754_s4 + $0x170] sm:$0xff] }
 0x6fc   :  { %v8415_v24 = vadd.f32 %v2009_v53, %v2008_v32  ;;  %v2291_v53 = vld [vmem:[%s9754_s4 + $0xb0] sm:$0xff]  ;;  %v2294_v32 = vld [vmem:[%s9754_s4 + $0xc8] sm:$0xff]  ;;  %v6240_v39 = vpack.c.bf16 %v2315_v26, %v2311_v10  ;;  %v4962_v10 = vld [vmem:[%s9753_s3 + $0x240] sm:$0xff] }
 0x6fd   :  { %v6228_v6 = vpack.c.bf16 %v2291_v53, %v2287_v28 }
 0x6fe   :  { %7075 = vtanh.f32 %v8415_v24 }
 0x708   :  { %v7076_v56 = vpop.eup %7075 }
 0x709   :  { %v8418_v19 = vmul.f32 %v7076_v56, %v7074_v51  ;;  %v2298_v51 = vld [vmem:[%s9754_s4 + $0xe8] sm:$0xff]  ;;  %v2296_v56 = vld [vmem:[%s9754_s4 + $0xd8] sm:$0xff] }
 0x70a   :  { %v6198_v20 = vpack.c.bf16 %v2298_v51, %v2294_v32  ;;  %v6230_v2 = vpack.c.bf16 %v2300_v22, %v2296_v56 }
 0x70b   :  { %2153 = vmatmul.mubr.f32.vlgmr.msra.gmra.mrb[12].mxu1 %v8418_v19  ;;  %2224 = vmatmul.mubr.f32.vlgmr.msra.gmra.mrb[20].mxu0 %v8418_v19 }
 0x70c   :  { %2397 = vmatprep.mubr.f32.mxu1 %v7237_v48  ;;  %2468 = vmatprep.mubr.f32.mxu0 %v7237_v48 }
 0x70d   :  { %6189 = vmatpush1.bf16.msra.mxu1 %v6188_v8  ;;  %6221 = vmatpush1.bf16.msra.mxu0 %v6220_v47  ;;  %v6232_v8 = vpack.c.bf16 %v2299_v63, %v2295_v3  ;;  %v2304_v47 = vld [vmem:[%s9754_s4 + $0x118] sm:$0xff] }
 0x70e   :  { %6191 = vmatprep.subr.bf16.mxu1 %v6190_v31  ;;  %6223 = vmatprep.subr.bf16.mxu0 %v6222_v62  ;;  %v2305_v31 = vld [vmem:[%s9754_s4 + $0x120] sm:$0xff]  ;;  %v6234_v38 = vpack.c.bf16 %v2308_v25, %v2304_v47  ;;  %v2307_v62 = vld [vmem:[%s9754_s4 + $0x130] sm:$0xff] }
 0x70f   :  { %v6204_v54 = vpack.c.bf16 %v2305_v31, %v2301_v36  ;;  %v4954_v31 = vld [vmem:[%s9753_s3 + $0x200] sm:$0xff] }
 0x711   :  { %6193 = vmatpush1.bf16.msra.mxu1 %v6192_v12  ;;  %6225 = vmatpush1.bf16.msra.mxu0 %v6224_v42  ;;  %v6236_v12 = vpack.c.bf16 %v2307_v62, %v2303_v61  ;;  %v6206_v42 = vpack.c.bf16 %v2314_v41, %v2310_v27  ;;  %v4963_v61 = vld [vmem:[%s9753_s3 + $0x248] sm:$0xff]  ;;  %v4969_v27 = vld [vmem:[%s9753_s3 + $0x278] sm:$0xff] }
 0x712   :  { %6195 = vmatprep.subr.bf16.mxu1 %v6194_v17  ;;  %6227 = vmatprep.subr.bf16.mxu0 %v6226_v59  ;;  %v6208_v17 = vpack.c.bf16 %v2313_v15, %v2309_v60  ;;  %v2321_v59 = vld [vmem:[%s9754_s4 + $0x1a0] sm:$0xff]  ;;  %v4967_v62 = vld [vmem:[%s9753_s3 + $0x268] sm:$0xff] }
 0x715   :  { %6197 = vmatpush1.bf16.msra.mxu1 %v6196_v13  ;;  %6229 = vmatpush1.bf16.msra.mxu0 %v6228_v6  ;;  %v4959_v13 = vld [vmem:[%s9753_s3 + $0x228] sm:$0xff] }
 0x716   :  { %6199 = vmatprep.subr.bf16.mxu1 %v6198_v20  ;;  %6231 = vmatprep.subr.bf16.mxu0 %v6230_v2 }
 0x719   :  { %6201 = vmatpush1.bf16.msra.mxu1 %v6200_v14  ;;  %6233 = vmatpush1.bf16.msra.mxu0 %v6232_v8 }
 0x71a   :  { %6203 = vmatprep.subr.bf16.mxu1 %v6202_v29  ;;  %6235 = vmatprep.subr.bf16.mxu0 %v6234_v38  ;;  %v4958_v38 = vld [vmem:[%s9753_s3 + $0x220] sm:$0xff] }
 0x71b   :  { %v6252_v60 = vpack.c.bf16 %v4958_v38, %v4954_v31 }
 0x71d   :  { %6205 = vmatpush1.bf16.msra.mxu1 %v6204_v54  ;;  %6237 = vmatpush1.bf16.msra.mxu0 %v6236_v12  ;;  %v4956_v54 = vld [vmem:[%s9753_s3 + $0x210] sm:$0xff]  ;;  %v4965_v12 = vld [vmem:[%s9753_s3 + $0x258] sm:$0xff] }
 0x71e   :  { %6239 = vmatprep.subr.bf16.mxu0 %v8250_v23  ;;  %6207 = vmatprep.subr.bf16.mxu1 %v6206_v42  ;;  %v6212_v23 = vpack.c.bf16 %v2321_v59, %v2317_v49  ;;  %v6286_v49 = vpack.c.bf16 %v4969_v27, %v4965_v12  ;;  %v4964_v59 = vld [vmem:[%s9753_s3 + $0x250] sm:$0xff] }
 0x71f   :  { %v4988_v12 = vld [vmem:[%s9753_s3 + $0x310] sm:$0xff] }
 0x720   :  { %v4992_v27 = vld [vmem:[%s9753_s3 + $0x330] sm:$0xff] }
 0x721   :  { %6209 = vmatpush1.bf16.msra.mxu1 %v6208_v17  ;;  %6241 = vmatpush1.bf16.msra.mxu0 %v6240_v39  ;;  %v4966_v17 = vld [vmem:[%s9753_s3 + $0x260] sm:$0xff]  ;;  %v6254_v39 = vpack.c.bf16 %v4967_v62, %v4963_v61 }
 0x722   :  { %6211 = vmatprep.subr.bf16.mxu1 %v8263_v21  ;;  %6243 = vmatprep.subr.bf16.mxu0 %v8274_v44  ;;  %v4955_v21 = vld [vmem:[%s9753_s3 + $0x208] sm:$0xff]  ;;  %v4957_v44 = vld [vmem:[%s9753_s3 + $0x218] sm:$0xff] }
 0x725   :  { %6213 = vmatpush1.bf16.msra.mxu1 %v6212_v23  ;;  %6245 = vmatpush1.bf16.msra.mxu0 %v8276_v45  ;;  %v6250_v45 = vpack.c.bf16 %v4959_v13, %v4955_v21  ;;  %v4968_v23 = vld [vmem:[%s9753_s3 + $0x270] sm:$0xff]  ;;  %v4971_v21 = vld [vmem:[%s9753_s3 + $0x288] sm:$0xff] }
 0x726   :  { %6215 = vmatprep.subr.bf16.mxu1 %v8291_v37  ;;  %6247 = vmatprep.subr.bf16.mxu0 %v8302_v4  ;;  %v4961_v37 = vld [vmem:[%s9753_s3 + $0x238] sm:$0xff]  ;;  %v4975_v13 = vld [vmem:[%s9753_s3 + $0x2a8] sm:$0xff] }
 0x727   :  { %v6282_v4 = vpack.c.bf16 %v4961_v37, %v4957_v44  ;;  %v4973_v44 = vld [vmem:[%s9753_s3 + $0x298] sm:$0xff]  ;;  %v6256_v37 = vpack.c.bf16 %v4966_v17, %v4962_v10  ;;  %v6300_v17 = vpack.c.bf16 %v4992_v27, %v4988_v12  ;;  %v5038_v12 = vld [vmem:[%s9754_s4 + $0x268] sm:$0xff] }
 0x728   :  { %v5036_v27 = vld [vmem:[%s9754_s4 + $0x258] sm:$0xff] }
 0x729   :  { %6217 = vmatpush1.bf16.msra.mxu1 %v8304_v5  ;;  %6249 = vmatpush1.bf16.msra.mxu0 %v8313_v34 }
 0x72a   :  { %6251 = vmatprep.subr.bf16.mxu1 %v6250_v45  ;;  %6283 = vmatprep.subr.bf16.mxu0 %v6282_v4  ;;  %v4977_v45 = vld [vmem:[%s9753_s3 + $0x2b8] sm:$0xff]  ;;  %v6288_v4 = vpack.c.bf16 %v4968_v23, %v4964_v59 }
 0x7de   :  { %v2154_v5 = vpop.f32.mrb[12].mxu1  ;;  %v2225_v28 = vpop.f32.mrb[20].mxu0 }
 0x7df   :  { %v6862_v53 = vadd.f32 %v2154_v5, %v7908_v58  ;;  %v2156_v6 = vpop.f32.mrb[13].mxu1  ;;  %v2227_v32 = vpop.f32.mrb[21].mxu0  ;;  %v6878_v52 = vadd.f32 %v2225_v28, %v7925_v18  ;;  %v4970_v5 = vld [vmem:[%s9753_s3 + $0x280] sm:$0xff] }
 0x7e0   :  { %v6863_v51 = vadd.f32 %v2156_v6, %v7912_v46  ;;  %v6879_v34 = vadd.f32 %v2227_v32, %v7919_v11  ;;  %v4974_v28 = vld [vmem:[%s9753_s3 + $0x2a0] sm:$0xff]  ;;  %v6290_v6 = vpack.c.bf16 %v4977_v45, %v4973_v44  ;;  %v4972_v32 = vld [vmem:[%s9753_s3 + $0x290] sm:$0xff]  ;;  %v5003_v44 = vld [vmem:[%s9753_s3 + $0x388] sm:$0xff] }
 0x7e1   :  { %v4948_v56 = vmul.f32 -1.442695, %v6862_v53  ;;  %v6258_v53 = vpack.c.bf16 %v4975_v13, %v4971_v21  ;;  %v4996_v21 = vld [vmem:[%s9753_s3 + $0x350] sm:$0xff]  ;;  %v5007_v45 = vld [vmem:[%s9753_s3 + $0x3a8] sm:$0xff] }
 0x7e2   :  { %v4949_v20 = vmul.f32 -1.442695, %v6863_v51  ;;  %v4950_v22 = vmul.f32 -1.442695, %v6879_v34  ;;  %v4976_v51 = vld [vmem:[%s9753_s3 + $0x2b0] sm:$0xff]  ;;  %v4981_v34 = vld [vmem:[%s9753_s3 + $0x2d8] sm:$0xff] }
 0x7e3   :  { %7077 = vpow2.f32 %v4948_v56  ;;  %v4979_v56 = vld [vmem:[%s9753_s3 + $0x2c8] sm:$0xff]  ;;  %v5000_v13 = vld [vmem:[%s9753_s3 + $0x370] sm:$0xff] }
 0x7e4   :  { %7079 = vpow2.f32 %v4949_v20  ;;  %v4983_v20 = vld [vmem:[%s9753_s3 + $0x2e8] sm:$0xff] }
 0x7e5   :  { %7081 = vpow2.f32 %v4950_v22  ;;  %v4985_v22 = vld [vmem:[%s9753_s3 + $0x2f8] sm:$0xff] }
 0x7e6   :  { %7083 = vtanh.f32 %v6878_v52  ;;  %v6260_v52 = vpack.c.bf16 %v4974_v28, %v4970_v5  ;;  %v6304_v28 = vpack.c.bf16 %v5000_v13, %v4996_v21  ;;  %v5046_v21 = vld [vmem:[%s9754_s4 + $0x2a8] sm:$0xff]  ;;  %v5044_v13 = vld [vmem:[%s9754_s4 + $0x298] sm:$0xff] }
 0x7ed   :  { %v7078_v30 = vpop.eup %7077 }
 0x7ee   :  { %v7080_v2 = vpop.eup %7079  ;;  %v2243_v14 = vadd.f32 1.0, %v7078_v30  ;;  %v6292_v30 = vpack.c.bf16 %v4976_v51, %v4972_v32  ;;  %v6274_v32 = vpack.c.bf16 %v5007_v45, %v5003_v44  ;;  %v5041_v45 = vld [vmem:[%s9754_s4 + $0x280] sm:$0xff] }
 0x7ef   :  { %v2244_v3 = vadd.f32 1.0, %v7080_v2  ;;  %v7082_v63 = vpop.eup %7081  ;;  %v4978_v2 = vld [vmem:[%s9753_s3 + $0x2c0] sm:$0xff] }
 0x7f0   :  { %7085 = vrcp.f32 %v2243_v14  ;;  %v7084_v8 = vpop.eup %7083  ;;  %v2245_v29 = vadd.f32 1.0, %v7082_v63  ;;  %v4982_v14 = vld [vmem:[%s9753_s3 + $0x2e0] sm:$0xff]  ;;  %v6294_v63 = vpack.c.bf16 %v4985_v22, %v4981_v34  ;;  %v5011_v34 = vld [vmem:[%s9753_s3 + $0x3c8] sm:$0xff] }
 0x7f1   :  { %7087 = vrcp.f32 %v2244_v3  ;;  %v6262_v3 = vpack.c.bf16 %v4983_v20, %v4979_v56  ;;  %v6264_v31 = vpack.c.bf16 %v4982_v14, %v4978_v2  ;;  %v5004_v56 = vld [vmem:[%s9753_s3 + $0x390] sm:$0xff]  ;;  %v5015_v22 = vld [vmem:[%s9753_s3 + $0x3e8] sm:$0xff] }
 0x7f2   :  { %7089 = vrcp.f32 %v2245_v29  ;;  %v4989_v29 = vld [vmem:[%s9753_s3 + $0x318] sm:$0xff]  ;;  %v5008_v20 = vld [vmem:[%s9753_s3 + $0x3b0] sm:$0xff] }
 0x7f3   :  { %v6308_v14 = vpack.c.bf16 %v5008_v20, %v5004_v56  ;;  %v5054_v56 = vld [vmem:[%s9754_s4 + $0x2e8] sm:$0xff]  ;;  %v5052_v20 = vld [vmem:[%s9754_s4 + $0x2d8] sm:$0xff] }
 0x7fa   :  { %v7086_v35 = vpop.eup %7085 }
 0x7fb   :  { %v7088_v43 = vpop.eup %7087  ;;  %v2254_v47 = vmul.f32 %v7086_v35, %v7084_v8  ;;  %v4980_v8 = vld [vmem:[%s9753_s3 + $0x2d0] sm:$0xff] }
 0x7fc   :  { %v2253_v25 = vmul.f32 %v7088_v43, %v8415_v24  ;;  %v4960_v24 = vld [vmem:[%s9753_s3 + $0x230] sm:$0xff]  ;;  %v7090_v41 = vpop.eup %7089  ;;  %v4987_v43 = vld [vmem:[%s9753_s3 + $0x308] sm:$0xff] }
 0x7fd   :  { %v6284_v15 = vpack.c.bf16 %v4960_v24, %v4956_v54  ;;  %v4984_v35 = vld [vmem:[%s9753_s3 + $0x2f0] sm:$0xff]  ;;  %v4986_v54 = vld [vmem:[%s9753_s3 + $0x300] sm:$0xff] }
 0x7fe   :  { %v8593_v36 = vadd.f32 %v2254_v47, %v2253_v25  ;;  %v4991_v47 = vld [vmem:[%s9753_s3 + $0x328] sm:$0xff]  ;;  %v4993_v25 = vld [vmem:[%s9753_s3 + $0x338] sm:$0xff]  ;;  %v6296_v38 = vpack.c.bf16 %v4984_v35, %v4980_v8  ;;  %v4990_v24 = vld [vmem:[%s9753_s3 + $0x320] sm:$0xff] }
 0x7ff   :  { %v6266_v61 = vpack.c.bf16 %v4991_v47, %v4987_v43  ;;  %v6298_v62 = vpack.c.bf16 %v4993_v25, %v4989_v29  ;;  %v6268_v10 = vpack.c.bf16 %v4990_v24, %v4986_v54  ;;  %v5014_v35 = vld [vmem:[%s9753_s3 + $0x3e0] sm:$0xff]  ;;  %v5012_v43 = vld [vmem:[%s9753_s3 + $0x3d0] sm:$0xff] }
 0x800   :  { %7091 = vtanh.f32 %v8593_v36  ;;  %v5016_v47 = vld [vmem:[%s9753_s3 + $0x3f0] sm:$0xff] }
 0x801   :  { %v6312_v25 = vpack.c.bf16 %v5016_v47, %v5012_v43  ;;  %v5027_v54 = vld [vmem:[%s9754_s4 + $0x210] sm:$0xff]  ;;  %v5062_v43 = vld [vmem:[%s9754_s4 + $0x328] sm:$0xff]  ;;  %v5057_v47 = vld [vmem:[%s9754_s4 + $0x300] sm:$0xff] }
 0x802   :  { %v5031_v24 = vld [vmem:[%s9754_s4 + $0x230] sm:$0xff] }
 0x80a   :  { %v7092_v42 = vpop.eup %7091 }
 0x80b   :  { %v8626_v26 = vmul.f32 %v7092_v42, %v7090_v41  ;;  %v4995_v41 = vld [vmem:[%s9753_s3 + $0x348] sm:$0xff] }
 0x80c   :  { %v4999_v42 = vld [vmem:[%s9753_s3 + $0x368] sm:$0xff] }
 0x80d   :  { %2398 = vmatmul.mubr.f32.vlgmr.msra.gmra.mrb[14].mxu1 %v8626_v26  ;;  %2469 = vmatmul.mubr.f32.vlgmr.msra.gmra.mrb[22].mxu0 %v8626_v26  ;;  %v6270_v59 = vpack.c.bf16 %v4999_v42, %v4995_v41  ;;  %v5033_v42 = vld [vmem:[%s9754_s4 + $0x240] sm:$0xff] }
 0x80e   :  { %6253 = vmatpush1.bf16.msra.mxu1 %v6252_v60  ;;  %6285 = vmatpush1.bf16.msra.mxu0 %v6284_v15  ;;  %v4997_v60 = vld [vmem:[%s9753_s3 + $0x358] sm:$0xff] }
 0x80f   :  { %6255 = vmatprep.subr.bf16.mxu1 %v6254_v39  ;;  %6287 = vmatprep.subr.bf16.mxu0 %v6286_v49  ;;  %v5001_v15 = vld [vmem:[%s9753_s3 + $0x378] sm:$0xff]  ;;  %v4994_v39 = vld [vmem:[%s9753_s3 + $0x340] sm:$0xff] }
 0x810   :  { %2667 = vmatprep.mubr.f32.mxu1 %v7237_v48  ;;  %2780 = vmatprep.mubr.f32.mxu0 %v7237_v48  ;;  %v4998_v49 = vld [vmem:[%s9753_s3 + $0x360] sm:$0xff]  ;;  %v6302_v23 = vpack.c.bf16 %v5001_v15, %v4997_v60  ;;  %v5040_v15 = vld [vmem:[%s9754_s4 + $0x278] sm:$0xff] }
 0x811   :  { %v6272_v5 = vpack.c.bf16 %v4998_v49, %v4994_v39  ;;  %v5037_v60 = vld [vmem:[%s9754_s4 + $0x260] sm:$0xff]  ;;  %v5035_v39 = vld [vmem:[%s9754_s4 + $0x250] sm:$0xff] }
 0x812   :  { %6257 = vmatpush1.bf16.msra.mxu1 %v6256_v37  ;;  %6289 = vmatpush1.bf16.msra.mxu0 %v6288_v4  ;;  %v5005_v37 = vld [vmem:[%s9753_s3 + $0x398] sm:$0xff]  ;;  %v5039_v49 = vld [vmem:[%s9754_s4 + $0x270] sm:$0xff] }
 0x813   :  { %6259 = vmatprep.subr.bf16.mxu1 %v6258_v53  ;;  %6291 = vmatprep.subr.bf16.mxu0 %v6290_v6  ;;  %v5009_v4 = vld [vmem:[%s9753_s3 + $0x3b8] sm:$0xff]  ;;  %v5002_v53 = vld [vmem:[%s9753_s3 + $0x380] sm:$0xff] }
 0x814   :  { %v5006_v6 = vld [vmem:[%s9753_s3 + $0x3a0] sm:$0xff]  ;;  %v6306_v51 = vpack.c.bf16 %v5009_v4, %v5005_v37  ;;  %v5048_v4 = vld [vmem:[%s9754_s4 + $0x2b8] sm:$0xff] }
 0x815   :  { %v6276_v2 = vpack.c.bf16 %v5006_v6, %v5002_v53  ;;  %v5045_v37 = vld [vmem:[%s9754_s4 + $0x2a0] sm:$0xff]  ;;  %v5043_v53 = vld [vmem:[%s9754_s4 + $0x290] sm:$0xff] }
 0x816   :  { %6261 = vmatpush1.bf16.msra.mxu1 %v6260_v52  ;;  %6293 = vmatpush1.bf16.msra.mxu0 %v6292_v30  ;;  %v5013_v52 = vld [vmem:[%s9753_s3 + $0x3d8] sm:$0xff]  ;;  %v5047_v6 = vld [vmem:[%s9754_s4 + $0x2b0] sm:$0xff] }
 0x817   :  { %6263 = vmatprep.subr.bf16.mxu1 %v6262_v3  ;;  %6295 = vmatprep.subr.bf16.mxu0 %v6294_v63  ;;  %v5017_v30 = vld [vmem:[%s9753_s3 + $0x3f8] sm:$0xff]  ;;  %v5010_v3 = vld [vmem:[%s9753_s3 + $0x3c0] sm:$0xff]  ;;  %v6278_v63 = vpack.c.bf16 %v5015_v22, %v5011_v34 }
 0x818   :  { %v6310_v8 = vpack.c.bf16 %v5017_v30, %v5013_v52  ;;  %v6280_v29 = vpack.c.bf16 %v5014_v35, %v5010_v3  ;;  %v5049_v22 = vld [vmem:[%s9754_s4 + $0x2c0] sm:$0xff]  ;;  %v5056_v30 = vld [vmem:[%s9754_s4 + $0x2f8] sm:$0xff]  ;;  %v5051_v3 = vld [vmem:[%s9754_s4 + $0x2d0] sm:$0xff] }
 0x819   :  { %v5053_v52 = vld [vmem:[%s9754_s4 + $0x2e0] sm:$0xff] }
 0x81a   :  { %6265 = vmatpush1.bf16.msra.mxu1 %v6264_v31  ;;  %6297 = vmatpush1.bf16.msra.mxu0 %v6296_v38 }
 0x81b   :  { %6267 = vmatprep.subr.bf16.mxu1 %v6266_v61  ;;  %6299 = vmatprep.subr.bf16.mxu0 %v6298_v62  ;;  %v8841_v61 = vpack.c.bf16 %v5031_v24, %v5027_v54  ;;  %v5034_v62 = vld [vmem:[%s9754_s4 + $0x248] sm:$0xff] }
 0x81c   :  { %v8855_v41 = vpack.c.bf16 %v5038_v12, %v5034_v62  ;;  %v5066_v54 = vld [vmem:[%s9754_s4 + $0x348] sm:$0xff] }
 0x81d   :  { %v5070_v24 = vld [vmem:[%s9754_s4 + $0x368] sm:$0xff] }
 0x81e   :  { %6269 = vmatpush1.bf16.msra.mxu1 %v6268_v10  ;;  %6301 = vmatpush1.bf16.msra.mxu0 %v6300_v17  ;;  %v8866_v10 = vpack.c.bf16 %v5037_v60, %v5033_v42  ;;  %v8868_v17 = vpack.c.bf16 %v5040_v15, %v5036_v27  ;;  %v8993_v12 = vpack.c.bf16 %v5070_v24, %v5066_v54  ;;  %v5065_v27 = vld [vmem:[%s9754_s4 + $0x340] sm:$0xff]  ;;  %v5068_v60 = vld [vmem:[%s9754_s4 + $0x358] sm:$0xff]  ;;  %v5087_v24 = vld [vmem:[%s9754_s4 + $0x3f0] sm:$0xff] }
 0x81f   :  { %6271 = vmatprep.subr.bf16.mxu1 %v6270_v59  ;;  %6303 = vmatprep.subr.bf16.mxu0 %v6302_v23  ;;  %v8877_v59 = vpack.c.bf16 %v5039_v49, %v5035_v39  ;;  %v5042_v23 = vld [vmem:[%s9754_s4 + $0x288] sm:$0xff]  ;;  %v5069_v42 = vld [vmem:[%s9754_s4 + $0x360] sm:$0xff]  ;;  %v5072_v15 = vld [vmem:[%s9754_s4 + $0x378] sm:$0xff] }
 0x820   :  { %v8891_v44 = vpack.c.bf16 %v5046_v21, %v5042_v23  ;;  %v5067_v39 = vld [vmem:[%s9754_s4 + $0x350] sm:$0xff]  ;;  %v9015_v23 = vpack.c.bf16 %v5069_v42, %v5065_v27  ;;  %v9017_v21 = vpack.c.bf16 %v5072_v15, %v5068_v60 }
 0x821   :  { %v5071_v49 = vld [vmem:[%s9754_s4 + $0x370] sm:$0xff] }
 0x822   :  { %6273 = vmatpush1.bf16.msra.mxu1 %v6272_v5  ;;  %6305 = vmatpush1.bf16.msra.mxu0 %v6304_v28  ;;  %v8902_v5 = vpack.c.bf16 %v5045_v37, %v5041_v45  ;;  %v8904_v28 = vpack.c.bf16 %v5048_v4, %v5044_v13  ;;  %v5074_v13 = vld [vmem:[%s9754_s4 + $0x388] sm:$0xff]  ;;  %v5073_v37 = vld [vmem:[%s9754_s4 + $0x380] sm:$0xff]  ;;  %v9030_v4 = vpack.c.bf16 %v5071_v49, %v5067_v39 }
 0x823   :  { %6275 = vmatprep.subr.bf16.mxu1 %v6274_v32  ;;  %6307 = vmatprep.subr.bf16.mxu0 %v6306_v51  ;;  %v8913_v32 = vpack.c.bf16 %v5047_v6, %v5043_v53  ;;  %v5050_v51 = vld [vmem:[%s9754_s4 + $0x2c8] sm:$0xff]  ;;  %v5077_v6 = vld [vmem:[%s9754_s4 + $0x3a0] sm:$0xff] }
 0x824   :  { %v8927_v34 = vpack.c.bf16 %v5054_v56, %v5050_v51  ;;  %v5078_v45 = vld [vmem:[%s9754_s4 + $0x3a8] sm:$0xff]  ;;  %v5076_v51 = vld [vmem:[%s9754_s4 + $0x398] sm:$0xff] }
 0x825   :  { %v9032_v53 = vpack.c.bf16 %v5078_v45, %v5074_v13  ;;  %v5080_v56 = vld [vmem:[%s9754_s4 + $0x3b8] sm:$0xff] }
 0x826   :  { %6277 = vmatpush1.bf16.msra.mxu1 %v6276_v2  ;;  %6309 = vmatpush1.bf16.msra.mxu0 %v6308_v14  ;;  %v8938_v2 = vpack.c.bf16 %v5053_v52, %v5049_v22  ;;  %v8940_v14 = vpack.c.bf16 %v5056_v30, %v5052_v20  ;;  %v9044_v20 = vpack.c.bf16 %v5080_v56, %v5076_v51  ;;  %v5075_v22 = vld [vmem:[%s9754_s4 + $0x390] sm:$0xff]  ;;  %v5082_v30 = vld [vmem:[%s9754_s4 + $0x3c8] sm:$0xff] }
 0x827   :  { %6279 = vmatprep.subr.bf16.mxu1 %v6278_v63  ;;  %6311 = vmatprep.subr.bf16.mxu0 %v6310_v8  ;;  %v5055_v63 = vld [vmem:[%s9754_s4 + $0x2f0] sm:$0xff]  ;;  %v5058_v8 = vld [vmem:[%s9754_s4 + $0x308] sm:$0xff] }
 0x828   :  { %v8952_v35 = vpack.c.bf16 %v5055_v63, %v5051_v3  ;;  %v5079_v52 = vld [vmem:[%s9754_s4 + $0x3b0] sm:$0xff]  ;;  %v5086_v3 = vld [vmem:[%s9754_s4 + $0x3e8] sm:$0xff]  ;;  %v9059_v63 = vpack.c.bf16 %v5077_v6, %v5073_v37 }
 0x82a   :  { %6281 = vmatpush1.bf16.msra.mxu1 %v6280_v29  ;;  %6313 = vmatpush1.bf16.msra.mxu0 %v6312_v25  ;;  %v5061_v29 = vld [vmem:[%s9754_s4 + $0x320] sm:$0xff]  ;;  %v8965_v25 = vpack.c.bf16 %v5062_v43, %v5058_v8  ;;  %v9063_v8 = vpack.c.bf16 %v5079_v52, %v5075_v22  ;;  %v9065_v43 = vpack.c.bf16 %v5086_v3, %v5082_v30 }
 0x82d   :  { %2668 = vmatmul.mubr.f32.vlgmr.msra.gmra.mrb[16].mxu1 %v7934_v1  ;;  %2781 = vmatmul.mubr.f32.vlgmr.msra.gmra.mrb[24].mxu0 %v7934_v1  ;;  %v5026_v1 = vld [vmem:[%s9754_s4 + $0x208] sm:$0xff] }
 0x82e   :  { %2673 = vmatprep.mubr.f32.mxu1 %v7237_v48  ;;  %2786 = vmatprep.mubr.f32.mxu0 %v7237_v48 }
 0x831   :  { %2674 = vmatmul.mubr.f32.gmra.mrb[18].mxu1 %v7978_v9  ;;  %2787 = vmatmul.mubr.f32.gmra.mrb[26].mxu0 %v7978_v9  ;;  %v5030_v9 = vld [vmem:[%s9754_s4 + $0x228] sm:$0xff] }
 0x832   :  { %2679 = vmatprep.mubr.f32.mxu1 %v7237_v48  ;;  %2792 = vmatprep.mubr.f32.mxu0 %v7237_v48 }
 0x835   :  { %2680 = vmatmul.mubr.f32.gmra.mrb[20].mxu1 %v8218_v7  ;;  %2793 = vmatmul.mubr.f32.gmra.mrb[28].mxu0 %v8218_v7  ;;  %v5028_v7 = vld [vmem:[%s9754_s4 + $0x218] sm:$0xff] }
 0x836   :  { %2685 = vmatprep.mubr.f32.mxu1 %v7237_v48  ;;  %2798 = vmatprep.mubr.f32.mxu0 %v7237_v48 }
 0x839   :  { %2686 = vmatmul.mubr.f32.gmra.mrb[22].mxu1 %v8328_v33  ;;  %2799 = vmatmul.mubr.f32.gmra.mrb[30].mxu0 %v8328_v33  ;;  %v8819_v33 = vpack.c.bf16 %v5030_v9, %v5026_v1  ;;  %v8967_v1 = vpack.c.bf16 %v5061_v29, %v5057_v47  ;;  %v5060_v9 = vld [vmem:[%s9754_s4 + $0x318] sm:$0xff] }
 0x83a   :  { %2691 = vmatprep.mubr.f32.mxu1 %v7237_v48  ;;  %2804 = vmatprep.mubr.f32.mxu0 %v7237_v48  ;;  %v5084_v47 = vld [vmem:[%s9754_s4 + $0x3d8] sm:$0xff] }
 0x83b   :  { %6315 = vmatprep.subr.bf16.mxu1 %v8819_v33  ;;  %v5088_v29 = vld [vmem:[%s9754_s4 + $0x3f8] sm:$0xff] }
 0x83d   :  { %2692 = vmatmul.mubr.f32.gmra.mrb[24].mxu1 %v8374_v50  ;;  %2805 = vmatmul.mubr.f32.gmra.mrb[32].mxu0 %v8374_v50  ;;  %v5025_v50 = vld [vmem:[%s9754_s4 + $0x200] sm:$0xff] }
 0x83e   :  { %2697 = vmatprep.mubr.f32.mxu1 %v7237_v48  ;;  %2810 = vmatprep.mubr.f32.mxu0 %v7237_v48 }
 0x841   :  { %2698 = vmatmul.mubr.f32.gmra.mrb[26].mxu1 %v8418_v19  ;;  %2811 = vmatmul.mubr.f32.gmra.mrb[34].mxu0 %v8418_v19  ;;  %v5029_v19 = vld [vmem:[%s9754_s4 + $0x220] sm:$0xff] }
 0x842   :  { %2703 = vmatprep.mubr.f32.mxu1 %v7237_v48  ;;  %2816 = vmatprep.mubr.f32.mxu0 %v7237_v48  ;;  %v8830_v31 = vpack.c.bf16 %v5029_v19, %v5025_v50  ;;  %v5059_v50 = vld [vmem:[%s9754_s4 + $0x310] sm:$0xff] }
 0x844   :  { %6317 = vmatpush1.bf16.msra.mxu1 %v8830_v31 }
 0x845   :  { %2704 = vmatmul.mubr.f32.gmra.mrb[28].mxu1 %v8626_v26  ;;  %2817 = vmatmul.mubr.f32.gmra.mrb[36].mxu0 %v8626_v26  ;;  %v5032_v26 = vld [vmem:[%s9754_s4 + $0x238] sm:$0xff] }
 0x846   :  { %2709 = vmatprep.mubr.f32.mxu1 %v7237_v48  ;;  %2822 = vmatprep.mubr.f32.mxu0 %v7237_v48  ;;  %v8832_v38 = vpack.c.bf16 %v5032_v26, %v5028_v7  ;;  %v5064_v7 = vld [vmem:[%s9754_s4 + $0x338] sm:$0xff]  ;;  %v5063_v26 = vld [vmem:[%s9754_s4 + $0x330] sm:$0xff] }
 0x847   :  { %6319 = vmatprep.subr.bf16.mxu1 %v8855_v41  ;;  %v8979_v19 = vpack.c.bf16 %v5064_v7, %v5060_v9  ;;  %v8991_v62 = vpack.c.bf16 %v5063_v26, %v5059_v50  ;;  %v5081_v9 = vld [vmem:[%s9754_s4 + $0x3c0] sm:$0xff]  ;;  %v9083_v50 = vpack.c.bf16 %v5088_v29, %v5084_v47  ;;  %v5083_v26 = vld [vmem:[%s9754_s4 + $0x3d0] sm:$0xff] }
 0x848   :  { %6347 = vmatprep.subr.bf16.mxu0 %v8832_v38  ;;  %6321 = vmatpush1.bf16.msra.mxu1 %v8866_v10  ;;  %v5085_v7 = vld [vmem:[%s9754_s4 + $0x3e0] sm:$0xff]  ;;  %v9094_v27 = vpack.c.bf16 %v5087_v24, %v5083_v26 }
 0x849   :  { %6349 = vmatpush1.bf16.msra.mxu0 %v8841_v61  ;;  %6323 = vmatprep.subr.bf16.mxu1 %v8891_v44  ;;  %v9088_v54 = vpack.c.bf16 %v5085_v7, %v5081_v9 }
 0x84a   :  { %6351 = vmatprep.subr.bf16.mxu0 %v8868_v17 }
 0x84c   :  { %6325 = vmatpush1.bf16.msra.mxu1 %v8902_v5 }
 0x84d   :  { %6353 = vmatpush1.bf16.msra.mxu0 %v8877_v59  ;;  %6327 = vmatprep.subr.bf16.mxu1 %v8927_v34 }
 0x84e   :  { %6355 = vmatprep.subr.bf16.mxu0 %v8904_v28 }
 0x850   :  { %6329 = vmatpush1.bf16.msra.mxu1 %v8938_v2 }
 0x851   :  { %6357 = vmatpush1.bf16.msra.mxu0 %v8913_v32  ;;  %6331 = vmatprep.subr.bf16.mxu1 %v8965_v25 }
 0x852   :  { %6359 = vmatprep.subr.bf16.mxu0 %v8940_v14 }
 0x854   :  { %6333 = vmatpush1.bf16.msra.mxu1 %v8967_v1 }
 0x855   :  { %6361 = vmatpush1.bf16.msra.mxu0 %v8952_v35  ;;  %6335 = vmatprep.subr.bf16.mxu1 %v8993_v12 }
 0x856   :  { %6363 = vmatprep.subr.bf16.mxu0 %v8979_v19 }
 0x858   :  { %6337 = vmatpush1.bf16.msra.mxu1 %v9015_v23 }
 0x859   :  { %6365 = vmatpush1.bf16.msra.mxu0 %v8991_v62  ;;  %6339 = vmatprep.subr.bf16.mxu1 %v9032_v53 }
 0x85a   :  { %6367 = vmatprep.subr.bf16.mxu0 %v9017_v21 }
 0x85c   :  { %6341 = vmatpush1.bf16.msra.mxu1 %v9059_v63 }
 0x85d   :  { %6369 = vmatpush1.bf16.msra.mxu0 %v9030_v4  ;;  %6343 = vmatprep.subr.bf16.mxu1 %v9065_v43 }
 0x85e   :  { %6371 = vmatprep.subr.bf16.mxu0 %v9044_v20 }
 0x860   :  { %6345 = vmatpush1.bf16.msra.mxu1 %v9088_v54 }
 0x861   :  { %6373 = vmatpush1.bf16.msra.mxu0 %v9063_v8  ;;  %6379 = vmatprep.subr.bf16.mxu1 %v8819_v33 }
 0x862   :  { %6375 = vmatprep.subr.bf16.mxu0 %v9083_v50 }
 0x865   :  { %6377 = vmatpush1.bf16.msra.mxu0 %v9094_v27 }
 0x866   :  { %6411 = vmatprep.subr.bf16.mxu0 %v8832_v38 }
 0x8e0   :  { %v2399_v42 = vpop.f32.mrb[14].mxu1  ;;  %v2470_v60 = vpop.f32.mrb[22].mxu0 }
 0x8e1   :  { %v6864_v15 = vadd.f32 %v2399_v42, %v7908_v58  ;;  %v2401_v39 = vpop.f32.mrb[15].mxu1  ;;  %v2472_v49 = vpop.f32.mrb[23].mxu0  ;;  %v6880_v56 = vadd.f32 %v2470_v60, %v7925_v18  ;;  %v5018_v60 = vld [vmem:[%s9757_s5 + $0x1] ss:$2 sm:$0xf] }
 0x8e2   :  { %v6865_v13 = vadd.f32 %v2401_v39, %v7912_v46  ;;  %v6881_v6 = vadd.f32 %v2472_v49, %v7919_v11  ;;  %v9159_v39 = vrot.slane %v5018_v60, %v273_v57  ;;  %v9170_v57 = vrot.slane %v5018_v60, %v277_v16 }
 0x8e3   :  { %v4951_v45 = vmul.f32 -1.442695, %v6864_v15  ;;  %v9155_v15 = vrot.slane %v5018_v60, %v269_v55 }
 0x8e4   :  { %v4952_v37 = vmul.f32 -1.442695, %v6865_v13  ;;  %v4953_v51 = vmul.f32 -1.442695, %v6881_v6 }
 0x8e5   :  { %7093 = vpow2.f32 %v4951_v45 }
 0x8e6   :  { %7095 = vpow2.f32 %v4952_v37 }
 0x8e7   :  { %7097 = vpow2.f32 %v4953_v51 }
 0x8e8   :  { %7099 = vtanh.f32 %v6880_v56 }
 0x8ef   :  { %v7094_v22 = vpop.eup %7093 }
 0x8f0   :  { %v7096_v52 = vpop.eup %7095  ;;  %v2488_v30 = vadd.f32 1.0, %v7094_v22 }
 0x8f1   :  { %v2489_v3 = vadd.f32 1.0, %v7096_v52  ;;  %v7098_v58 = vpop.eup %7097  ;;  %v9165_v52 = vrot.slane %v5018_v60, %v281_v0 }
 0x8f2   :  { %7101 = vrcp.f32 %v2488_v30  ;;  %v7100_v47 = vpop.eup %7099  ;;  %v2490_v7 = vadd.f32 1.0, %v7098_v58 }
 0x8f3   :  { %7103 = vrcp.f32 %v2489_v3 }
 0x8f4   :  { %7105 = vrcp.f32 %v2490_v7 }
 0x8fc   :  { %v7102_v46 = vpop.eup %7101 }
 0x8fd   :  { %v7104_v29 = vpop.eup %7103  ;;  %v2499_v9 = vmul.f32 %v7102_v46, %v7100_v47 }
 0x8fe   :  { %v2498_v26 = vmul.f32 %v7104_v29, %v8593_v36  ;;  %v7106_v18 = vpop.eup %7105 }
 0x900   :  { %v2500_v11 = vadd.f32 %v2499_v9, %v2498_v26 }
 0x902   :  { %7107 = vtanh.f32 %v2500_v11  ;;  %2503 = vst [vmem:[%s9759_s12] sm:$0xff] %v2500_v11 }
 0x909   :  { %v5021_v7 = vld [vmem:[%s9758_s9 + $0x8] sm:$0xff] }
 0x90c   :  { %v7108_v24 = vpop.eup %7107 }
 0x90d   :  { %v2502_v42 = vmul.f32 %v7108_v24, %v7106_v18 }
 0x90f   :  { %2504 = vst [vmem:[%s9760_s11] sm:$0xff] %v2502_v42  ;;  %2710 = vmatmul.mubr.f32.gmra.mrb[30].mxu1 %v2502_v42  ;;  %2823 = vmatmul.mubr.f32.gmra.mrb[38].mxu0 %v2502_v42 }
 0x910   :  { %3004 = vmatprep.mubr.f32.mxu1 %v7237_v48  ;;  %3075 = vmatprep.mubr.f32.mxu0 %v7237_v48 }
 0x916   :  { %v5019_v36 = vld [vmem:[%s9756_s8 + $0x8] sm:$0xff] }
 0x917   :  { %3005 = vmatmul.mubr.f32.vlgmr.msra.gmra.mrb[16].mxu1 %v5019_v36  ;;  %3076 = vmatmul.mubr.f32.vlgmr.msra.gmra.mrb[24].mxu0 %v5019_v36 }
 0x918   :  { %6381 = vmatpush1.bf16.msra.mxu1 %v8830_v31  ;;  %6413 = vmatpush1.bf16.msra.mxu0 %v8841_v61 }
 0x919   :  { %6383 = vmatprep.subr.bf16.mxu1 %v8855_v41  ;;  %6415 = vmatprep.subr.bf16.mxu0 %v8868_v17 }
 0x91a   :  { %3247 = vmatprep.mubr.f32.mxu1 %v7237_v48  ;;  %3318 = vmatprep.mubr.f32.mxu0 %v7237_v48 }
 0x91c   :  { %6385 = vmatpush1.bf16.msra.mxu1 %v8866_v10  ;;  %6417 = vmatpush1.bf16.msra.mxu0 %v8877_v59 }
 0x91d   :  { %6387 = vmatprep.subr.bf16.mxu1 %v8891_v44  ;;  %6419 = vmatprep.subr.bf16.mxu0 %v8904_v28 }
 0x920   :  { %6389 = vmatpush1.bf16.msra.mxu1 %v8902_v5  ;;  %6421 = vmatpush1.bf16.msra.mxu0 %v8913_v32 }
 0x921   :  { %6391 = vmatprep.subr.bf16.mxu1 %v8927_v34  ;;  %6423 = vmatprep.subr.bf16.mxu0 %v8940_v14 }
 0x924   :  { %6393 = vmatpush1.bf16.msra.mxu1 %v8938_v2  ;;  %6425 = vmatpush1.bf16.msra.mxu0 %v8952_v35 }
 0x925   :  { %6395 = vmatprep.subr.bf16.mxu1 %v8965_v25  ;;  %6427 = vmatprep.subr.bf16.mxu0 %v8979_v19 }
 0x928   :  { %6397 = vmatpush1.bf16.msra.mxu1 %v8967_v1  ;;  %6429 = vmatpush1.bf16.msra.mxu0 %v8991_v62 }
 0x929   :  { %6399 = vmatprep.subr.bf16.mxu1 %v8993_v12  ;;  %6431 = vmatprep.subr.bf16.mxu0 %v9017_v21 }
 0x92c   :  { %6401 = vmatpush1.bf16.msra.mxu1 %v9015_v23  ;;  %6433 = vmatpush1.bf16.msra.mxu0 %v9030_v4 }
 0x92d   :  { %6403 = vmatprep.subr.bf16.mxu1 %v9032_v53  ;;  %6435 = vmatprep.subr.bf16.mxu0 %v9044_v20 }
 0x930   :  { %6405 = vmatpush1.bf16.msra.mxu1 %v9059_v63  ;;  %6437 = vmatpush1.bf16.msra.mxu0 %v9063_v8 }
 0x931   :  { %6407 = vmatprep.subr.bf16.mxu1 %v9065_v43  ;;  %6439 = vmatprep.subr.bf16.mxu0 %v9083_v50 }
 0x934   :  { %6409 = vmatpush1.bf16.msra.mxu1 %v9088_v54  ;;  %6441 = vmatpush1.bf16.msra.mxu0 %v9094_v27 }
 0x935   :  { %6443 = vmatprep.subr.bf16.mxu1 %v8819_v33  ;;  %6475 = vmatprep.subr.bf16.mxu0 %v8832_v38 }
 0x9ea   :  { %v3006_v49 = vpop.f32.mrb[16].mxu1  ;;  %v3077_v13 = vpop.f32.mrb[24].mxu0 }
 0x9eb   :  { %v6882_v45 = vadd.f32 %v3006_v49, %v9155_v15  ;;  %v3008_v37 = vpop.f32.mrb[17].mxu1  ;;  %v3079_v6 = vpop.f32.mrb[25].mxu0  ;;  %v6898_v3 = vadd.f32 %v3077_v13, %v9170_v57 }
 0x9ec   :  { %v6883_v51 = vadd.f32 %v3008_v37, %v9159_v39  ;;  %v6899_v55 = vadd.f32 %v3079_v6, %v9165_v52 }
 0x9ed   :  { %v5089_v56 = vmul.f32 -1.442695, %v6882_v45 }
 0x9ee   :  { %v5090_v22 = vmul.f32 -1.442695, %v6883_v51  ;;  %v5091_v30 = vmul.f32 -1.442695, %v6899_v55 }
 0x9ef   :  { %7109 = vpow2.f32 %v5089_v56 }
 0x9f0   :  { %7111 = vpow2.f32 %v5090_v22 }
 0x9f1   :  { %7113 = vpow2.f32 %v5091_v30 }
 0x9f2   :  { %7115 = vtanh.f32 %v6898_v3 }
 0x9f9   :  { %v7110_v58 = vpop.eup %7109 }
 0x9fa   :  { %v7112_v47 = vpop.eup %7111  ;;  %v3095_v46 = vadd.f32 1.0, %v7110_v58 }
 0x9fb   :  { %v3096_v29 = vadd.f32 1.0, %v7112_v47  ;;  %v7114_v0 = vpop.eup %7113 }
 0x9fc   :  { %7117 = vrcp.f32 %v3095_v46  ;;  %v7116_v9 = vpop.eup %7115  ;;  %v3097_v11 = vadd.f32 1.0, %v7114_v0 }
 0x9fd   :  { %7119 = vrcp.f32 %v3096_v29 }
 0x9fe   :  { %7121 = vrcp.f32 %v3097_v11 }
 0xa06   :  { %v7118_v40 = vpop.eup %7117 }
 0xa07   :  { %v7120_v16 = vpop.eup %7119  ;;  %v3106_v26 = vmul.f32 %v7118_v40, %v7116_v9 }
 0xa08   :  { %v3105_v18 = vmul.f32 %v7120_v16, %v5021_v7  ;;  %v7122_v42 = vpop.eup %7121 }
 0xa0a   :  { %v9176_v24 = vadd.f32 %v3106_v26, %v3105_v18 }
 0xa0c   :  { %7123 = vtanh.f32 %v9176_v24 }
 0xa16   :  { %v7124_v36 = vpop.eup %7123 }
 0xa17   :  { %v3109_v60 = vmul.f32 %v7124_v36, %v7122_v42  ;;  %v5309_v36 = vld [vmem:[%s9754_s4 + $0x200] sm:$0xff] }
 0xa19   :  { %3248 = vmatmul.mubr.f32.vlgmr.msra.gmra.mrb[18].mxu1 %v3109_v60  ;;  %3319 = vmatmul.mubr.f32.vlgmr.msra.gmra.mrb[26].mxu0 %v3109_v60  ;;  %v5313_v60 = vld [vmem:[%s9754_s4 + $0x220] sm:$0xff] }
 0xa1a   :  { %6445 = vmatpush1.bf16.msra.mxu1 %v8830_v31  ;;  %6477 = vmatpush1.bf16.msra.mxu0 %v8841_v61 }
 0xa1b   :  { %6447 = vmatprep.subr.bf16.mxu1 %v8855_v41  ;;  %6479 = vmatprep.subr.bf16.mxu0 %v8868_v17 }
 0xa1c   :  { %3490 = vmatprep.mubr.f32.mxu1 %v7237_v48  ;;  %3561 = vmatprep.mubr.f32.mxu0 %v7237_v48 }
 0xa1e   :  { %6449 = vmatpush1.bf16.msra.mxu1 %v8866_v10  ;;  %6481 = vmatpush1.bf16.msra.mxu0 %v8877_v59 }
 0xa1f   :  { %6451 = vmatprep.subr.bf16.mxu1 %v8891_v44  ;;  %6483 = vmatprep.subr.bf16.mxu0 %v8904_v28 }
 0xa22   :  { %6453 = vmatpush1.bf16.msra.mxu1 %v8902_v5  ;;  %6485 = vmatpush1.bf16.msra.mxu0 %v8913_v32 }
 0xa23   :  { %6455 = vmatprep.subr.bf16.mxu1 %v8927_v34  ;;  %6487 = vmatprep.subr.bf16.mxu0 %v8940_v14 }
 0xa26   :  { %6457 = vmatpush1.bf16.msra.mxu1 %v8938_v2  ;;  %6489 = vmatpush1.bf16.msra.mxu0 %v8952_v35 }
 0xa27   :  { %6459 = vmatprep.subr.bf16.mxu1 %v8965_v25  ;;  %6491 = vmatprep.subr.bf16.mxu0 %v8979_v19 }
 0xa2a   :  { %6461 = vmatpush1.bf16.msra.mxu1 %v8967_v1  ;;  %6493 = vmatpush1.bf16.msra.mxu0 %v8991_v62 }
 0xa2b   :  { %6463 = vmatprep.subr.bf16.mxu1 %v8993_v12  ;;  %6495 = vmatprep.subr.bf16.mxu0 %v9017_v21 }
 0xa2e   :  { %6465 = vmatpush1.bf16.msra.mxu1 %v9015_v23  ;;  %6497 = vmatpush1.bf16.msra.mxu0 %v9030_v4 }
 0xa2f   :  { %6467 = vmatprep.subr.bf16.mxu1 %v9032_v53  ;;  %6499 = vmatprep.subr.bf16.mxu0 %v9044_v20 }
 0xa32   :  { %6469 = vmatpush1.bf16.msra.mxu1 %v9059_v63  ;;  %6501 = vmatpush1.bf16.msra.mxu0 %v9063_v8 }
 0xa33   :  { %6471 = vmatprep.subr.bf16.mxu1 %v9065_v43  ;;  %6503 = vmatprep.subr.bf16.mxu0 %v9083_v50 }
 0xa36   :  { %6473 = vmatpush1.bf16.msra.mxu1 %v9088_v54  ;;  %6505 = vmatpush1.bf16.msra.mxu0 %v9094_v27 }
 0xa37   :  { %6507 = vmatprep.subr.bf16.mxu1 %v8819_v33  ;;  %6539 = vmatprep.subr.bf16.mxu0 %v8832_v38 }
 0xaec   :  { %v3249_v49 = vpop.f32.mrb[18].mxu1  ;;  %v3320_v13 = vpop.f32.mrb[26].mxu0 }
 0xaed   :  { %v6884_v45 = vadd.f32 %v3249_v49, %v9155_v15  ;;  %v3251_v37 = vpop.f32.mrb[19].mxu1  ;;  %v3322_v6 = vpop.f32.mrb[27].mxu0  ;;  %v6900_v3 = vadd.f32 %v3320_v13, %v9170_v57  ;;  %v9285_v13 = vpack.c.bf16 %v5313_v60, %v5309_v36  ;;  %v5352_v36 = vld [vmem:[%s9754_s4 + $0x358] sm:$0xff] }
 0xaee   :  { %v6885_v51 = vadd.f32 %v3251_v37, %v9159_v39  ;;  %v6901_v55 = vadd.f32 %v3322_v6, %v9165_v52  ;;  %v5315_v37 = vld [vmem:[%s9754_s4 + $0x230] sm:$0xff] }
 0xaef   :  { %v5160_v56 = vmul.f32 -1.442695, %v6884_v45  ;;  %v5311_v45 = vld [vmem:[%s9754_s4 + $0x210] sm:$0xff] }
 0xaf0   :  { %v5161_v22 = vmul.f32 -1.442695, %v6885_v51  ;;  %v5162_v30 = vmul.f32 -1.442695, %v6901_v55  ;;  %v9294_v6 = vpack.c.bf16 %v5315_v37, %v5311_v45  ;;  %v5318_v51 = vld [vmem:[%s9754_s4 + $0x248] sm:$0xff]  ;;  %v5356_v45 = vld [vmem:[%s9754_s4 + $0x378] sm:$0xff] }
 0xaf1   :  { %7125 = vpow2.f32 %v5160_v56  ;;  %v5322_v56 = vld [vmem:[%s9754_s4 + $0x268] sm:$0xff]  ;;  %v5349_v37 = vld [vmem:[%s9754_s4 + $0x340] sm:$0xff] }
 0xaf2   :  { %7127 = vpow2.f32 %v5161_v22  ;;  %v5320_v22 = vld [vmem:[%s9754_s4 + $0x258] sm:$0xff]  ;;  %v9308_v55 = vpack.c.bf16 %v5322_v56, %v5318_v51  ;;  %v5353_v51 = vld [vmem:[%s9754_s4 + $0x360] sm:$0xff]  ;;  %v9463_v56 = vpack.c.bf16 %v5356_v45, %v5352_v36 }
 0xaf3   :  { %7129 = vpow2.f32 %v5162_v30  ;;  %v5324_v30 = vld [vmem:[%s9754_s4 + $0x278] sm:$0xff] }
 0xaf4   :  { %7131 = vtanh.f32 %v6900_v3  ;;  %v5317_v3 = vld [vmem:[%s9754_s4 + $0x240] sm:$0xff] }
 0xafb   :  { %v7126_v33 = vpop.eup %7125 }
 0xafc   :  { %v7128_v58 = vpop.eup %7127  ;;  %v3338_v38 = vadd.f32 1.0, %v7126_v33  ;;  %v5321_v33 = vld [vmem:[%s9754_s4 + $0x260] sm:$0xff] }
 0xafd   :  { %v3339_v47 = vadd.f32 1.0, %v7128_v58  ;;  %v7130_v46 = vpop.eup %7129  ;;  %v9319_v58 = vpack.c.bf16 %v5324_v30, %v5320_v22  ;;  %v9465_v22 = vpack.c.bf16 %v5353_v51, %v5349_v37  ;;  %v5351_v30 = vld [vmem:[%s9754_s4 + $0x350] sm:$0xff] }
 0xafe   :  { %7133 = vrcp.f32 %v3338_v38  ;;  %v7132_v29 = vpop.eup %7131  ;;  %v3340_v40 = vadd.f32 1.0, %v7130_v46  ;;  %v9321_v38 = vpack.c.bf16 %v5321_v33, %v5317_v3  ;;  %v5323_v46 = vld [vmem:[%s9754_s4 + $0x270] sm:$0xff] }
 0xaff   :  { %7135 = vrcp.f32 %v3339_v47  ;;  %v5319_v47 = vld [vmem:[%s9754_s4 + $0x250] sm:$0xff] }
 0xb00   :  { %7137 = vrcp.f32 %v3340_v40  ;;  %v5355_v3 = vld [vmem:[%s9754_s4 + $0x370] sm:$0xff] }
 0xb01   :  { %v9474_v33 = vpack.c.bf16 %v5355_v3, %v5351_v30 }
 0xb08   :  { %v7134_v0 = vpop.eup %7133 }
 0xb09   :  { %v7136_v9 = vpop.eup %7135  ;;  %v3349_v7 = vmul.f32 %v7134_v0, %v7132_v29  ;;  %v9330_v29 = vpack.c.bf16 %v5323_v46, %v5319_v47  ;;  %v5326_v0 = vld [vmem:[%s9754_s4 + $0x288] sm:$0xff] }
 0xb0a   :  { %v3348_v16 = vmul.f32 %v7136_v9, %v9176_v24  ;;  %v7138_v11 = vpop.eup %7137  ;;  %v5316_v24 = vld [vmem:[%s9754_s4 + $0x238] sm:$0xff]  ;;  %v5330_v9 = vld [vmem:[%s9754_s4 + $0x2a8] sm:$0xff] }
 0xb0b   :  { %v9344_v40 = vpack.c.bf16 %v5330_v9, %v5326_v0  ;;  %v5358_v47 = vld [vmem:[%s9754_s4 + $0x388] sm:$0xff]  ;;  %v5360_v0 = vld [vmem:[%s9754_s4 + $0x398] sm:$0xff] }
 0xb0c   :  { %v9218_v26 = vadd.f32 %v3349_v7, %v3348_v16  ;;  %v5328_v7 = vld [vmem:[%s9754_s4 + $0x298] sm:$0xff]  ;;  %v5362_v46 = vld [vmem:[%s9754_s4 + $0x3a8] sm:$0xff] }
 0xb0d   :  { %v5332_v16 = vld [vmem:[%s9754_s4 + $0x2b8] sm:$0xff]  ;;  %v9488_v9 = vpack.c.bf16 %v5362_v46, %v5358_v47 }
 0xb0e   :  { %7139 = vtanh.f32 %v9218_v26 }
 0xb18   :  { %v7140_v18 = vpop.eup %7139 }
 0xb19   :  { %v3352_v42 = vmul.f32 %v7140_v18, %v7138_v11  ;;  %v5329_v11 = vld [vmem:[%s9754_s4 + $0x2a0] sm:$0xff]  ;;  %v9355_v18 = vpack.c.bf16 %v5332_v16, %v5328_v7  ;;  %v5364_v7 = vld [vmem:[%s9754_s4 + $0x3b8] sm:$0xff] }
 0xb1a   :  { %v5357_v16 = vld [vmem:[%s9754_s4 + $0x380] sm:$0xff] }
 0xb1b   :  { %3491 = vmatmul.mubr.f32.vlgmr.msra.gmra.mrb[20].mxu1 %v3352_v42  ;;  %3562 = vmatmul.mubr.f32.vlgmr.msra.gmra.mrb[28].mxu0 %v3352_v42 }
 0xb1c   :  { %6509 = vmatpush1.bf16.msra.mxu1 %v8830_v31  ;;  %6541 = vmatpush1.bf16.msra.mxu0 %v8841_v61 }
 0xb1d   :  { %6511 = vmatprep.subr.bf16.mxu1 %v8855_v41  ;;  %6543 = vmatprep.subr.bf16.mxu0 %v8868_v17 }
 0xb1e   :  { %3733 = vmatprep.mubr.f32.mxu1 %v7237_v48  ;;  %3804 = vmatprep.mubr.f32.mxu0 %v7237_v48 }
 0xb20   :  { %6513 = vmatpush1.bf16.msra.mxu1 %v8866_v10  ;;  %6545 = vmatpush1.bf16.msra.mxu0 %v8877_v59 }
 0xb21   :  { %6515 = vmatprep.subr.bf16.mxu1 %v8891_v44  ;;  %6547 = vmatprep.subr.bf16.mxu0 %v8904_v28 }
 0xb24   :  { %6517 = vmatpush1.bf16.msra.mxu1 %v8902_v5  ;;  %6549 = vmatpush1.bf16.msra.mxu0 %v8913_v32 }
 0xb25   :  { %6519 = vmatprep.subr.bf16.mxu1 %v8927_v34  ;;  %6551 = vmatprep.subr.bf16.mxu0 %v8940_v14 }
 0xb28   :  { %6521 = vmatpush1.bf16.msra.mxu1 %v8938_v2  ;;  %6553 = vmatpush1.bf16.msra.mxu0 %v8952_v35 }
 0xb29   :  { %6523 = vmatprep.subr.bf16.mxu1 %v8965_v25  ;;  %6555 = vmatprep.subr.bf16.mxu0 %v8979_v19 }
 0xb2c   :  { %6525 = vmatpush1.bf16.msra.mxu1 %v8967_v1  ;;  %6557 = vmatpush1.bf16.msra.mxu0 %v8991_v62 }
 0xb2d   :  { %6527 = vmatprep.subr.bf16.mxu1 %v8993_v12  ;;  %6559 = vmatprep.subr.bf16.mxu0 %v9017_v21 }
 0xb30   :  { %6529 = vmatpush1.bf16.msra.mxu1 %v9015_v23  ;;  %6561 = vmatpush1.bf16.msra.mxu0 %v9030_v4 }
 0xb31   :  { %6531 = vmatprep.subr.bf16.mxu1 %v9032_v53  ;;  %6563 = vmatprep.subr.bf16.mxu0 %v9044_v20 }
 0xb34   :  { %6533 = vmatpush1.bf16.msra.mxu1 %v9059_v63  ;;  %6565 = vmatpush1.bf16.msra.mxu0 %v9063_v8 }
 0xb35   :  { %6535 = vmatprep.subr.bf16.mxu1 %v9065_v43  ;;  %6567 = vmatprep.subr.bf16.mxu0 %v9083_v50  ;;  %v5310_v43 = vld [vmem:[%s9754_s4 + $0x208] sm:$0xff] }
 0xb36   :  { %v5314_v50 = vld [vmem:[%s9754_s4 + $0x228] sm:$0xff] }
 0xb38   :  { %6537 = vmatpush1.bf16.msra.mxu1 %v9088_v54  ;;  %6569 = vmatpush1.bf16.msra.mxu0 %v9094_v27  ;;  %v5312_v54 = vld [vmem:[%s9754_s4 + $0x218] sm:$0xff]  ;;  %v9272_v27 = vpack.c.bf16 %v5314_v50, %v5310_v43  ;;  %v5347_v43 = vld [vmem:[%s9754_s4 + $0x330] sm:$0xff] }
 0xb39   :  { %v9283_v49 = vpack.c.bf16 %v5316_v24, %v5312_v54  ;;  %v5350_v54 = vld [vmem:[%s9754_s4 + $0x348] sm:$0xff] }
 0xb3a   :  { %6571 = vmatprep.subr.bf16.mxu1 %v9272_v27  ;;  %v5354_v24 = vld [vmem:[%s9754_s4 + $0x368] sm:$0xff] }
 0xb3b   :  { %6603 = vmatprep.subr.bf16.mxu0 %v9283_v49  ;;  %v9452_v60 = vpack.c.bf16 %v5354_v24, %v5350_v54 }
 0xbee   :  { %v3492_v31 = vpop.f32.mrb[20].mxu1  ;;  %v3563_v61 = vpop.f32.mrb[28].mxu0 }
 0xbef   :  { %v6886_v41 = vadd.f32 %v3492_v31, %v9155_v15  ;;  %v3494_v10 = vpop.f32.mrb[21].mxu1  ;;  %v3565_v17 = vpop.f32.mrb[29].mxu0  ;;  %v6902_v34 = vadd.f32 %v3563_v61, %v9170_v57  ;;  %v5327_v31 = vld [vmem:[%s9754_s4 + $0x290] sm:$0xff] }
 0xbf0   :  { %v6887_v59 = vadd.f32 %v3494_v10, %v9159_v39  ;;  %v6903_v28 = vadd.f32 %v3565_v17, %v9165_v52  ;;  %v5331_v61 = vld [vmem:[%s9754_s4 + $0x2b0] sm:$0xff]  ;;  %v5334_v10 = vld [vmem:[%s9754_s4 + $0x2c8] sm:$0xff] }
 0xbf1   :  { %v5231_v44 = vmul.f32 -1.442695, %v6886_v41  ;;  %v9366_v41 = vpack.c.bf16 %v5331_v61, %v5327_v31  ;;  %v5338_v17 = vld [vmem:[%s9754_s4 + $0x2e8] sm:$0xff]  ;;  %v5359_v61 = vld [vmem:[%s9754_s4 + $0x390] sm:$0xff] }
 0xbf2   :  { %v5232_v5 = vmul.f32 -1.442695, %v6887_v59  ;;  %v5233_v32 = vmul.f32 -1.442695, %v6903_v28  ;;  %v5336_v59 = vld [vmem:[%s9754_s4 + $0x2d8] sm:$0xff]  ;;  %v5333_v28 = vld [vmem:[%s9754_s4 + $0x2c0] sm:$0xff] }
 0xbf3   :  { %7141 = vpow2.f32 %v5231_v44  ;;  %v9380_v44 = vpack.c.bf16 %v5338_v17, %v5334_v10  ;;  %v5363_v10 = vld [vmem:[%s9754_s4 + $0x3b0] sm:$0xff] }
 0xbf4   :  { %7143 = vpow2.f32 %v5232_v5  ;;  %v5340_v5 = vld [vmem:[%s9754_s4 + $0x2f8] sm:$0xff]  ;;  %v9510_v17 = vpack.c.bf16 %v5363_v10, %v5359_v61 }
 0xbf5   :  { %7145 = vpow2.f32 %v5233_v32  ;;  %v5337_v32 = vld [vmem:[%s9754_s4 + $0x2e0] sm:$0xff] }
 0xbf6   :  { %7147 = vtanh.f32 %v6902_v34  ;;  %v9391_v34 = vpack.c.bf16 %v5340_v5, %v5336_v59  ;;  %v5366_v59 = vld [vmem:[%s9754_s4 + $0x3c8] sm:$0xff] }
 0xbf7   :  { %v5370_v5 = vld [vmem:[%s9754_s4 + $0x3e8] sm:$0xff] }
 0xbfd   :  { %v7142_v2 = vpop.eup %7141 }
 0xbfe   :  { %v7144_v14 = vpop.eup %7143  ;;  %v3581_v35 = vadd.f32 1.0, %v7142_v2  ;;  %v9393_v2 = vpack.c.bf16 %v5337_v32, %v5333_v28  ;;  %v5368_v28 = vld [vmem:[%s9754_s4 + $0x3d8] sm:$0xff]  ;;  %v9524_v32 = vpack.c.bf16 %v5370_v5, %v5366_v59 }
 0xbff   :  { %v3582_v25 = vadd.f32 1.0, %v7144_v14  ;;  %v7146_v1 = vpop.eup %7145  ;;  %v5335_v14 = vld [vmem:[%s9754_s4 + $0x2d0] sm:$0xff] }
 0xc00   :  { %7149 = vrcp.f32 %v3581_v35  ;;  %v7148_v19 = vpop.eup %7147  ;;  %v3583_v21 = vadd.f32 1.0, %v7146_v1  ;;  %v5339_v35 = vld [vmem:[%s9754_s4 + $0x2f0] sm:$0xff]  ;;  %v5342_v1 = vld [vmem:[%s9754_s4 + $0x308] sm:$0xff] }
 0xc01   :  { %7151 = vrcp.f32 %v3582_v25  ;;  %v9402_v25 = vpack.c.bf16 %v5339_v35, %v5335_v14  ;;  %v5372_v14 = vld [vmem:[%s9754_s4 + $0x3f8] sm:$0xff]  ;;  %v5365_v35 = vld [vmem:[%s9754_s4 + $0x3c0] sm:$0xff] }
 0xc02   :  { %7153 = vrcp.f32 %v3583_v21  ;;  %v5341_v21 = vld [vmem:[%s9754_s4 + $0x300] sm:$0xff] }
 0xc0a   :  { %v7150_v62 = vpop.eup %7149 }
 0xc0b   :  { %v7152_v12 = vpop.eup %7151  ;;  %v3592_v23 = vmul.f32 %v7150_v62, %v7148_v19  ;;  %v5346_v19 = vld [vmem:[%s9754_s4 + $0x328] sm:$0xff]  ;;  %v5344_v62 = vld [vmem:[%s9754_s4 + $0x318] sm:$0xff] }
 0xc0c   :  { %v3591_v4 = vmul.f32 %v7152_v12, %v9218_v26  ;;  %v7154_v20 = vpop.eup %7153  ;;  %v5325_v26 = vld [vmem:[%s9754_s4 + $0x280] sm:$0xff]  ;;  %v9416_v12 = vpack.c.bf16 %v5346_v19, %v5342_v1  ;;  %v9535_v19 = vpack.c.bf16 %v5372_v14, %v5368_v28 }
 0xc0d   :  { %v9357_v42 = vpack.c.bf16 %v5329_v11, %v5325_v26  ;;  %v5361_v26 = vld [vmem:[%s9754_s4 + $0x3a0] sm:$0xff]  ;;  %v9499_v11 = vpack.c.bf16 %v5364_v7, %v5360_v0 }
 0xc0e   :  { %v9258_v53 = vadd.f32 %v3592_v23, %v3591_v4  ;;  %v5348_v23 = vld [vmem:[%s9754_s4 + $0x338] sm:$0xff]  ;;  %v5345_v4 = vld [vmem:[%s9754_s4 + $0x320] sm:$0xff]  ;;  %v9501_v31 = vpack.c.bf16 %v5361_v26, %v5357_v16 }
 0xc0f   :  { %v5369_v1 = vld [vmem:[%s9754_s4 + $0x3e0] sm:$0xff] }
 0xc10   :  { %7155 = vtanh.f32 %v9258_v53 }
 0xc1a   :  { %v7156_v63 = vpop.eup %7155 }
 0xc1b   :  { %v3595_v8 = vmul.f32 %v7156_v63, %v7154_v20  ;;  %v9427_v20 = vpack.c.bf16 %v5348_v23, %v5344_v62  ;;  %v9429_v63 = vpack.c.bf16 %v5345_v4, %v5341_v21  ;;  %v9537_v62 = vpack.c.bf16 %v5369_v1, %v5365_v35  ;;  %v5367_v23 = vld [vmem:[%s9754_s4 + $0x3d0] sm:$0xff] }
 0xc1c   :  { %v5371_v21 = vld [vmem:[%s9754_s4 + $0x3f0] sm:$0xff] }
 0xc1d   :  { %3734 = vmatmul.mubr.f32.vlgmr.msra.gmra.mrb[22].mxu1 %v3595_v8  ;;  %3805 = vmatmul.mubr.f32.vlgmr.msra.gmra.mrb[30].mxu0 %v3595_v8  ;;  %v5343_v8 = vld [vmem:[%s9754_s4 + $0x310] sm:$0xff]  ;;  %v9546_v4 = vpack.c.bf16 %v5371_v21, %v5367_v23 }
 0xc1e   :  { %3976 = vmatprep.mubr.f32.mxu1 %v7237_v48  ;;  %4047 = vmatprep.mubr.f32.mxu0 %v7237_v48  ;;  %v9438_v50 = vpack.c.bf16 %v5347_v43, %v5343_v8 }
 0xc1f   :  { %6573 = vmatpush1.bf16.msra.mxu1 %v9285_v13  ;;  %6605 = vmatpush1.bf16.msra.mxu0 %v9294_v6 }
 0xc20   :  { %6575 = vmatprep.subr.bf16.mxu1 %v9308_v55  ;;  %6607 = vmatprep.subr.bf16.mxu0 %v9319_v58 }
 0xc23   :  { %6577 = vmatpush1.bf16.msra.mxu1 %v9321_v38  ;;  %6609 = vmatpush1.bf16.msra.mxu0 %v9330_v29 }
 0xc24   :  { %6579 = vmatprep.subr.bf16.mxu1 %v9344_v40  ;;  %6611 = vmatprep.subr.bf16.mxu0 %v9355_v18 }
 0xc27   :  { %6581 = vmatpush1.bf16.msra.mxu1 %v9357_v42  ;;  %6613 = vmatpush1.bf16.msra.mxu0 %v9366_v41 }
 0xc28   :  { %6583 = vmatprep.subr.bf16.mxu1 %v9380_v44  ;;  %6615 = vmatprep.subr.bf16.mxu0 %v9391_v34 }
 0xc2b   :  { %6585 = vmatpush1.bf16.msra.mxu1 %v9393_v2  ;;  %6617 = vmatpush1.bf16.msra.mxu0 %v9402_v25 }
 0xc2c   :  { %6587 = vmatprep.subr.bf16.mxu1 %v9416_v12  ;;  %6619 = vmatprep.subr.bf16.mxu0 %v9427_v20 }
 0xc2f   :  { %6589 = vmatpush1.bf16.msra.mxu1 %v9429_v63  ;;  %6621 = vmatpush1.bf16.msra.mxu0 %v9438_v50 }
 0xc30   :  { %6591 = vmatprep.subr.bf16.mxu1 %v9452_v60  ;;  %6623 = vmatprep.subr.bf16.mxu0 %v9463_v56 }
 0xc33   :  { %6593 = vmatpush1.bf16.msra.mxu1 %v9465_v22  ;;  %6625 = vmatpush1.bf16.msra.mxu0 %v9474_v33 }
 0xc34   :  { %6595 = vmatprep.subr.bf16.mxu1 %v9488_v9  ;;  %6627 = vmatprep.subr.bf16.mxu0 %v9499_v11 }
 0xc37   :  { %6597 = vmatpush1.bf16.msra.mxu1 %v9501_v31  ;;  %6629 = vmatpush1.bf16.msra.mxu0 %v9510_v17 }
 0xc38   :  { %6599 = vmatprep.subr.bf16.mxu1 %v9524_v32  ;;  %6631 = vmatprep.subr.bf16.mxu0 %v9535_v19 }
 0xc3b   :  { %6601 = vmatpush1.bf16.msra.mxu1 %v9537_v62  ;;  %6633 = vmatpush1.bf16.msra.mxu0 %v9546_v4 }
 0xc3c   :  { %6635 = vmatprep.subr.bf16.mxu1 %v9272_v27  ;;  %6667 = vmatprep.subr.bf16.mxu0 %v9283_v49 }
 0xcf0   :  { %v3735_v8 = vpop.f32.mrb[22].mxu1  ;;  %v3806_v43 = vpop.f32.mrb[30].mxu0 }
 0xcf1   :  { %v6888_v54 = vadd.f32 %v3735_v8, %v9155_v15  ;;  %v3737_v24 = vpop.f32.mrb[23].mxu1  ;;  %v3808_v36 = vpop.f32.mrb[31].mxu0  ;;  %v6904_v47 = vadd.f32 %v3806_v43, %v9170_v57 }
 0xcf2   :  { %v6889_v45 = vadd.f32 %v3737_v24, %v9159_v39  ;;  %v6905_v30 = vadd.f32 %v3808_v36, %v9165_v52 }
 0xcf3   :  { %v5302_v37 = vmul.f32 -1.442695, %v6888_v54 }
 0xcf4   :  { %v5303_v51 = vmul.f32 -1.442695, %v6889_v45  ;;  %v5304_v3 = vmul.f32 -1.442695, %v6905_v30 }
 0xcf5   :  { %7157 = vpow2.f32 %v5302_v37 }
 0xcf6   :  { %7159 = vpow2.f32 %v5303_v51 }
 0xcf7   :  { %7161 = vpow2.f32 %v5304_v3 }
 0xcf8   :  { %7163 = vtanh.f32 %v6904_v47 }
 0xcff   :  { %v7158_v46 = vpop.eup %7157 }
 0xd00   :  { %v7160_v0 = vpop.eup %7159  ;;  %v3824_v7 = vadd.f32 1.0, %v7158_v46 }
 0xd01   :  { %v3825_v16 = vadd.f32 1.0, %v7160_v0  ;;  %v7162_v26 = vpop.eup %7161 }
 0xd02   :  { %7165 = vrcp.f32 %v3824_v7  ;;  %v7164_v61 = vpop.eup %7163  ;;  %v3826_v28 = vadd.f32 1.0, %v7162_v26 }
 0xd03   :  { %7167 = vrcp.f32 %v3825_v16 }
 0xd04   :  { %7169 = vrcp.f32 %v3826_v28 }
 0xd0c   :  { %v7166_v10 = vpop.eup %7165 }
 0xd0d   :  { %v7168_v59 = vpop.eup %7167  ;;  %v3835_v5 = vmul.f32 %v7166_v10, %v7164_v61 }
 0xd0e   :  { %v3834_v14 = vmul.f32 %v7168_v59, %v9258_v53  ;;  %v7170_v1 = vpop.eup %7169 }
 0xd10   :  { %v9558_v35 = vadd.f32 %v3835_v5, %v3834_v14 }
 0xd12   :  { %7171 = vtanh.f32 %v9558_v35 }
 0xd1c   :  { %v7172_v23 = vpop.eup %7171 }
 0xd1d   :  { %v3838_v21 = vmul.f32 %v7172_v23, %v7170_v1 }
 0xd1f   :  { %3977 = vmatmul.mubr.f32.vlgmr.msra.gmra.mrb[24].mxu1 %v3838_v21  ;;  %4048 = vmatmul.mubr.f32.vlgmr.msra.gmra.mrb[32].mxu0 %v3838_v21 }
 0xd20   :  { %6637 = vmatpush1.bf16.msra.mxu1 %v9285_v13  ;;  %6669 = vmatpush1.bf16.msra.mxu0 %v9294_v6 }
 0xd21   :  { %6639 = vmatprep.subr.bf16.mxu1 %v9308_v55  ;;  %6671 = vmatprep.subr.bf16.mxu0 %v9319_v58 }
 0xd22   :  { %4219 = vmatprep.mubr.f32.mxu1 %v7237_v48  ;;  %4290 = vmatprep.mubr.f32.mxu0 %v7237_v48 }
 0xd24   :  { %6641 = vmatpush1.bf16.msra.mxu1 %v9321_v38  ;;  %6673 = vmatpush1.bf16.msra.mxu0 %v9330_v29 }
 0xd25   :  { %6643 = vmatprep.subr.bf16.mxu1 %v9344_v40  ;;  %6675 = vmatprep.subr.bf16.mxu0 %v9355_v18 }
 0xd28   :  { %6645 = vmatpush1.bf16.msra.mxu1 %v9357_v42  ;;  %6677 = vmatpush1.bf16.msra.mxu0 %v9366_v41 }
 0xd29   :  { %6647 = vmatprep.subr.bf16.mxu1 %v9380_v44  ;;  %6679 = vmatprep.subr.bf16.mxu0 %v9391_v34 }
 0xd2c   :  { %6649 = vmatpush1.bf16.msra.mxu1 %v9393_v2  ;;  %6681 = vmatpush1.bf16.msra.mxu0 %v9402_v25 }
 0xd2d   :  { %6651 = vmatprep.subr.bf16.mxu1 %v9416_v12  ;;  %6683 = vmatprep.subr.bf16.mxu0 %v9427_v20 }
 0xd30   :  { %6653 = vmatpush1.bf16.msra.mxu1 %v9429_v63  ;;  %6685 = vmatpush1.bf16.msra.mxu0 %v9438_v50 }
 0xd31   :  { %6655 = vmatprep.subr.bf16.mxu1 %v9452_v60  ;;  %6687 = vmatprep.subr.bf16.mxu0 %v9463_v56 }
 0xd34   :  { %6657 = vmatpush1.bf16.msra.mxu1 %v9465_v22  ;;  %6689 = vmatpush1.bf16.msra.mxu0 %v9474_v33 }
 0xd35   :  { %6659 = vmatprep.subr.bf16.mxu1 %v9488_v9  ;;  %6691 = vmatprep.subr.bf16.mxu0 %v9499_v11 }
 0xd38   :  { %6661 = vmatpush1.bf16.msra.mxu1 %v9501_v31  ;;  %6693 = vmatpush1.bf16.msra.mxu0 %v9510_v17 }
 0xd39   :  { %6663 = vmatprep.subr.bf16.mxu1 %v9524_v32  ;;  %6695 = vmatprep.subr.bf16.mxu0 %v9535_v19 }
 0xd3c   :  { %6665 = vmatpush1.bf16.msra.mxu1 %v9537_v62  ;;  %6697 = vmatpush1.bf16.msra.mxu0 %v9546_v4 }
 0xd3d   :  { %6699 = vmatprep.subr.bf16.mxu1 %v9272_v27  ;;  %6731 = vmatprep.subr.bf16.mxu0 %v9283_v49 }
 0xdf2   :  { %v3978_v53 = vpop.f32.mrb[24].mxu1  ;;  %v4049_v8 = vpop.f32.mrb[32].mxu0 }
 0xdf3   :  { %v6890_v43 = vadd.f32 %v3978_v53, %v9155_v15  ;;  %v3980_v54 = vpop.f32.mrb[25].mxu1  ;;  %v4051_v24 = vpop.f32.mrb[33].mxu0  ;;  %v6906_v3 = vadd.f32 %v4049_v8, %v9170_v57 }
 0xdf4   :  { %v6891_v36 = vadd.f32 %v3980_v54, %v9159_v39  ;;  %v6907_v51 = vadd.f32 %v4051_v24, %v9165_v52 }
 0xdf5   :  { %v5373_v45 = vmul.f32 -1.442695, %v6890_v43 }
 0xdf6   :  { %v5374_v37 = vmul.f32 -1.442695, %v6891_v36  ;;  %v5375_v30 = vmul.f32 -1.442695, %v6907_v51 }
 0xdf7   :  { %7173 = vpow2.f32 %v5373_v45 }
 0xdf8   :  { %7175 = vpow2.f32 %v5374_v37 }
 0xdf9   :  { %7177 = vpow2.f32 %v5375_v30 }
 0xdfa   :  { %7179 = vtanh.f32 %v6906_v3 }
 0xe01   :  { %v7174_v47 = vpop.eup %7173 }
 0xe02   :  { %v7176_v46 = vpop.eup %7175  ;;  %v4067_v0 = vadd.f32 1.0, %v7174_v47 }
 0xe03   :  { %v4068_v7 = vadd.f32 1.0, %v7176_v46  ;;  %v7178_v16 = vpop.eup %7177 }
 0xe04   :  { %7181 = vrcp.f32 %v4067_v0  ;;  %v7180_v26 = vpop.eup %7179  ;;  %v4069_v5 = vadd.f32 1.0, %v7178_v16 }
 0xe05   :  { %7183 = vrcp.f32 %v4068_v7 }
 0xe06   :  { %7185 = vrcp.f32 %v4069_v5 }
 0xe0e   :  { %v7182_v61 = vpop.eup %7181 }
 0xe0f   :  { %v7184_v10 = vpop.eup %7183  ;;  %v4078_v59 = vmul.f32 %v7182_v61, %v7180_v26 }
 0xe10   :  { %v4077_v28 = vmul.f32 %v7184_v10, %v9558_v35  ;;  %v7186_v1 = vpop.eup %7185 }
 0xe12   :  { %v9600_v14 = vadd.f32 %v4078_v59, %v4077_v28 }
 0xe14   :  { %7187 = vtanh.f32 %v9600_v14 }
 0xe1e   :  { %v7188_v23 = vpop.eup %7187 }
 0xe1f   :  { %v4081_v21 = vmul.f32 %v7188_v23, %v7186_v1  ;;  %v4818_v23 = vld [vmem:[%s9761_s6 + $0x18] sm:$0xff] }
 0xe21   :  { %4220 = vmatmul.mubr.f32.vlgmr.msra.gmra.mrb[26].mxu1 %v4081_v21  ;;  %4291 = vmatmul.mubr.f32.vlgmr.msra.gmra.mrb[34].mxu0 %v4081_v21 }
 0xe22   :  { %6701 = vmatpush1.bf16.msra.mxu1 %v9285_v13  ;;  %6733 = vmatpush1.bf16.msra.mxu0 %v9294_v6 }
 0xe23   :  { %6703 = vmatprep.subr.bf16.mxu1 %v9308_v55  ;;  %6735 = vmatprep.subr.bf16.mxu0 %v9319_v58 }
 0xe24   :  { %4462 = vmatprep.mubr.f32.mxu1 %v7237_v48  ;;  %4533 = vmatprep.mubr.f32.mxu0 %v7237_v48 }
 0xe26   :  { %6705 = vmatpush1.bf16.msra.mxu1 %v9321_v38  ;;  %6737 = vmatpush1.bf16.msra.mxu0 %v9330_v29 }
 0xe27   :  { %6707 = vmatprep.subr.bf16.mxu1 %v9344_v40  ;;  %6739 = vmatprep.subr.bf16.mxu0 %v9355_v18 }
 0xe2a   :  { %6709 = vmatpush1.bf16.msra.mxu1 %v9357_v42  ;;  %6741 = vmatpush1.bf16.msra.mxu0 %v9366_v41 }
 0xe2b   :  { %6711 = vmatprep.subr.bf16.mxu1 %v9380_v44  ;;  %6743 = vmatprep.subr.bf16.mxu0 %v9391_v34 }
 0xe2e   :  { %6713 = vmatpush1.bf16.msra.mxu1 %v9393_v2  ;;  %6745 = vmatpush1.bf16.msra.mxu0 %v9402_v25 }
 0xe2f   :  { %6715 = vmatprep.subr.bf16.mxu1 %v9416_v12  ;;  %6747 = vmatprep.subr.bf16.mxu0 %v9427_v20 }
 0xe32   :  { %6717 = vmatpush1.bf16.msra.mxu1 %v9429_v63  ;;  %6749 = vmatpush1.bf16.msra.mxu0 %v9438_v50 }
 0xe33   :  { %6719 = vmatprep.subr.bf16.mxu1 %v9452_v60  ;;  %6751 = vmatprep.subr.bf16.mxu0 %v9463_v56 }
 0xe36   :  { %6721 = vmatpush1.bf16.msra.mxu1 %v9465_v22  ;;  %6753 = vmatpush1.bf16.msra.mxu0 %v9474_v33 }
 0xe37   :  { %6723 = vmatprep.subr.bf16.mxu1 %v9488_v9  ;;  %6755 = vmatprep.subr.bf16.mxu0 %v9499_v11 }
 0xe3a   :  { %6725 = vmatpush1.bf16.msra.mxu1 %v9501_v31  ;;  %6757 = vmatpush1.bf16.msra.mxu0 %v9510_v17 }
 0xe3b   :  { %6727 = vmatprep.subr.bf16.mxu1 %v9524_v32  ;;  %6759 = vmatprep.subr.bf16.mxu0 %v9535_v19 }
 0xe3e   :  { %6729 = vmatpush1.bf16.msra.mxu1 %v9537_v62  ;;  %6761 = vmatpush1.bf16.msra.mxu0 %v9546_v4 }
 0xe3f   :  { %6763 = vmatprep.subr.bf16.mxu1 %v9272_v27  ;;  %6795 = vmatprep.subr.bf16.mxu0 %v9283_v49 }
 0xef4   :  { %v4221_v35 = vpop.f32.mrb[26].mxu1  ;;  %v4292_v53 = vpop.f32.mrb[34].mxu0 }
 0xef5   :  { %v6892_v8 = vadd.f32 %v4221_v35, %v9155_v15  ;;  %v4223_v43 = vpop.f32.mrb[27].mxu1  ;;  %v4294_v54 = vpop.f32.mrb[35].mxu0  ;;  %v6908_v30 = vadd.f32 %v4292_v53, %v9170_v57  ;;  %v4819_v35 = vld [vmem:[%s9761_s6 + $0x20] sm:$0xff]  ;;  %v4820_v53 = vld [vmem:[%s9761_s6 + $0x28] sm:$0xff] }
 0xef6   :  { %v6893_v24 = vadd.f32 %v4223_v43, %v9159_v39  ;;  %v6909_v37 = vadd.f32 %v4294_v54, %v9165_v52  ;;  %v4821_v43 = vld [vmem:[%s9761_s6 + $0x30] sm:$0xff]  ;;  %v4822_v54 = vld [vmem:[%s9761_s6 + $0x38] sm:$0xff] }
 0xef7   :  { %v5444_v36 = vmul.f32 -1.442695, %v6892_v8  ;;  %v6833_v8 = vpack.c.bf16 %v4820_v53, %v4819_v35 }
 0xef8   :  { %v5445_v45 = vmul.f32 -1.442695, %v6893_v24  ;;  %v5446_v51 = vmul.f32 -1.442695, %v6909_v37  ;;  %v6836_v24 = vpack.c.bf16 %v4822_v54, %v4821_v43 }
 0xef9   :  { %7189 = vpow2.f32 %v5444_v36  ;;  %v4823_v36 = vld [vmem:[%s9761_s6 + $0x40] sm:$0xff] }
 0xefa   :  { %7191 = vpow2.f32 %v5445_v45  ;;  %v4824_v45 = vld [vmem:[%s9761_s6 + $0x48] sm:$0xff] }
 0xefb   :  { %7193 = vpow2.f32 %v5446_v51  ;;  %v6839_v37 = vpack.c.bf16 %v4824_v45, %v4823_v36  ;;  %v4825_v51 = vld [vmem:[%s9761_s6 + $0x50] sm:$0xff] }
 0xefc   :  { %7195 = vtanh.f32 %v6908_v30  ;;  %v4826_v30 = vld [vmem:[%s9761_s6 + $0x58] sm:$0xff] }
 0xf03   :  { %v7190_v27 = vpop.eup %7189 }
 0xf04   :  { %v7192_v3 = vpop.eup %7191  ;;  %v4310_v49 = vadd.f32 1.0, %v7190_v27  ;;  %v4827_v27 = vld [vmem:[%s9761_s6 + $0x60] sm:$0xff] }
 0xf05   :  { %v4311_v47 = vadd.f32 1.0, %v7192_v3  ;;  %v7194_v46 = vpop.eup %7193  ;;  %v6842_v3 = vpack.c.bf16 %v4826_v30, %v4825_v51 }
 0xf06   :  { %7197 = vrcp.f32 %v4310_v49  ;;  %v7196_v0 = vpop.eup %7195  ;;  %v4312_v61 = vadd.f32 1.0, %v7194_v46  ;;  %v4828_v49 = vld [vmem:[%s9761_s6 + $0x68] sm:$0xff]  ;;  %v4829_v46 = vld [vmem:[%s9761_s6 + $0x70] sm:$0xff] }
 0xf07   :  { %7199 = vrcp.f32 %v4311_v47  ;;  %v6845_v47 = vpack.c.bf16 %v4828_v49, %v4827_v27 }
 0xf08   :  { %7201 = vrcp.f32 %v4312_v61 }
 0xf10   :  { %v7198_v7 = vpop.eup %7197 }
 0xf11   :  { %v7200_v16 = vpop.eup %7199  ;;  %v4321_v26 = vmul.f32 %v7198_v7, %v7196_v0  ;;  %v4830_v0 = vld [vmem:[%s9761_s6 + $0x78] sm:$0xff] }
 0xf12   :  { %v4320_v10 = vmul.f32 %v7200_v16, %v9600_v14  ;;  %v7202_v5 = vpop.eup %7201  ;;  %v4817_v14 = vld [vmem:[%s9761_s6 + $0x10] sm:$0xff]  ;;  %v6848_v7 = vpack.c.bf16 %v4830_v0, %v4829_v46 }
 0xf13   :  { %v6830_v21 = vpack.c.bf16 %v4818_v23, %v4817_v14 }
 0xf14   :  { %v9642_v59 = vadd.f32 %v4321_v26, %v4320_v10 }
 0xf16   :  { %7203 = vtanh.f32 %v9642_v59 }
 0xf20   :  { %v7204_v28 = vpop.eup %7203 }
 0xf21   :  { %v4324_v1 = vmul.f32 %v7204_v28, %v7202_v5 }
 0xf23   :  { %4463 = vmatmul.mubr.f32.vlgmr.msra.gmra.mrb[28].mxu1 %v4324_v1  ;;  %4534 = vmatmul.mubr.f32.vlgmr.msra.gmra.mrb[36].mxu0 %v4324_v1 }
 0xf24   :  { %6765 = vmatpush1.bf16.msra.mxu1 %v9285_v13  ;;  %6797 = vmatpush1.bf16.msra.mxu0 %v9294_v6 }
 0xf25   :  { %6767 = vmatprep.subr.bf16.mxu1 %v9308_v55  ;;  %6799 = vmatprep.subr.bf16.mxu0 %v9319_v58 }
 0xf26   :  { %4705 = vmatprep.mubr.f32.mxu1 %v7237_v48  ;;  %4776 = vmatprep.mubr.f32.mxu0 %v7237_v48 }
 0xf28   :  { %6769 = vmatpush1.bf16.msra.mxu1 %v9321_v38  ;;  %6801 = vmatpush1.bf16.msra.mxu0 %v9330_v29 }
 0xf29   :  { %6771 = vmatprep.subr.bf16.mxu1 %v9344_v40  ;;  %6803 = vmatprep.subr.bf16.mxu0 %v9355_v18 }
 0xf2c   :  { %6773 = vmatpush1.bf16.msra.mxu1 %v9357_v42  ;;  %6805 = vmatpush1.bf16.msra.mxu0 %v9366_v41 }
 0xf2d   :  { %6775 = vmatprep.subr.bf16.mxu1 %v9380_v44  ;;  %6807 = vmatprep.subr.bf16.mxu0 %v9391_v34 }
 0xf30   :  { %6777 = vmatpush1.bf16.msra.mxu1 %v9393_v2  ;;  %6809 = vmatpush1.bf16.msra.mxu0 %v9402_v25 }
 0xf31   :  { %6779 = vmatprep.subr.bf16.mxu1 %v9416_v12  ;;  %6811 = vmatprep.subr.bf16.mxu0 %v9427_v20 }
 0xf34   :  { %6781 = vmatpush1.bf16.msra.mxu1 %v9429_v63  ;;  %6813 = vmatpush1.bf16.msra.mxu0 %v9438_v50 }
 0xf35   :  { %6783 = vmatprep.subr.bf16.mxu1 %v9452_v60  ;;  %6815 = vmatprep.subr.bf16.mxu0 %v9463_v56 }
 0xf38   :  { %6785 = vmatpush1.bf16.msra.mxu1 %v9465_v22  ;;  %6817 = vmatpush1.bf16.msra.mxu0 %v9474_v33 }
 0xf39   :  { %6787 = vmatprep.subr.bf16.mxu1 %v9488_v9  ;;  %6819 = vmatprep.subr.bf16.mxu0 %v9499_v11 }
 0xf3c   :  { %6789 = vmatpush1.bf16.msra.mxu1 %v9501_v31  ;;  %6821 = vmatpush1.bf16.msra.mxu0 %v9510_v17 }
 0xf3d   :  { %6791 = vmatprep.subr.bf16.mxu1 %v9524_v32  ;;  %6823 = vmatprep.subr.bf16.mxu0 %v9535_v19  ;;  %v4815_v32 = vld [vmem:[%s9761_s6] sm:$0xff]  ;;  %v4816_v19 = vld [vmem:[%s9761_s6 + $0x8] sm:$0xff] }
 0xf40   :  { %6793 = vmatpush1.bf16.msra.mxu1 %v9537_v62  ;;  %6825 = vmatpush1.bf16.msra.mxu0 %v9546_v4  ;;  %v6827_v62 = vpack.c.bf16 %v4816_v19, %v4815_v32  ;;  %v7238_v4 = vmov 0.0|0.0  }
 0xf41   :  { %6826 = vmatprep.subr.bf16.mxu1 %v7238_v4 }
 0xff6   :  { %v4464_v13 = vpop.f32.mrb[28].mxu1  ;;  %v4535_v6 = vpop.f32.mrb[36].mxu0 }
 0xff7   :  { %v6894_v55 = vadd.f32 %v4464_v13, %v9155_v15  ;;  %v4466_v58 = vpop.f32.mrb[29].mxu1  ;;  %v4537_v38 = vpop.f32.mrb[37].mxu0  ;;  %v6910_v44 = vadd.f32 %v4535_v6, %v9170_v57 }
 0xff8   :  { %v6895_v29 = vadd.f32 %v4466_v58, %v9159_v39  ;;  %v6911_v42 = vadd.f32 %v4537_v38, %v9165_v52 }
 0xff9   :  { %v5515_v40 = vmul.f32 -1.442695, %v6894_v55 }
 0xffa   :  { %v5516_v18 = vmul.f32 -1.442695, %v6895_v29  ;;  %v5517_v41 = vmul.f32 -1.442695, %v6911_v42 }
 0xffb   :  { %7205 = vpow2.f32 %v5515_v40 }
 0xffc   :  { %7207 = vpow2.f32 %v5516_v18 }
 0xffd   :  { %7209 = vpow2.f32 %v5517_v41 }
 0xffe   :  { %7211 = vtanh.f32 %v6910_v44 }
0x1005   :  { %v7206_v34 = vpop.eup %7205 }
0x1006   :  { %v7208_v2 = vpop.eup %7207  ;;  %v4553_v25 = vadd.f32 1.0, %v7206_v34 }
0x1007   :  { %v4554_v12 = vadd.f32 1.0, %v7208_v2  ;;  %v7210_v20 = vpop.eup %7209 }
0x1008   :  { %7213 = vrcp.f32 %v4553_v25  ;;  %v7212_v63 = vpop.eup %7211  ;;  %v4555_v22 = vadd.f32 1.0, %v7210_v20  ;;  %v5591_v25 = vld [vmem:[%s9762_s7] ss:$0 sm:$0xff] }
0x1009   :  { %7215 = vrcp.f32 %v4554_v12 }
0x100a   :  { %7217 = vrcp.f32 %v4555_v22 }
0x1012   :  { %v7214_v50 = vpop.eup %7213 }
0x1013   :  { %v7216_v60 = vpop.eup %7215  ;;  %v4564_v56 = vmul.f32 %v7214_v50, %v7212_v63 }
0x1014   :  { %v4563_v33 = vmul.f32 %v7216_v60, %v9642_v59  ;;  %v7218_v11 = vpop.eup %7217 }
0x1016   :  { %v9682_v9 = vadd.f32 %v4564_v56, %v4563_v33 }
0x1018   :  { %7219 = vtanh.f32 %v9682_v9 }
0x1022   :  { %v7220_v31 = vpop.eup %7219 }
0x1023   :  { %v4567_v17 = vmul.f32 %v7220_v31, %v7218_v11 }
0x1025   :  { %4706 = vmatmul.mubr.f32.vlgmr.msra.gmra.mrb[30].mxu1 %v4567_v17  ;;  %4777 = vmatmul.mubr.f32.vlgmr.msra.gmra.mrb[38].mxu0 %v4567_v17 }
0x1026   :  { %6828 = vmatpush3.bf16.msra.mxu1 %v6827_v62  ;;  %5667 = vmatprep.mubr.msk.f32.mxu1 %vm7239_vm1, %v7237_v48 }
0x1027   :  { %6829 = vmatprep.subr.bf16.mxu1 %v7238_v4 }
0x102a   :  { %6831 = vmatpush3.bf16.msra.mxu1 %v6830_v21 }
0x102b   :  { %6832 = vmatprep.subr.bf16.mxu1 %v7238_v4 }
0x102e   :  { %6834 = vmatpush3.bf16.msra.mxu1 %v6833_v8 }
0x102f   :  { %6835 = vmatprep.subr.bf16.mxu1 %v7238_v4 }
0x1032   :  { %6837 = vmatpush3.bf16.msra.mxu1 %v6836_v24 }
0x1033   :  { %6838 = vmatprep.subr.bf16.mxu1 %v7238_v4 }
0x1036   :  { %6840 = vmatpush3.bf16.msra.mxu1 %v6839_v37 }
0x1037   :  { %6841 = vmatprep.subr.bf16.mxu1 %v7238_v4 }
0x103a   :  { %6843 = vmatpush3.bf16.msra.mxu1 %v6842_v3 }
0x103b   :  { %6844 = vmatprep.subr.bf16.mxu1 %v7238_v4 }
0x103e   :  { %6846 = vmatpush3.bf16.msra.mxu1 %v6845_v47 }
0x103f   :  { %6847 = vmatprep.subr.bf16.mxu1 %v7238_v4 }
0x1042   :  { %6849 = vmatpush3.bf16.msra.mxu1 %v6848_v7 }
0x10f8   :  { %v4707_v16 = vpop.f32.mrb[30].mxu1  ;;  %v4778_v26 = vpop.f32.mrb[38].mxu0 }
0x10f9   :  { %v6896_v61 = vadd.f32 %v4707_v16, %v9155_v15  ;;  %v4709_v48 = vpop.f32.mrb[31].mxu1  ;;  %v4780_v10 = vpop.f32.mrb[39].mxu0  ;;  %v6912_v6 = vadd.f32 %v4778_v26, %v9170_v57 }
0x10fa   :  { %v6897_v59 = vadd.f32 %v4709_v48, %v9159_v39  ;;  %v6913_v1 = vadd.f32 %v4780_v10, %v9165_v52 }
0x10fb   :  { %v5586_v5 = vmul.f32 -1.442695, %v6896_v61 }
0x10fc   :  { %v5587_v28 = vmul.f32 -1.442695, %v6897_v59  ;;  %v5588_v13 = vmul.f32 -1.442695, %v6913_v1 }
0x10fd   :  { %7221 = vpow2.f32 %v5586_v5 }
0x10fe   :  { %7223 = vpow2.f32 %v5587_v28 }
0x10ff   :  { %7225 = vpow2.f32 %v5588_v13 }
0x1100   :  { %7227 = vtanh.f32 %v6912_v6 }
0x1107   :  { %v7222_v55 = vpop.eup %7221 }
0x1108   :  { %v7224_v58 = vpop.eup %7223  ;;  %v4796_v38 = vadd.f32 1.0, %v7222_v55 }
0x1109   :  { %v4797_v29 = vadd.f32 1.0, %v7224_v58  ;;  %v7226_v15 = vpop.eup %7225 }
0x110a   :  { %7229 = vrcp.f32 %v4796_v38  ;;  %v7228_v40 = vpop.eup %7227  ;;  %v4798_v41 = vadd.f32 1.0, %v7226_v15 }
0x110b   :  { %7231 = vrcp.f32 %v4797_v29 }
0x110c   :  { %7233 = vrcp.f32 %v4798_v41 }
0x1114   :  { %v7230_v39 = vpop.eup %7229 }
0x1115   :  { %v7232_v18 = vpop.eup %7231  ;;  %v4807_v42 = vmul.f32 %v7230_v39, %v7228_v40 }
0x1116   :  { %v4806_v44 = vmul.f32 %v7232_v18, %v9682_v9  ;;  %v7234_v57 = vpop.eup %7233 }
0x1118   :  { %v4808_v52 = vadd.f32 %v4807_v42, %v4806_v44 }
0x111a   :  { %5589 = vst [vmem:[%s9759_s12 + $0x8] sm:$0xff] %v4808_v52  ;;  %7235 = vtanh.f32 %v4808_v52 }
0x1124   :  { %v7236_v34 = vpop.eup %7235 }
0x1125   :  { %v4810_v2 = vmul.f32 %v7236_v34, %v7234_v57 }
0x1127   :  { %5590 = vst [vmem:[%s9760_s11 + $0x8] sm:$0xff] %v4810_v2  ;;  %5668 = vmatmul.mubr.f32.vlgmr.msra.gmra.mrb[32].mxu1 %v4810_v2 }
0x11fa   :  { %v4904_v12 = vpop.f32.mrb[32].mxu1 }
0x11fb   :  { %v4905_v20 = vadd.f32 %v5591_v25, %v4904_v12  ;;  %v5669_v63 = vpop.f32.mrb[33].mxu1 }
0x11fd   :  { %4908 = vst [vmem:[%s9763_s10] sm:$0xff] %v4905_v20 }

</bundles_post_ra>
